<compile_context>
chip_gen: v7x
topology: tpu7x:2x2x1
jax: 0.10.0
libtpu: 0.0.40
codegen_flags: <defaults>
</compile_context>

<pallas_src>
import functools

import jax
import jax.numpy as jnp
from jax import lax
from jax.experimental import pallas as pl
from jax.experimental.pallas import tpu as pltpu


STEM_OUT = 24      # efficientnet_v2_s.features[0][0].out_channels
HEAD_DIM = 1280    # efficientnet_v2_s.classifier[1].in_features
FEAT_DIM = 512     # replaced classifier output dim

_VMEM_LIMIT = 32 * 1024 * 1024   # conservative: fits v5e/v6e/v7x scoped VMEM


def _round_up(x, m):
    return ((x + m - 1) // m) * m


# ----------------------------------------------------------------------------
# Kernel 1: fused stem matmul + SiLU + head matmul + SiLU + global-avg-pool
# ----------------------------------------------------------------------------
def _stem_head_pool_kernel(patches_ref, stem_w_ref, stem_b_ref,
                           head_w_ref, head_b_ref,
                           pooled_ref, acc_ref, *, tm, s_real, s_pad):
    m = pl.program_id(1)

    @pl.when(m == 0)
    def _init():
        acc_ref[...] = jnp.zeros_like(acc_ref)

    x = patches_ref[0]                                            # (tm, K) bf16

    # Stem conv (im2col matmul) + bias + SiLU, all on the f32 accumulator.
    stem = jnp.dot(x, stem_w_ref[...], preferred_element_type=jnp.float32)
    stem = stem + stem_b_ref[...]
    stem = stem * jax.nn.sigmoid(stem)                            # SiLU (f32)

    # Stand-in trunk/head: 1x1 conv 24 -> 1280 + bias + SiLU (f32 accumulator).
    head = jnp.dot(stem.astype(head_w_ref.dtype), head_w_ref[...],
                   preferred_element_type=jnp.float32)
    head = head + head_b_ref[...]
    head = head * jax.nn.sigmoid(head)                            # SiLU (f32)

    if s_pad != s_real:
        # Zero out padded spatial rows so they do not pollute the pooled sum.
        rows = lax.broadcasted_iota(jnp.int32, (tm, 1), 0)
        valid = (m * tm + rows) < s_real
        head = jnp.where(valid, head, 0.0)

    acc_ref[...] += jnp.sum(head, axis=0, keepdims=True)

    @pl.when(m == pl.num_programs(1) - 1)
    def _finalize():
        inv_s = jnp.float32(1.0 / s_real)
        pooled_ref[...] = (acc_ref[...] * inv_s).reshape(pooled_ref.shape).astype(
            pooled_ref.dtype)


def stem_head_pool(patches, stem_w, stem_b, head_w, head_b):
    """patches: (N, S, K) f32 im2col rows -> pooled (N, HEAD_DIM) f32."""
    N, S, K = patches.shape
    tm = min(512, _round_up(S, 8))          # modest tile: fits v7x 64 MiB VMEM too
    s_pad = _round_up(S, tm)
    if s_pad != S:
        patches = jnp.pad(patches, ((0, 0), (0, s_pad - S), (0, 0)))
    num_m = s_pad // tm

    kernel = functools.partial(_stem_head_pool_kernel, tm=tm, s_real=S, s_pad=s_pad)
    pooled = pl.pallas_call(
        kernel,
        out_shape=jax.ShapeDtypeStruct((N, 1, HEAD_DIM), jnp.float32),
        grid=(N, num_m),
        in_specs=[
            pl.BlockSpec((1, tm, K), lambda b, i: (b, i, 0)),
            pl.BlockSpec((K, STEM_OUT), lambda b, i: (0, 0)),
            pl.BlockSpec((1, STEM_OUT), lambda b, i: (0, 0)),
            pl.BlockSpec((STEM_OUT, HEAD_DIM), lambda b, i: (0, 0)),
            pl.BlockSpec((1, HEAD_DIM), lambda b, i: (0, 0)),
        ],
        out_specs=pl.BlockSpec((1, 1, HEAD_DIM), lambda b, i: (b, 0, 0)),
        scratch_shapes=[pltpu.VMEM((1, HEAD_DIM), jnp.float32)],
        compiler_params=pltpu.CompilerParams(
            dimension_semantics=("parallel", "arbitrary"),
            vmem_limit_bytes=_VMEM_LIMIT),
    )(patches.astype(jnp.bfloat16),
      stem_w.astype(jnp.bfloat16),
      stem_b.reshape(1, -1).astype(jnp.float32),
      head_w.astype(jnp.bfloat16),
      head_b.reshape(1, -1).astype(jnp.float32))
    return pooled.reshape(N, HEAD_DIM)


# ----------------------------------------------------------------------------
# Kernel 2: fused classifier Linear(1280->512) + [layout_fc | room_fc]
# ----------------------------------------------------------------------------
def _classifier_heads_kernel(pooled_ref, cls_w_ref, cls_b_ref, hw_ref, hb_ref,
                             feat_ref, out_ref):
    feat = jnp.dot(pooled_ref[...], cls_w_ref[...],
                   preferred_element_type=jnp.float32)
    feat = feat + cls_b_ref[...]
    feat_ref[...] = feat.astype(feat_ref.dtype)

    out = jnp.dot(feat.astype(hw_ref.dtype), hw_ref[...],
                  preferred_element_type=jnp.float32)
    out = out + hb_ref[...]
    out_ref[...] = out.astype(out_ref.dtype)


def classifier_heads(pooled, cls_w, cls_b, layout_w, layout_b, room_w, room_b):
    N, D = pooled.shape
    n_l = layout_w.shape[1]
    n_r = room_w.shape[1]
    n_pad = _round_up(N, 8)                      # sublane-aligned batch
    p = _round_up(n_l + n_r, 128)                # lane-dense head output
    if n_pad != N:
        pooled = jnp.pad(pooled, ((0, n_pad - N), (0, 0)))

    heads_w = jnp.concatenate([layout_w, room_w], axis=1)
    heads_w = jnp.pad(heads_w, ((0, 0), (0, p - (n_l + n_r))))
    heads_b = jnp.concatenate([layout_b, room_b], axis=0)
    heads_b = jnp.pad(heads_b, ((0, p - (n_l + n_r)),)).reshape(1, p)

    feat, combined = pl.pallas_call(
        _classifier_heads_kernel,
        out_shape=(jax.ShapeDtypeStruct((n_pad, FEAT_DIM), jnp.float32),
                   jax.ShapeDtypeStruct((n_pad, p), jnp.float32)),
        grid=(1,),
        in_specs=[
            pl.BlockSpec((n_pad, D), lambda i: (0, 0)),
            pl.BlockSpec((D, FEAT_DIM), lambda i: (0, 0)),
            pl.BlockSpec((1, FEAT_DIM), lambda i: (0, 0)),
            pl.BlockSpec((FEAT_DIM, p), lambda i: (0, 0)),
            pl.BlockSpec((1, p), lambda i: (0, 0)),
        ],
        out_specs=(pl.BlockSpec((n_pad, FEAT_DIM), lambda i: (0, 0)),
                   pl.BlockSpec((n_pad, p), lambda i: (0, 0))),
        compiler_params=pltpu.CompilerParams(
            dimension_semantics=("arbitrary",),
            vmem_limit_bytes=_VMEM_LIMIT),
    )(pooled.astype(jnp.bfloat16),
      cls_w.astype(jnp.bfloat16),
      cls_b.reshape(1, -1).astype(jnp.float32),
      heads_w.astype(jnp.bfloat16),
      heads_b.astype(jnp.float32))

    features = feat[:N]
    layout_type = combined[:N, :n_l]
    room_type = combined[:N, n_l:n_l + n_r]
    return layout_type, room_type, features


# ----------------------------------------------------------------------------
# Parameter construction (deterministic, synthetic)
# ----------------------------------------------------------------------------
def _linear_init(key, fan_in, fan_out):
    scale = 1.0 / jnp.sqrt(jnp.float32(fan_in))
    w = jax.random.normal(key, (fan_in, fan_out), jnp.float32) * scale
    b = jnp.zeros((fan_out,), jnp.float32)
    return w, b


def init_params(key, n_layouts, n_rooms):
    k_stem, k_head, k_cls, k_lay, k_room = jax.random.split(key, 5)
    # Stem: Conv2d(1, 24, k=3, s=2, p=1) laid out as (KH*KW*Cin, Cout) for im2col
    # matmul. BatchNorm is folded (identity stats: gamma=1, beta=0, mean=0, var=1).
    stem_w, stem_b = _linear_init(k_stem, 3 * 3 * 1, STEM_OUT)
    # Stand-in 1x1 conv for the skipped trunk (channel expansion 24 -> 1280).
    head_w, head_b = _linear_init(k_head, STEM_OUT, HEAD_DIM)
    # Classifier Linear(1280, 512); dropout is identity in eval mode.
    cls_w, cls_b = _linear_init(k_cls, HEAD_DIM, FEAT_DIM)
    layout_w, layout_b = _linear_init(k_lay, FEAT_DIM, n_layouts)
    room_w, room_b = _linear_init(k_room, FEAT_DIM, n_rooms)
    return dict(
        stem_w=stem_w, stem_b=stem_b,
        head_w=head_w, head_b=head_b,
        cls_w=cls_w, cls_b=cls_b,
        layout_w=layout_w, layout_b=layout_b,
        room_w=room_w, room_b=room_b,
    )


# ----------------------------------------------------------------------------
# Forward pass
# ----------------------------------------------------------------------------
def floornet_forward(params, x_nchw):
    # x_nchw is (N, 1, H, W) like PyTorch; convert to NHWC and im2col the stem.
    N, C, H, W = x_nchw.shape
    assert C == 1, "FloorNet stem was rebuilt for 1-channel input"
    x = jnp.transpose(x_nchw, (0, 2, 3, 1))                     # (N, H, W, 1)

    # Stem conv (3x3, stride 2, pad 1) im2col -> (N, OH*OW, 9).
    xp = jnp.pad(x, ((0, 0), (1, 1), (1, 1), (0, 0)))
    OH, OW = H // 2, W // 2
    patches = jnp.concatenate(
        [xp[:, ky:ky + 2 * OH:2, kx:kx + 2 * OW:2, :]
         for ky in range(3) for kx in range(3)],
        axis=-1,
    )                                                            # (N, OH, OW, 9)
    patches = patches.reshape(N, OH * OW, 9 * C)

    # TODO(synk): pretrained EfficientNetV2-S MBConv/FusedMBConv blocks
    # (features[1:-1]) are not reproduced; the fused kernel's 1x1 SiLU projection
    # stands in for the trunk + final Conv2dNormActivation head.
    pooled = stem_head_pool(patches, params["stem_w"], params["stem_b"],
                            params["head_w"], params["head_b"])   # (N, 1280)

    return classifier_heads(pooled, params["cls_w"], params["cls_b"],
                            params["layout_w"], params["layout_b"],
                            params["room_w"], params["room_b"])


# ----------------------------------------------------------------------------
if __name__ == "__main__":
    key = jax.random.PRNGKey(0)
    k_x, k_p = jax.random.split(key)

    n_layouts, n_rooms = 5, 7
    batch, h, w = 2, 16, 16
    x = jax.random.normal(k_x, (batch, 1, h, w), jnp.float32)   # NCHW, 1 channel

    params = init_params(k_p, n_layouts, n_rooms)

    fwd = jax.jit(floornet_forward)
    layout_type, room_type, features = fwd(params, x)
    jax.block_until_ready((layout_type, room_type, features))

    assert layout_type.shape == (batch, n_layouts)
    assert room_type.shape == (batch, n_rooms)
    assert features.shape == (batch, FEAT_DIM)
    assert layout_type.dtype == jnp.float32

    print("KERNEL_OK")
</pallas_src>

<mosaic_0001>
module attributes {stable_mosaic.version = 11 : i64} {
  func.func @_stem_head_pool_kernel(%arg0: i32, %arg1: i32, %arg2: memref<1x64x9xbf16, #tpu.memory_space<vmem>>, %arg3: memref<9x24xbf16, #tpu.memory_space<vmem>>, %arg4: memref<1x24xf32, #tpu.memory_space<vmem>>, %arg5: memref<24x1280xbf16, #tpu.memory_space<vmem>>, %arg6: memref<1x1280xf32, #tpu.memory_space<vmem>>, %arg7: memref<1x1x1280xf32, #tpu.memory_space<vmem>>, %arg8: memref<1x1280xf32, #tpu.memory_space<vmem>>) attributes {dimension_semantics = [#tpu.dimension_semantics<parallel>, #tpu.dimension_semantics<arbitrary>], iteration_bounds = array<i64: 2, 1>, scalar_prefetch = 0 : i64, scratch_operands = 1 : i64, tpu.core_type = #tpu.core_type<tc>, window_params = [{transform_indices = @transform_0, window_bounds = array<i64: 1, 64, 9>}, {pipeline_mode = #tpu.pipeline_mode<synchronous>, transform_indices = @transform_1, window_bounds = array<i64: 9, 24>}, {pipeline_mode = #tpu.pipeline_mode<synchronous>, transform_indices = @transform_2, window_bounds = array<i64: 1, 24>}, {pipeline_mode = #tpu.pipeline_mode<synchronous>, transform_indices = @transform_3, window_bounds = array<i64: 24, 1280>}, {pipeline_mode = #tpu.pipeline_mode<synchronous>, transform_indices = @transform_4, window_bounds = array<i64: 1, 1280>}, {transform_indices = @transform_5, window_bounds = array<i64: 1, 1, 1280>}]} {
    %c0_i32 = arith.constant 0 : i32
    %0 = arith.cmpi eq, %arg1, %c0_i32 : i32
    %1 = arith.extui %0 : i1 to i32
    %c0_i32_0 = arith.constant 0 : i32
    %2 = arith.cmpi ne, %1, %c0_i32_0 : i32
    scf.if %2 {
      %cst_21 = arith.constant 0.000000e+00 : f32
      %36 = vector.broadcast %cst_21 : f32 to vector<1x1280xf32>
      %c0_22 = arith.constant 0 : index
      %c0_23 = arith.constant 0 : index
      %37 = vector.load %arg8[%c0_22, %c0_23] : memref<1x1280xf32, #tpu.memory_space<vmem>>, vector<1x1280xf32>
      tpu.vector_store %arg8[%c0_22, %c0_23], %36 {strides = array<i32>} : memref<1x1280xf32, #tpu.memory_space<vmem>>, vector<1x1280xf32>,
    } else {
    }
    %c0 = arith.constant 0 : index
    %c0_1 = arith.constant 0 : index
    %c0_2 = arith.constant 0 : index
    %3 = vector.load %arg2[%c0, %c0_1, %c0_2] : memref<1x64x9xbf16, #tpu.memory_space<vmem>>, vector<1x64x9xbf16>
    %4 = vector.shape_cast %3 : vector<1x64x9xbf16> to vector<64x9xbf16>
    %c0_3 = arith.constant 0 : index
    %c0_4 = arith.constant 0 : index
    %5 = vector.load %arg3[%c0_3, %c0_4] : memref<9x24xbf16, #tpu.memory_space<vmem>>, vector<9x24xbf16>
    %cst = arith.constant dense<0.000000e+00> : vector<64x24xf32>
    %6 = tpu.matmul %4, %5, %cst {dimension_numbers = #tpu.dot_dimension_numbers<[1], [0], [0], [1], [0, 0, 1, 1], [], []>} : vector<64x9xbf16>, vector<9x24xbf16>, vector<64x24xf32> -> vector<64x24xf32>
    %c0_5 = arith.constant 0 : index
    %c0_6 = arith.constant 0 : index
    %7 = vector.load %arg4[%c0_5, %c0_6] : memref<1x24xf32, #tpu.memory_space<vmem>>, vector<1x24xf32>
    %8 = vector.broadcast %7 : vector<1x24xf32> to vector<64x24xf32>
    %9 = arith.addf %6, %8 : vector<64x24xf32>
    %10 = arith.negf %9 : vector<64x24xf32>
    %11 = math.exp %10 : vector<64x24xf32>
    %cst_7 = arith.constant 1.000000e+00 : f32
    %12 = vector.broadcast %cst_7 : f32 to vector<64x24xf32>
    %13 = arith.addf %12, %11 : vector<64x24xf32>
    %14 = arith.divf %12, %13 : vector<64x24xf32>
    %15 = arith.mulf %9, %14 : vector<64x24xf32>
    %16 = arith.truncf %15 : vector<64x24xf32> to vector<64x24xbf16>
    %c0_8 = arith.constant 0 : index
    %c0_9 = arith.constant 0 : index
    %17 = vector.load %arg5[%c0_8, %c0_9] : memref<24x1280xbf16, #tpu.memory_space<vmem>>, vector<24x1280xbf16>
    %cst_10 = arith.constant dense<0.000000e+00> : vector<64x1280xf32>
    %18 = tpu.matmul %16, %17, %cst_10 {dimension_numbers = #tpu.dot_dimension_numbers<[1], [0], [0], [1], [0, 0, 1, 1], [], []>} : vector<64x24xbf16>, vector<24x1280xbf16>, vector<64x1280xf32> -> vector<64x1280xf32>
    %c0_11 = arith.constant 0 : index
    %c0_12 = arith.constant 0 : index
    %19 = vector.load %arg6[%c0_11, %c0_12] : memref<1x1280xf32, #tpu.memory_space<vmem>>, vector<1x1280xf32>
    %20 = vector.broadcast %19 : vector<1x1280xf32> to vector<64x1280xf32>
    %21 = arith.addf %18, %20 : vector<64x1280xf32>
    %22 = arith.negf %21 : vector<64x1280xf32>
    %23 = math.exp %22 : vector<64x1280xf32>
    %cst_13 = arith.constant 1.000000e+00 : f32
    %24 = vector.broadcast %cst_13 : f32 to vector<64x1280xf32>
    %25 = arith.addf %24, %23 : vector<64x1280xf32>
    %26 = arith.divf %24, %25 : vector<64x1280xf32>
    %27 = arith.mulf %21, %26 : vector<64x1280xf32>
    %c0_14 = arith.constant 0 : index
    %c0_15 = arith.constant 0 : index
    %28 = vector.load %arg8[%c0_14, %c0_15] : memref<1x1280xf32, #tpu.memory_space<vmem>>, vector<1x1280xf32>
    %cst_16 = arith.constant dense<0.000000e+00> : vector<1280xf32>
    %29 = vector.multi_reduction <add>, %27, %cst_16 [0] : vector<64x1280xf32> to vector<1280xf32>
    %30 = vector.shape_cast %29 : vector<1280xf32> to vector<1x1280xf32>
    %31 = arith.addf %28, %30 : vector<1x1280xf32>
    %c0_17 = arith.constant 0 : index
    %c0_18 = arith.constant 0 : index
    %32 = vector.load %arg8[%c0_17, %c0_18] : memref<1x1280xf32, #tpu.memory_space<vmem>>, vector<1x1280xf32>
    tpu.vector_store %arg8[%c0_17, %c0_18], %31 {strides = array<i32>} : memref<1x1280xf32, #tpu.memory_space<vmem>>, vector<1x1280xf32>,
    %c0_i32_19 = arith.constant 0 : i32
    %33 = arith.cmpi eq, %arg1, %c0_i32_19 : i32
    %34 = arith.extui %33 : i1 to i32
    %c0_i32_20 = arith.constant 0 : i32
    %35 = arith.cmpi ne, %34, %c0_i32_20 : i32
    scf.if %35 {
      %c0_21 = arith.constant 0 : index
      %c0_22 = arith.constant 0 : index
      %36 = vector.load %arg8[%c0_21, %c0_22] : memref<1x1280xf32, #tpu.memory_space<vmem>>, vector<1x1280xf32>
      %cst_23 = arith.constant 1.562500e-02 : f32
      %37 = vector.broadcast %cst_23 : f32 to vector<1x1280xf32>
      %38 = arith.mulf %36, %37 : vector<1x1280xf32>
      %39 = vector.shape_cast %38 : vector<1x1280xf32> to vector<1x1x1280xf32>
      %c0_24 = arith.constant 0 : index
      %c0_25 = arith.constant 0 : index
      %c0_26 = arith.constant 0 : index
      %40 = vector.load %arg7[%c0_24, %c0_25, %c0_26] : memref<1x1x1280xf32, #tpu.memory_space<vmem>>, vector<1x1x1280xf32>
      tpu.vector_store %arg7[%c0_24, %c0_25, %c0_26], %39 {strides = array<i32>} : memref<1x1x1280xf32, #tpu.memory_space<vmem>>, vector<1x1x1280xf32>,
    } else {
    }
    return
  }
  func.func @transform_0(%arg0: i32, %arg1: i32) -> (i32, i32, i32) {
    %c0_i32 = arith.constant 0 : i32
    %c0_i32_0 = arith.constant 0 : i32
    return %arg0, %arg1, %c0_i32 : i32, i32, i32
  }
  func.func @transform_1(%arg0: i32, %arg1: i32) -> (i32, i32) {
    %c0_i32 = arith.constant 0 : i32
    %c0_i32_0 = arith.constant 0 : i32
    %c0_i32_1 = arith.constant 0 : i32
    return %c0_i32, %c0_i32_0 : i32, i32
  }
  func.func @transform_2(%arg0: i32, %arg1: i32) -> (i32, i32) {
    %c0_i32 = arith.constant 0 : i32
    %c0_i32_0 = arith.constant 0 : i32
    %c0_i32_1 = arith.constant 0 : i32
    return %c0_i32, %c0_i32_0 : i32, i32
  }
  func.func @transform_3(%arg0: i32, %arg1: i32) -> (i32, i32) {
    %c0_i32 = arith.constant 0 : i32
    %c0_i32_0 = arith.constant 0 : i32
    %c0_i32_1 = arith.constant 0 : i32
    return %c0_i32, %c0_i32_0 : i32, i32
  }
  func.func @transform_4(%arg0: i32, %arg1: i32) -> (i32, i32) {
    %c0_i32 = arith.constant 0 : i32
    %c0_i32_0 = arith.constant 0 : i32
    %c0_i32_1 = arith.constant 0 : i32
    return %c0_i32, %c0_i32_0 : i32, i32
  }
  func.func @transform_5(%arg0: i32, %arg1: i32) -> (i32, i32, i32) {
    %c0_i32 = arith.constant 0 : i32
    %c0_i32_0 = arith.constant 0 : i32
    %c0_i32_1 = arith.constant 0 : i32
    return %arg0, %c0_i32, %c0_i32_0 : i32, i32, i32
  }
}

module attributes {stable_mosaic.version = 11 : i64} {
  func.func @_classifier_heads_kernel(%arg0: i32, %arg1: memref<8x1280xbf16, #tpu.memory_space<vmem>>, %arg2: memref<1280x512xbf16, #tpu.memory_space<vmem>>, %arg3: memref<1x512xf32, #tpu.memory_space<vmem>>, %arg4: memref<512x128xbf16, #tpu.memory_space<vmem>>, %arg5: memref<1x128xf32, #tpu.memory_space<vmem>>, %arg6: memref<8x512xf32, #tpu.memory_space<vmem>>, %arg7: memref<8x128xf32, #tpu.memory_space<vmem>>) attributes {dimension_semantics = [#tpu.dimension_semantics<arbitrary>], iteration_bounds = array<i64: 1>, scalar_prefetch = 0 : i64, scratch_operands = 0 : i64, tpu.core_type = #tpu.core_type<tc>, window_params = [{pipeline_mode = #tpu.pipeline_mode<synchronous>, transform_indices = @transform_0, window_bounds = array<i64: 8, 1280>}, {pipeline_mode = #tpu.pipeline_mode<synchronous>, transform_indices = @transform_1, window_bounds = array<i64: 1280, 512>}, {pipeline_mode = #tpu.pipeline_mode<synchronous>, transform_indices = @transform_2, window_bounds = array<i64: 1, 512>}, {pipeline_mode = #tpu.pipeline_mode<synchronous>, transform_indices = @transform_3, window_bounds = array<i64: 512, 128>}, {pipeline_mode = #tpu.pipeline_mode<synchronous>, transform_indices = @transform_4, window_bounds = array<i64: 1, 128>}, {pipeline_mode = #tpu.pipeline_mode<synchronous>, transform_indices = @transform_5, window_bounds = array<i64: 8, 512>}, {pipeline_mode = #tpu.pipeline_mode<synchronous>, transform_indices = @transform_6, window_bounds = array<i64: 8, 128>}]} {
    %c0 = arith.constant 0 : index
    %c0_0 = arith.constant 0 : index
    %0 = vector.load %arg1[%c0, %c0_0] : memref<8x1280xbf16, #tpu.memory_space<vmem>>, vector<8x1280xbf16>
    %c0_1 = arith.constant 0 : index
    %c0_2 = arith.constant 0 : index
    %1 = vector.load %arg2[%c0_1, %c0_2] : memref<1280x512xbf16, #tpu.memory_space<vmem>>, vector<1280x512xbf16>
    %cst = arith.constant dense<0.000000e+00> : vector<8x512xf32>
    %2 = tpu.matmul %0, %1, %cst {dimension_numbers = #tpu.dot_dimension_numbers<[1], [0], [0], [1], [0, 0, 1, 1], [], []>} : vector<8x1280xbf16>, vector<1280x512xbf16>, vector<8x512xf32> -> vector<8x512xf32>
    %c0_3 = arith.constant 0 : index
    %c0_4 = arith.constant 0 : index
    %3 = vector.load %arg3[%c0_3, %c0_4] : memref<1x512xf32, #tpu.memory_space<vmem>>, vector<1x512xf32>
    %4 = vector.broadcast %3 : vector<1x512xf32> to vector<8x512xf32>
    %5 = arith.addf %2, %4 : vector<8x512xf32>
    %c0_5 = arith.constant 0 : index
    %c0_6 = arith.constant 0 : index
    %6 = vector.load %arg6[%c0_5, %c0_6] : memref<8x512xf32, #tpu.memory_space<vmem>>, vector<8x512xf32>
    tpu.vector_store %arg6[%c0_5, %c0_6], %5 {strides = array<i32>} : memref<8x512xf32, #tpu.memory_space<vmem>>, vector<8x512xf32>,
    %7 = arith.truncf %5 : vector<8x512xf32> to vector<8x512xbf16>
    %c0_7 = arith.constant 0 : index
    %c0_8 = arith.constant 0 : index
    %8 = vector.load %arg4[%c0_7, %c0_8] : memref<512x128xbf16, #tpu.memory_space<vmem>>, vector<512x128xbf16>
    %cst_9 = arith.constant dense<0.000000e+00> : vector<8x128xf32>
    %9 = tpu.matmul %7, %8, %cst_9 {dimension_numbers = #tpu.dot_dimension_numbers<[1], [0], [0], [1], [0, 0, 1, 1], [], []>} : vector<8x512xbf16>, vector<512x128xbf16>, vector<8x128xf32> -> vector<8x128xf32>
    %c0_10 = arith.constant 0 : index
    %c0_11 = arith.constant 0 : index
    %10 = vector.load %arg5[%c0_10, %c0_11] : memref<1x128xf32, #tpu.memory_space<vmem>>, vector<1x128xf32>
    %11 = vector.broadcast %10 : vector<1x128xf32> to vector<8x128xf32>
    %12 = arith.addf %9, %11 : vector<8x128xf32>
    %c0_12 = arith.constant 0 : index
    %c0_13 = arith.constant 0 : index
    %13 = vector.load %arg7[%c0_12, %c0_13] : memref<8x128xf32, #tpu.memory_space<vmem>>, vector<8x128xf32>
    tpu.vector_store %arg7[%c0_12, %c0_13], %12 {strides = array<i32>} : memref<8x128xf32, #tpu.memory_space<vmem>>, vector<8x128xf32>,
    return
  }
  func.func @transform_0(%arg0: i32) -> (i32, i32) {
    %c0_i32 = arith.constant 0 : i32
    %c0_i32_0 = arith.constant 0 : i32
    %c0_i32_1 = arith.constant 0 : i32
    return %c0_i32, %c0_i32_0 : i32, i32
  }
  func.func @transform_1(%arg0: i32) -> (i32, i32) {
    %c0_i32 = arith.constant 0 : i32
    %c0_i32_0 = arith.constant 0 : i32
    %c0_i32_1 = arith.constant 0 : i32
    return %c0_i32, %c0_i32_0 : i32, i32
  }
  func.func @transform_2(%arg0: i32) -> (i32, i32) {
    %c0_i32 = arith.constant 0 : i32
    %c0_i32_0 = arith.constant 0 : i32
    %c0_i32_1 = arith.constant 0 : i32
    return %c0_i32, %c0_i32_0 : i32, i32
  }
  func.func @transform_3(%arg0: i32) -> (i32, i32) {
    %c0_i32 = arith.constant 0 : i32
    %c0_i32_0 = arith.constant 0 : i32
    %c0_i32_1 = arith.constant 0 : i32
    return %c0_i32, %c0_i32_0 : i32, i32
  }
  func.func @transform_4(%arg0: i32) -> (i32, i32) {
    %c0_i32 = arith.constant 0 : i32
    %c0_i32_0 = arith.constant 0 : i32
    %c0_i32_1 = arith.constant 0 : i32
    return %c0_i32, %c0_i32_0 : i32, i32
  }
  func.func @transform_5(%arg0: i32) -> (i32, i32) {
    %c0_i32 = arith.constant 0 : i32
    %c0_i32_0 = arith.constant 0 : i32
    %c0_i32_1 = arith.constant 0 : i32
    return %c0_i32, %c0_i32_0 : i32, i32
  }
  func.func @transform_6(%arg0: i32) -> (i32, i32) {
    %c0_i32 = arith.constant 0 : i32
    %c0_i32_0 = arith.constant 0 : i32
    %c0_i32_1 = arith.constant 0 : i32
    return %c0_i32, %c0_i32_0 : i32, i32
  }
}

</mosaic_0001>

<bundles_post_ra>
// kernel: floornet_forward.2
= control target key start
LH: loop header
LB: loop body
LE: loop exit
PB: predicated region body
PF: predicated region fallthrough
CT: control target
= control target key end

     0   :  { %10 = vsyncpa [#allocation4], 0  ;;  %s2566_s18 = smov 0   ;;  %s2568_s19 = smov 0   ;;  %s3480_s0 = inlined_call_operand.vmem [shape: bf16[2,64,9], index: 0, kind: input, shape index: {}]   ;;  %s3481_s1 = inlined_call_operand.vmem [shape: bf16[9,24], index: 1, kind: input, shape index: {}]   ;;  %s3482_s2 = inlined_call_operand.hbm [shape: f32[1,24], index: 2, kind: input, shape index: {}]   ;;  %s3483_s3 = inlined_call_operand.vmem [shape: bf16[24,1280], index: 3, kind: input, shape index: {}]   ;;  %s3484_s4 = inlined_call_operand.vmem [shape: f32[1,1280], index: 4, kind: input, shape index: {}]   ;;  %s3485_s5 = inlined_call_operand.vmem [shape: f32[2,1,1280], index: 5, kind: output, shape index: {}]  }
   0x1   :  { %s2570_s20 = smov 0  }
   0x2 LB: > { %s1879_s21 = sadd.s32 4294967295, %s2529_s20   ;;  %s28_s22 = sadd.s32 1, %s2525_s19  ;;  %s2529_s20 = sphi %s2570_s20, %s16_s20   ;;  %s2525_s19 = sphi %s2568_s19, %s3562_s19   ;;  %s2521_s18 = sphi %s2566_s18, %s3561_s18  }
   0x3   : > { %p30_p0 = scmp.ge.s32.totalorder %s28_s22, 2  ;;  %p1881_p1 = scmp.ge.s32.totalorder %s2529_s20, 1 }
   0x4   : > { %p171_p2 = scmp.lt.s32.totalorder %s2529_s20, 3  ;;  %p2591_p4 = scmp.eq.s32.totalorder %s1879_s21, 0 }
   0x5   : > { %s3564_s22 = smov (%p30_p0, %s28_s22), 0  ;;  %s2531_s25 = smov [#allocation3]  }
   0x6   : > { %p2587_p3 = pnand %p1881_p1, %p171_p2  ;;  %s187_s26 = sshll.u32 %s2531_s25, 4  ;;  %s188_s26 = int_to_ptr.vmem [resolvable:$true] %s187_s26 }
   0x7   : > { %s3500_s24 = scalar_select %p2591_p4, 1, 0 }
   0x8   : > { %s3499_s23 = scalar_select %p2587_p3, 1, 0 }
   0x9   : > { %p2058_p5 = pneg %p2587_p3  ;;  %s2475_s30 = scalar_lea.hbm %s3482_s2, 16 }
   0xa   : > { %p2476_p7 = scmp.ne.s32.totalorder %s3482_s2, %s2475_s30  ;;  %p2482_p11 = scmp.lt.u32.totalorder %s2475_s30, %s3482_s2 }
   0xb   : > { %p2599_p6 = pnand %p2591_p4, %p2058_p5 }
   0xd   : > { %p2477_p8 = pneg %p2599_p6 }
   0xf   : > { %p2478_p9 = pnand %p2477_p8, %p2476_p7 }
  0x11   : > { %p2479_p10 = pneg %p2478_p9 }
  0x13   : > { %p2484_p12 = pnand %p2482_p11, %p2479_p10 }
  0x15   : > { %2487 = shalt.err (!%p2484_p12)
}
  0x16   : > { %s2488_s10 = scalar_lea.vmem %s188_s26, 16  ;;  %s2495_s11 = scalar_lea.vmem %s188_s26, 32 }
  0x17   : > { %p2489_p13 = scmp.ne.s32.totalorder %s188_s26, %s2488_s10  ;;  %p2496_p2 = scmp.lt.s32.totalorder %s188_s26, %s188_s26 }
  0x18   : > { %p2497_p5 = scmp.lt.s32.totalorder %s2495_s11, %s2488_s10 }
  0x19   : > { %p2491_p0 = pnand %p2489_p13, %p2477_p8 }
  0x1a   : > { %p2498_p4 = por %p2497_p5, %p2496_p2 }
  0x1b   : > { %p2492_p1 = pneg %p2491_p0 }
  0x1d   : > { %p2499_p3 = pnand %p2498_p4, %p2492_p1 }
  0x1f   : > { %2502 = shalt.err (!%p2499_p3)
}
  0x20   : > { %2061 = dma.hbm_to_vmem [thread:$0]  (!%p2599_p6), %s3482_s2, 16, %s188_s26, [#allocation4]  }
  0x21   : > { %p3502_p7 = scmp.ne.s32.totalorder %s3499_s23, 0 }
  0x23   : > { %219 = sbr.rel (%p3502_p7) target bundleno = 736 (0x2e0), region = 40 }
  0x2a   : > { %p3503_p9 = scmp.ne.s32.totalorder %s3500_s24, 0 }
  0x2c   : > { %2516 = dma.done.wait (%p3503_p9), [#allocation4], 16  }
  0x2d   : > { %2518 = vsyncadd (%p3503_p9), [#allocation4], 4294967280  ;;  %vm330_vm0 = vcmask 1043456   ;;  %p251_p4 = scmp.lt.s32.totalorder %s2521_s18, 1  ;;  %vm331_vm1 = vcmask 1044480   ;;  %v2532_v0 = vmov 65535  }
  0x2e   : > { %v332_v1 = vsel %vm330_vm0, 4294967295, %v2532_v0  ;;  %vm317_vm2 = vcmask 72704   ;;  %v2093_v3 = vld [vmem:[%s3481_s1] sm:$0x1f]   ;;  %v472_v11 = vld [vmem:[%s3483_s3 + $0x50] sm:$0xff]  ;;  %v2533_v15 = vmov 0  }
  0x2f   : > { %s3566_s18 = smov (!%p251_p4, %s2521_s18), 1  ;;  %v333_v2 = vsel %vm331_vm1, %v332_v1, 0  ;;  %v2098_v9 = vld [vmem:[%s3483_s3 + $0x4] ss:$40 sps:$4 sm:$0xff]   ;;  %v2100_v10 = vld [vmem:[%s3483_s3] ss:$40 sps:$4 sm:$0xff]   ;;  %v1917_v12 = vcombine.high %v472_v11, %v472_v11  ;;  %v1916_v13 = vcombine.low %v472_v11, %v472_v11  ;;  %691 = vmatprep.mubr.bf16.mxu1 %v2533_v15 }
  0x30   : > { %s2033_s14 = sshll.u32 %s3566_s18, 5  ;;  %v335_v5 = vand.u32 %v2093_v3, %v333_v2  ;;  %2049 = vmatprep.subr.bf16.mxu1 %v2098_v9  ;;  %v2108_v16 = vld [vmem:[%s3483_s3 + $0xc] ss:$40 sps:$4 sm:$0xff]   ;;  %v1888_v18 = vld [vmem:[#allocation3] ss:$0 sm:$0xff]  ;;  %v474_v62 = vld [vmem:[%s3483_s3 + $0x60] sm:$0xff] }
  0x31   : > { %s258_s17 = scalar_lea.vmem %s3480_s0, %s2033_s14  ;;  %2051 = vmatpush1.bf16.msra.mxu1 %v2100_v10  ;;  %v620_v14 = vsel %vm330_vm0, %v1916_v13, 0  ;;  %v2105_v17 = vld [vmem:[%s3483_s3 + $0x14] ss:$40 sps:$4 sm:$0xff]   ;;  %vm606_vm3 = vcmask 195584   ;;  %s2053_s12 = smul.u32 10, %s3566_s18 }
  0x32   : > { %v2094_v4 = vld [vmem:[%s258_s17] sm:$0xff]   ;;  %v2095_v6 = vld [vmem:[%s258_s17 + $0x8] sm:$0xff]   ;;  %2039 = vmatprep.subr.bf16.mxu0 %v335_v5  ;;  %v2096_v7 = vld [vmem:[%s258_s17 + $0x10] sm:$0xff]   ;;  %2050 = vmatprep.subr.msk.bf16.mxu1 %vm330_vm0, %v1917_v12 }
  0x33   : > { %2041 = vmatprep.mubr.msk.bf16.mxu0 %vm317_vm2, %v2094_v4  ;;  %2040 = vmatpush3.bf16.msra.mxu0 %v335_v5  ;;  %v2097_v8 = vld [vmem:[%s258_s17 + $0x18] sm:$0xff]   ;;  %s263_s15 = scalar_lea.vmem %s3485_s5, %s2053_s12 }
  0x34   : > { %649 = vmatprep.subr.bf16.mxu0 %v2098_v9  ;;  %v473_v2 = vld [vmem:[%s3483_s3 + $0x58] sm:$0xff] }
  0x35   : > { %2052 = vmatpush1.bf16.msra.mxu1 %v620_v14  ;;  %v2103_v5 = vld [vmem:[%s3483_s3 + $0x10] ss:$40 sps:$4 sm:$0xff]   ;;  %v1918_v11 = vcombine.low %v473_v2, %v473_v2 }
  0x36   : > { %2042 = vmatmul.mubr.msk.bf16.vlgmr.msra.gmra.mrb[0].mxu0 %vm317_vm2, %v2095_v6  ;;  %795 = vmatprep.subr.bf16.mxu1 %v2105_v17  ;;  %v2118_v17 = vld [vmem:[%s3483_s3 + $0x24] ss:$40 sps:$4 sm:$0xff]  }
  0x37   : > { %2045 = vmatprep.mubr.msk.bf16.mxu0 %vm317_vm2, %v2096_v7  ;;  %650 = vmatpush1.bf16.msra.mxu0 %v2100_v10  ;;  %v2106_v7 = vld [vmem:[%s3483_s3 + $0x8] ss:$40 sps:$4 sm:$0xff]   ;;  %v1919_v10 = vcombine.high %v473_v2, %v473_v2 }
  0x38   : > { %1926 = vmatprep.subr.msk.bf16.mxu0 %vm330_vm0, %v1917_v12  ;;  %v1921_v12 = vcombine.high %v474_v62, %v474_v62 }
  0x3b   : > { %652 = vmatpush1.bf16.msra.mxu0 %v620_v14 }
  0x3c   : > { %722 = vmatprep.subr.bf16.mxu0 %v2108_v16 }
  0x3e   : > { %2046 = vmatmul.mubr.msk.bf16.gmra.mrb[4].mxu0 %vm317_vm2, %v2097_v8  ;;  %v1920_v8 = vcombine.low %v474_v62, %v474_v62 }
  0x3f   : > { %681 = vmatprep.mubr.bf16.mxu0 %v2533_v15 }
  0x40   : > { %v632_v16 = vsel %vm330_vm0, %v1920_v8, 0 }
 0x109   : > { %v2043_v19 = vpop.f32.mrb[0].mxu0 }
 0x10a   : > { %v380_v20 = vadd.f32 %v2043_v19, %v1888_v18  ;;  %v371_v21 = vpop.f32.mrb[1].mxu0  ;;  %v626_v19 = vsel %vm330_vm0, %v1918_v11, 0 }
 0x10b   : > { %v372_v22 = vadd.f32 %v1888_v18, %v371_v21  ;;  %v2044_v23 = vpop.f32.mrb[2].mxu0 }
 0x10c   : > { %v1900_v24 = vmul.f32 -1.442695, %v380_v20  ;;  %v383_v25 = vadd.f32 %v2044_v23, %v1888_v18  ;;  %v374_v26 = vpop.f32.mrb[3].mxu0 }
 0x10d   : > { %v1898_v27 = vmul.f32 -1.442695, %v372_v22  ;;  %v375_v28 = vadd.f32 %v1888_v18, %v374_v26  ;;  %v475_v26 = vld [vmem:[%s3483_s3 + $0x68] sm:$0xff] }
 0x10e   : > { %2123 = vpow2.f32 %v1900_v24  ;;  %v1901_v29 = vmul.f32 -1.442695, %v383_v25 }
 0x10f   : > { %2125 = vpow2.f32 %v1898_v27  ;;  %v1899_v30 = vmul.f32 -1.442695, %v375_v28 }
 0x110   : > { %2127 = vpow2.f32 %v1901_v29  ;;  %v2113_v29 = vld [vmem:[%s3483_s3 + $0x18] ss:$40 sps:$4 sm:$0xff]  }
 0x111   : > { %2129 = vpow2.f32 %v1899_v30  ;;  %v2047_v31 = vpop.f32.mrb[4].mxu0  ;;  %v1923_v30 = vcombine.high %v475_v26, %v475_v26 }
 0x112   : > { %v2657_v32 = vadd.f32 %v2047_v31, %v1888_v18  ;;  %v387_v33 = vpop.f32.mrb[5].mxu0  ;;  %v1922_v31 = vcombine.low %v475_v26, %v475_v26 }
 0x113   : > { %v2659_v34 = vadd.f32 %v1888_v18, %v387_v33  ;;  %v2048_v35 = vpop.f32.mrb[6].mxu0  ;;  %v476_v33 = vld [vmem:[%s3483_s3 + $0x70] sm:$0xff] }
 0x114   : > { %v1904_v36 = vmul.f32 -1.442695, %v2657_v32  ;;  %v2662_v37 = vadd.f32 %v2048_v35, %v1888_v18  ;;  %v390_v38 = vpop.f32.mrb[7].mxu0  ;;  %v1925_v35 = vcombine.high %v476_v33, %v476_v33 }
 0x115   : > { %v1902_v39 = vmul.f32 -1.442695, %v2659_v34  ;;  %v2665_v40 = vadd.f32 %v1888_v18, %v390_v38  ;;  %v3489_v38 = vlaneseq }
 0x116   : > { %2131 = vpow2.f32 %v1904_v36  ;;  %v1905_v41 = vmul.f32 -1.442695, %v2662_v37  ;;  %v1924_v36 = vcombine.low %v476_v33, %v476_v33 }
 0x117   : > { %2133 = vpow2.f32 %v1902_v39  ;;  %v1903_v42 = vmul.f32 -1.442695, %v2665_v40  ;;  %v2764_v39 = vshrl.u32 %v3489_v38, 7 }
 0x118   : > { %v2124_v43 = vpop.eup %2123  ;;  %2135 = vpow2.f32 %v1905_v41  ;;  %v2770_v41 = vld [vmem:[%s3484_s4] sm:$0xff] }
 0x119   : > { %v2126_v44 = vpop.eup %2125  ;;  %v428_v45 = vadd.f32 1.0, %v2124_v43  ;;  %2137 = vpow2.f32 %v1903_v42  ;;  %v3490_v42 = vsub.s32 1, %v2764_v39 }
 0x11a   : > { %v2128_v46 = vpop.eup %2127  ;;  %v426_v47 = vadd.f32 1.0, %v2126_v44 }
 0x11b   : > { %v2130_v48 = vpop.eup %2129  ;;  %2139 = vrcp.f32 %v428_v45  ;;  %v429_v49 = vadd.f32 1.0, %v2128_v46 }
 0x11c   : > { %2141 = vrcp.f32 %v426_v47  ;;  %v427_v50 = vadd.f32 1.0, %v2130_v48 }
 0x11d   : > { %2143 = vrcp.f32 %v429_v49 }
 0x11e   : > { %2145 = vrcp.f32 %v427_v50 }
 0x120   : > { %v2132_v51 = vpop.eup %2131 }
 0x121   : > { %v2134_v52 = vpop.eup %2133  ;;  %v432_v53 = vadd.f32 1.0, %v2132_v51 }
 0x122   : > { %v2136_v54 = vpop.eup %2135  ;;  %v430_v55 = vadd.f32 1.0, %v2134_v52  ;;  %v491_v52 = vsub.s32 2, %v2764_v39 }
 0x123   : > { %v2138_v56 = vpop.eup %2137  ;;  %2147 = vrcp.f32 %v432_v53  ;;  %v433_v57 = vadd.f32 1.0, %v2136_v54 }
 0x124   : > { %2149 = vrcp.f32 %v430_v55  ;;  %v431_v58 = vadd.f32 1.0, %v2138_v56 }
 0x125   : > { %v2140_v59 = vpop.eup %2139  ;;  %2151 = vrcp.f32 %v433_v57 }
 0x126   : > { %v2142_v60 = vpop.eup %2141  ;;  %2153 = vrcp.f32 %v431_v58  ;;  %v452_v0 = vmul.f32 %v2140_v59, %v380_v20  ;;  %v2115_v20 = vld [vmem:[%s3483_s3 + $0x1c] ss:$40 sps:$4 sm:$0xff]   ;;  %v495_v58 = vsub.s32 3, %v2764_v39 }
 0x127   : > { %v2144_v61 = vpop.eup %2143  ;;  %v450_v3 = vmul.f32 %v2142_v60, %v372_v22 }
 0x128   : > { %v2146_v63 = vpop.eup %2145  ;;  %v453_v1 = vmul.f32 %v2144_v61, %v383_v25 }
 0x129   : > { %v451_v4 = vmul.f32 %v2146_v63, %v375_v28 }
 0x12a   : > { %v2678_v6 = vpack.c.bf16 %v453_v1, %v452_v0 }
 0x12b   : > { %v2683_v9 = vpack.c.bf16 %v451_v4, %v450_v3  ;;  %v2816_v4 = vrot.slane %v2770_v41, %v491_v52 }
 0x12c   : > { %1928 = vmatmul.mubr.msk.bf16.vlgmr.msra.gmra.mrb[0].mxu1 %vm606_vm3, %v2678_v6 }
 0x12d   : > { %v2148_v13 = vpop.eup %2147  ;;  %1927 = vmatmul.mubr.msk.bf16.vlgmr.msra.gmra.mrb[8].mxu0 %vm606_vm3, %v2683_v9  ;;  %796 = vmatpush1.bf16.msra.mxu1 %v2103_v5 }
 0x12e   : > { %v2150_v14 = vpop.eup %2149  ;;  %723 = vmatpush1.bf16.msra.mxu0 %v2106_v7  ;;  %701 = vmatprep.mubr.bf16.mxu1 %v2533_v15  ;;  %v456_v22 = vmul.f32 %v2148_v13, %v2657_v32  ;;  %v638_v32 = vsel %vm330_vm0, %v1922_v31, 0 }
 0x12f   : > { %v2152_v18 = vpop.eup %2151  ;;  %1931 = vmatprep.subr.msk.bf16.mxu0 %vm330_vm0, %v1919_v10  ;;  %754 = vmatprep.mubr.bf16.mxu0 %v2533_v15  ;;  %v454_v24 = vmul.f32 %v2150_v14, %v2659_v34  ;;  %v2116_v34 = vld [vmem:[%s3483_s3 + $0x20] ss:$40 sps:$4 sm:$0xff]  }
 0x130   : > { %v2154_v21 = vpop.eup %2153  ;;  %v457_v23 = vmul.f32 %v2152_v18, %v2662_v37  ;;  %1936 = vmatprep.subr.msk.bf16.mxu1 %vm330_vm0, %v1921_v12  ;;  %v644_v37 = vsel %vm330_vm0, %v1924_v36, 0 }
 0x131   : > { %v455_v25 = vmul.f32 %v2154_v21, %v2665_v40  ;;  %798 = vmatpush1.bf16.msra.mxu1 %v632_v16  ;;  %v3491_v40 = vsub.s32 0, %v2764_v39 }
 0x132   : > { %v461_v27 = vpack.c.bf16 %v457_v23, %v456_v22  ;;  %725 = vmatpush1.bf16.msra.mxu0 %v626_v19  ;;  %941 = vmatprep.subr.bf16.mxu1 %v2118_v17 }
 0x133   : > { %v460_v28 = vpack.c.bf16 %v455_v25, %v454_v24  ;;  %868 = vmatprep.subr.bf16.mxu0 %v2115_v20  ;;  %v2776_v43 = vrot.slane %v2770_v41, %v3491_v40 }
 0x135   : > { %1929 = vmatmul.mubr.msk.bf16.gmra.mrb[4].mxu1 %vm606_vm3, %v460_v28  ;;  %1932 = vmatmul.mubr.msk.bf16.vlgmr.msra.gmra.mrb[12].mxu0 %vm606_vm3, %v2683_v9 }
 0x136   : > { %711 = vmatprep.mubr.bf16.mxu1 %v2533_v15  ;;  %764 = vmatprep.mubr.bf16.mxu0 %v2533_v15 }
 0x137   : > { %869 = vmatpush1.bf16.msra.mxu0 %v2113_v29 }
 0x138   : > { %1941 = vmatprep.subr.msk.bf16.mxu0 %vm330_vm0, %v1923_v30 }
 0x13b   : > { %871 = vmatpush1.bf16.msra.mxu0 %v638_v32 }
 0x13d   : > { %1930 = vmatmul.mubr.msk.bf16.gmra.mrb[8].mxu1 %vm606_vm3, %v461_v27  ;;  %1933 = vmatmul.mubr.msk.bf16.gmra.mrb[16].mxu0 %vm606_vm3, %v2678_v6 }
 0x13e   : > { %774 = vmatprep.mubr.bf16.mxu0 %v2533_v15  ;;  %827 = vmatprep.mubr.bf16.mxu1 %v2533_v15 }
 0x145   : > { %1934 = vmatmul.mubr.msk.bf16.gmra.mrb[20].mxu0 %vm606_vm3, %v460_v28  ;;  %1937 = vmatmul.mubr.msk.bf16.vlgmr.msra.gmra.mrb[12].mxu1 %vm606_vm3, %v2683_v9 }
 0x146   : > { %942 = vmatpush1.bf16.msra.mxu1 %v2116_v34  ;;  %784 = vmatprep.mubr.bf16.mxu0 %v2533_v15 }
 0x147   : > { %837 = vmatprep.mubr.bf16.mxu1 %v2533_v15  ;;  %1946 = vmatprep.subr.msk.bf16.mxu1 %vm330_vm0, %v1925_v35 }
 0x14a   : > { %944 = vmatpush1.bf16.msra.mxu1 %v644_v37 }
 0x14d   : > { %1935 = vmatmul.mubr.msk.bf16.gmra.mrb[24].mxu0 %vm606_vm3, %v461_v27  ;;  %1938 = vmatmul.mubr.msk.bf16.gmra.mrb[16].mxu1 %vm606_vm3, %v2678_v6 }
 0x14e   : > { %847 = vmatprep.mubr.bf16.mxu1 %v2533_v15  ;;  %900 = vmatprep.mubr.bf16.mxu0 %v2533_v15 }
 0x155   : > { %1939 = vmatmul.mubr.msk.bf16.gmra.mrb[20].mxu1 %vm606_vm3, %v460_v28  ;;  %1942 = vmatmul.mubr.msk.bf16.vlgmr.msra.gmra.mrb[28].mxu0 %vm606_vm3, %v2683_v9 }
 0x156   : > { %857 = vmatprep.mubr.bf16.mxu1 %v2533_v15  ;;  %910 = vmatprep.mubr.bf16.mxu0 %v2533_v15 }
 0x15d   : > { %1940 = vmatmul.mubr.msk.bf16.gmra.mrb[24].mxu1 %vm606_vm3, %v461_v27  ;;  %1943 = vmatmul.mubr.msk.bf16.gmra.mrb[32].mxu0 %vm606_vm3, %v2678_v6 }
 0x15e   : > { %920 = vmatprep.mubr.bf16.mxu0 %v2533_v15  ;;  %973 = vmatprep.mubr.bf16.mxu1 %v2533_v15 }
 0x165   : > { %1944 = vmatmul.mubr.msk.bf16.gmra.mrb[36].mxu0 %vm606_vm3, %v460_v28  ;;  %1947 = vmatmul.mubr.msk.bf16.vlgmr.msra.gmra.mrb[28].mxu1 %vm606_vm3, %v2683_v9 }
 0x166   : > { %930 = vmatprep.mubr.bf16.mxu0 %v2533_v15  ;;  %983 = vmatprep.mubr.bf16.mxu1 %v2533_v15 }
 0x16d   : > { %1945 = vmatmul.mubr.msk.bf16.gmra.mrb[40].mxu0 %vm606_vm3, %v461_v27  ;;  %1948 = vmatmul.mubr.msk.bf16.gmra.mrb[32].mxu1 %vm606_vm3, %v2678_v6  ;;  %v2820_v6 = vrot.slane %v2770_v41, %v495_v58 }
 0x16e   : > { %993 = vmatprep.mubr.bf16.mxu1 %v2533_v15 }
 0x175   : > { %1949 = vmatmul.mubr.msk.bf16.gmra.mrb[36].mxu1 %vm606_vm3, %v460_v28 }
 0x176   : > { %1003 = vmatprep.mubr.bf16.mxu1 %v2533_v15  ;;  %v2781_v15 = vrot.slane %v2770_v41, %v3490_v42 }
 0x17d   : > { %1950 = vmatmul.mubr.msk.bf16.gmra.mrb[40].mxu1 %vm606_vm3, %v461_v27 }
 0x1ff   : > { %v693_v44 = vpop.f32.mrb[0].mxu1 }
 0x200   : > { %v2784_v45 = vadd.f32 %v693_v44, %v2776_v43  ;;  %v683_v46 = vpop.f32.mrb[8].mxu0  ;;  %v695_v47 = vpop.f32.mrb[1].mxu1 }
 0x201   : > { %v2787_v48 = vadd.f32 %v683_v46, %v2776_v43  ;;  %v2790_v49 = vadd.f32 %v695_v47, %v2781_v15  ;;  %v685_v50 = vpop.f32.mrb[9].mxu0  ;;  %v697_v51 = vpop.f32.mrb[2].mxu1 }
 0x202   : > { %v1971_v53 = vmul.f32 -1.442695, %v2784_v45  ;;  %v2795_v54 = vadd.f32 %v685_v50, %v2781_v15  ;;  %v2798_v55 = vadd.f32 %v697_v51, %v2776_v43  ;;  %v687_v56 = vpop.f32.mrb[10].mxu0  ;;  %v699_v57 = vpop.f32.mrb[3].mxu1 }
 0x203   : > { %v1951_v59 = vmul.f32 -1.442695, %v2787_v48  ;;  %v1972_v60 = vmul.f32 -1.442695, %v2790_v49  ;;  %v2804_v61 = vadd.f32 %v687_v56, %v2776_v43  ;;  %v2807_v62 = vadd.f32 %v699_v57, %v2781_v15  ;;  %v689_v63 = vpop.f32.mrb[11].mxu0 }
 0x204   : > { %2155 = vpow2.f32 %v1971_v53  ;;  %v1952_v0 = vmul.f32 -1.442695, %v2795_v54  ;;  %v1981_v1 = vmul.f32 -1.442695, %v2798_v55  ;;  %v2812_v2 = vadd.f32 %v689_v63, %v2781_v15 }
 0x205   : > { %2157 = vpow2.f32 %v1951_v59  ;;  %v1961_v3 = vmul.f32 -1.442695, %v2804_v61  ;;  %v1982_v5 = vmul.f32 -1.442695, %v2807_v62 }
 0x206   : > { %2159 = vpow2.f32 %v1972_v60  ;;  %v1962_v7 = vmul.f32 -1.442695, %v2812_v2 }
 0x207   : > { %2161 = vpow2.f32 %v1952_v0 }
 0x208   : > { %2163 = vpow2.f32 %v1981_v1  ;;  %v703_v8 = vpop.f32.mrb[4].mxu1  ;;  %v756_v9 = vpop.f32.mrb[12].mxu0 }
 0x209   : > { %2165 = vpow2.f32 %v1961_v3  ;;  %v2824_v10 = vadd.f32 %v703_v8, %v2776_v43  ;;  %v2827_v11 = vadd.f32 %v756_v9, %v2816_v4  ;;  %v705_v12 = vpop.f32.mrb[5].mxu1  ;;  %v758_v13 = vpop.f32.mrb[13].mxu0 }
 0x20a   : > { %2167 = vpow2.f32 %v1982_v5  ;;  %v2830_v14 = vadd.f32 %v705_v12, %v2781_v15  ;;  %v2833_v16 = vadd.f32 %v758_v13, %v2820_v6  ;;  %v707_v17 = vpop.f32.mrb[6].mxu1  ;;  %v760_v18 = vpop.f32.mrb[14].mxu0  ;;  %v499_v12 = vsub.s32 4, %v2764_v39 }
 0x20b   : > { %2169 = vpow2.f32 %v1962_v7  ;;  %v1991_v19 = vmul.f32 -1.442695, %v2824_v10  ;;  %v1953_v20 = vmul.f32 -1.442695, %v2827_v11  ;;  %v709_v21 = vpop.f32.mrb[7].mxu1  ;;  %v762_v22 = vpop.f32.mrb[15].mxu0  ;;  %v2840_v34 = vadd.f32 %v707_v17, %v2776_v43 }
 0x20c   : > { %v1992_v23 = vmul.f32 -1.442695, %v2830_v14  ;;  %v1954_v24 = vmul.f32 -1.442695, %v2833_v16  ;;  %v2844_v63 = vadd.f32 %v760_v18, %v2816_v4  ;;  %v2847_v1 = vadd.f32 %v709_v21, %v2781_v15 }
 0x20d   : > { %2171 = vpow2.f32 %v1991_v19  ;;  %v2001_v60 = vmul.f32 -1.442695, %v2840_v34  ;;  %v2850_v8 = vadd.f32 %v762_v22, %v2820_v6 }
 0x20e   : > { %v2156_v25 = vpop.eup %2155  ;;  %2173 = vpow2.f32 %v1953_v20  ;;  %v1963_v18 = vmul.f32 -1.442695, %v2844_v63  ;;  %v2002_v22 = vmul.f32 -1.442695, %v2847_v1 }
 0x20f   : > { %v2158_v26 = vpop.eup %2157  ;;  %v1274_v27 = vadd.f32 1.0, %v2156_v25  ;;  %2175 = vpow2.f32 %v1992_v23 }
 0x210   : > { %v2160_v28 = vpop.eup %2159  ;;  %v1254_v29 = vadd.f32 1.0, %v2158_v26  ;;  %2177 = vpow2.f32 %v1954_v24  ;;  %v713_v30 = vpop.f32.mrb[8].mxu1 }
 0x211   : > { %v766_v31 = vpop.f32.mrb[16].mxu0  ;;  %v2162_v32 = vpop.eup %2161  ;;  %2179 = vrcp.f32 %v1274_v27  ;;  %v1275_v33 = vadd.f32 1.0, %v2160_v28  ;;  %v2855_v19 = vadd.f32 %v713_v30, %v2776_v43 }
 0x212   : > { %v715_v35 = vpop.f32.mrb[9].mxu1  ;;  %v768_v36 = vpop.f32.mrb[17].mxu0  ;;  %2181 = vrcp.f32 %v1254_v29  ;;  %v1255_v44 = vadd.f32 1.0, %v2162_v32  ;;  %v2863_v25 = vadd.f32 %v766_v31, %v2816_v4  ;;  %v1964_v31 = vmul.f32 -1.442695, %v2850_v8 }
 0x213   : > { %v2164_v37 = vpop.eup %2163  ;;  %v717_v46 = vpop.f32.mrb[10].mxu1  ;;  %2183 = vrcp.f32 %v1275_v33  ;;  %v2870_v30 = vadd.f32 %v715_v35, %v2781_v15  ;;  %v2873_v32 = vadd.f32 %v768_v36, %v2820_v6  ;;  %v2011_v36 = vmul.f32 -1.442695, %v2855_v19 }
 0x214   : > { %v770_v47 = vpop.f32.mrb[18].mxu0  ;;  %v2166_v50 = vpop.eup %2165  ;;  %v1284_v51 = vadd.f32 1.0, %v2164_v37  ;;  %2185 = vrcp.f32 %v1255_v44 }
 0x215   : > { %v719_v52 = vpop.f32.mrb[11].mxu1  ;;  %v2168_v53 = vpop.eup %2167  ;;  %v1264_v56 = vadd.f32 1.0, %v2166_v50  ;;  %v2881_v50 = vadd.f32 %v717_v46, %v2776_v43  ;;  %v2012_v46 = vmul.f32 -1.442695, %v2870_v30 }
 0x216   : > { %v772_v57 = vpop.f32.mrb[19].mxu0  ;;  %v2170_v58 = vpop.eup %2169  ;;  %2187 = vrcp.f32 %v1284_v51  ;;  %v1285_v59 = vadd.f32 1.0, %v2168_v53  ;;  %v2884_v51 = vadd.f32 %v770_v47, %v2816_v4  ;;  %v1974_v47 = vmul.f32 -1.442695, %v2873_v32 }
 0x217   : > { %2189 = vrcp.f32 %v1264_v56  ;;  %v1265_v0 = vadd.f32 1.0, %v2170_v58  ;;  %v2172_v3 = vpop.eup %2171  ;;  %3504 = vst [vmem:[#allocation6_spill] sm:$0xff] %v2881_v50  ;;  %v2890_v56 = vadd.f32 %v719_v52, %v2781_v15  ;;  %v2021_v15 = vmul.f32 -1.442695, %v2881_v50 }
 0x218   : > { %2191 = vrcp.f32 %v1285_v59  ;;  %v2174_v5 = vpop.eup %2173  ;;  %v1294_v7 = vadd.f32 1.0, %v2172_v3  ;;  %v776_v9 = vpop.f32.mrb[20].mxu0  ;;  %3505 = vst [vmem:[#allocation7_spill] sm:$0xff] %v2884_v51  ;;  %v1973_v59 = vmul.f32 -1.442695, %v2863_v25 }
 0x219   : > { %2193 = vrcp.f32 %v1265_v0  ;;  %v2176_v13 = vpop.eup %2175  ;;  %v1256_v17 = vadd.f32 1.0, %v2174_v5  ;;  %v2857_v20 = vpop.f32.mrb[12].mxu1  ;;  %3506 = vst [vmem:[#allocation8_spill] sm:$0xff] %v2890_v56  ;;  %v2899_v0 = vrot.slane %v2770_v41, %v499_v12  ;;  %v1983_v52 = vmul.f32 -1.442695, %v2884_v51 }
 0x21a   : > { %2195 = vpow2.f32 %v2001_v60  ;;  %v2859_v21 = vpop.f32.mrb[21].mxu0  ;;  %v2178_v23 = vpop.eup %2177  ;;  %v1295_v24 = vadd.f32 1.0, %v2176_v13  ;;  %v2894_v60 = vadd.f32 %v772_v57, %v2820_v6  ;;  %v2534_v5 = vmov 1966171168  }
 0x21b   : > { %2197 = vrcp.f32 %v1294_v7  ;;  %v2865_v26 = vpop.f32.mrb[13].mxu1  ;;  %v2867_v27 = vpop.f32.mrb[22].mxu0  ;;  %v1257_v29 = vadd.f32 1.0, %v2178_v23  ;;  %v2903_v7 = vunpack.c.l.s4 %v2534_v5  ;;  %v2022_v12 = vmul.f32 -1.442695, %v2890_v56 }
 0x21c   : > { %v2180_v28 = vpop.eup %2179  ;;  %2199 = vrcp.f32 %v1256_v17  ;;  %v2875_v33 = vpop.f32.mrb[14].mxu1  ;;  %3507 = vst [vmem:[#allocation9_spill] sm:$0xff] %v2894_v60  ;;  %v1984_v5 = vmul.f32 -1.442695, %v2894_v60  ;;  %v2919_v38 = vadd.f32 %v776_v9, %v2816_v4 }
 0x21d   : > { %v2877_v37 = vpop.f32.mrb[23].mxu0  ;;  %v2182_v44 = vpop.eup %2181  ;;  %2201 = vrcp.f32 %v1295_v24 }
 0x21e   : > { %v2886_v53 = vpop.f32.mrb[15].mxu1  ;;  %v2184_v35 = vpop.eup %2183  ;;  %2203 = vrcp.f32 %v1257_v29 }
 0x21f   : > { %v2186_v58 = vpop.eup %2185  ;;  %2205 = vpow2.f32 %v1963_v18  ;;  %v1494_v18 = vmul.f32 %v2182_v44, %v2787_v48 }
 0x220   : > { %v2188_v43 = vpop.eup %2187  ;;  %2207 = vpow2.f32 %v2002_v22  ;;  %v2905_v57 = vpop.f32.mrb[24].mxu0  ;;  %v1495_v44 = vmul.f32 %v2186_v58, %v2795_v54 }
 0x221   : > { %v2190_v3 = vpop.eup %2189  ;;  %2209 = vpow2.f32 %v1964_v31  ;;  %v2907_v13 = vpop.f32.mrb[16].mxu1  ;;  %v1514_v31 = vmul.f32 %v2180_v28, %v2784_v45  ;;  %v1524_v9 = vmul.f32 %v2188_v43, %v2798_v55 }
 0x222   : > { %v2192_v17 = vpop.eup %2191  ;;  %v1504_v23 = vmul.f32 %v2190_v3, %v2804_v61  ;;  %2211 = vpow2.f32 %v2011_v36  ;;  %v2912_v24 = vpop.f32.mrb[25].mxu0 }
 0x223   : > { %v2914_v22 = vpop.f32.mrb[17].mxu1  ;;  %v2194_v29 = vpop.eup %2193  ;;  %2213 = vpow2.f32 %v1973_v59  ;;  %v1515_v59 = vmul.f32 %v2184_v35, %v2790_v49  ;;  %v1525_v58 = vmul.f32 %v2192_v17, %v2807_v62 }
 0x224   : > { %v2921_v42 = vpop.f32.mrb[26].mxu0  ;;  %v2923_v48 = vpop.f32.mrb[18].mxu1  ;;  %v1576_v36 = vadd.f32 %v1504_v23, %v1494_v18  ;;  %v1505_v3 = vmul.f32 %v2194_v29, %v2812_v2  ;;  %2215 = vpow2.f32 %v2012_v46  ;;  %v1993_v46 = vmul.f32 -1.442695, %v2919_v38 }
 0x225   : > { %v2196_v61 = vpop.eup %2195  ;;  %v2927_v40 = vpop.f32.mrb[27].mxu0  ;;  %2217 = vpow2.f32 %v1974_v47  ;;  %v503_v18 = vsub.s32 5, %v2764_v39 }
 0x226   : > { %v2929_v45 = vpop.f32.mrb[19].mxu1  ;;  %v2198_v28 = vpop.eup %2197  ;;  %v1304_v60 = vadd.f32 1.0, %v2196_v61  ;;  %v1577_v51 = vadd.f32 %v1576_v36, %v1514_v31  ;;  %v1589_v50 = vadd.f32 %v1505_v3, %v1495_v44  ;;  %2219 = vpow2.f32 %v2021_v15 }
 0x227   : > { %v2933_v56 = vpop.eup %2199  ;;  %v1534_v54 = vmul.f32 %v2198_v28, %v2824_v10  ;;  %v1722_v10 = vunpack.c.0.s8 %v2903_v7  ;;  %v507_v7 = vsub.s32 6, %v2764_v39  ;;  %v2963_v3 = vadd.f32 %v2857_v20, %v2899_v0 }
 0x228   : > { %v2202_v2 = vpop.eup %2201  ;;  %2221 = vrcp.f32 %v1304_v60  ;;  %v1590_v55 = vadd.f32 %v1589_v50, %v1515_v59  ;;  %v1578_v35 = vadd.f32 %v1577_v51, %v1524_v9  ;;  %v2943_v15 = vpop.f32.mrb[20].mxu1 }
 0x229   : > { %v2939_v49 = vpop.eup %2203  ;;  %v1535_v43 = vmul.f32 %v2202_v2, %v2830_v14  ;;  %2223 = vpow2.f32 %v1983_v52  ;;  %v2945_v23 = vpop.f32.mrb[28].mxu0  ;;  %v2952_v52 = vrot.slane %v2770_v41, %v503_v18  ;;  %v2974_v18 = vadd.f32 %v2859_v21, %v2820_v6 }
 0x22a   : > { %v2206_v47 = vpop.eup %2205  ;;  %2225 = vpow2.f32 %v2022_v12  ;;  %v1579_v60 = vadd.f32 %v1578_v35, %v1534_v54  ;;  %v1591_v17 = vadd.f32 %v1590_v55, %v1525_v58  ;;  %v2947_v31 = vpop.f32.mrb[21].mxu1 }
 0x22b   : > { %v2208_v62 = vpop.eup %2207  ;;  %v1266_v29 = vadd.f32 1.0, %v2206_v47  ;;  %2227 = vpow2.f32 %v1984_v5  ;;  %v2949_v50 = vpop.f32.mrb[29].mxu0  ;;  %v2978_v35 = vadd.f32 %v2865_v26, %v2952_v52  ;;  %v2991_v26 = vadd.f32 %v2875_v33, %v2899_v0 }
 0x22c   : > { %v2210_v51 = vpop.eup %2209  ;;  %v1305_v14 = vadd.f32 1.0, %v2208_v62  ;;  %2229 = vpow2.f32 %v1993_v46  ;;  %v2955_v12 = vpop.f32.mrb[22].mxu1  ;;  %v2959_v36 = vadd.f32 %v1591_v17, %v1535_v43  ;;  %v2970_v46 = vsub.s32 %v1722_v10, %v2764_v39 }
 0x22d   : > { %v2957_v61 = vpop.f32.mrb[30].mxu0  ;;  %v2212_v44 = vpop.eup %2211  ;;  %2231 = vrcp.f32 %v1266_v29  ;;  %v1267_v5 = vadd.f32 1.0, %v2210_v51  ;;  %3509 = vst [vmem:[#allocation11_spill] sm:$0xff] %v2978_v35  ;;  %v1955_v17 = vmul.f32 -1.442695, %v2963_v3  ;;  %v2983_v10 = vrot.slane %v2770_v41, %v507_v7 }
 0x22e   : > { %v2965_v28 = vpop.f32.mrb[23].mxu1  ;;  %v2967_v59 = vpop.f32.mrb[31].mxu0  ;;  %2233 = vrcp.f32 %v1305_v14  ;;  %v1314_v54 = vadd.f32 1.0, %v2212_v44  ;;  %3508 = vst [vmem:[#allocation10_spill] sm:$0xff] %v2970_v46  ;;  %v2987_v51 = vadd.f32 %v2867_v27, %v2816_v4  ;;  %v1994_v7 = vmul.f32 -1.442695, %v2974_v18 }
 0x22f   : > { %v2214_v9 = vpop.eup %2213  ;;  %2235 = vrcp.f32 %v1267_v5 }
 0x230   : > { %v2216_v2 = vpop.eup %2215  ;;  %v1276_v58 = vadd.f32 1.0, %v2214_v9  ;;  %2237 = vrcp.f32 %v1314_v54  ;;  %v2993_v14 = vpop.f32.mrb[24].mxu1  ;;  %v2999_v9 = vadd.f32 %v2877_v37, %v2820_v6  ;;  %v2003_v46 = vmul.f32 -1.442695, %v2987_v51 }
 0x231   : > { %v2218_v55 = vpop.eup %2217  ;;  %v1315_v20 = vadd.f32 1.0, %v2216_v2  ;;  %v3001_v54 = vpop.f32.mrb[32].mxu0 }
 0x232   : > { %v2220_v47 = vpop.eup %2219  ;;  %2239 = vrcp.f32 %v1276_v58  ;;  %v1277_v62 = vadd.f32 1.0, %v2218_v55  ;;  %v3003_v27 = vpop.f32.mrb[25].mxu1  ;;  %v1956_v58 = vmul.f32 -1.442695, %v2978_v35  ;;  %v3008_v55 = vadd.f32 %v2886_v53, %v2952_v52 }
 0x233   : > { %v2222_v29 = vpop.eup %2221  ;;  %2241 = vrcp.f32 %v1315_v20  ;;  %v1324_v21 = vadd.f32 1.0, %v2220_v47  ;;  %v3012_v20 = vpop.f32.mrb[26].mxu1  ;;  %v1497_v35 = vmul.f32 %v2939_v49, %v2833_v16 }
 0x234   : > { %v2224_v44 = vpop.eup %2223  ;;  %v1544_v5 = vmul.f32 %v2222_v29, %v2840_v34  ;;  %2243 = vrcp.f32 %v1277_v62  ;;  %v3010_v34 = vpop.f32.mrb[33].mxu0  ;;  %3511 = vst [vmem:[#allocation13_spill] sm:$0xff] %v3012_v20  ;;  %v3016_v29 = vadd.f32 %v2905_v57, %v2816_v4  ;;  %v3029_v57 = vadd.f32 %v2907_v13, %v2899_v0 }
 0x235   : > { %v2226_v2 = vpop.eup %2225  ;;  %2245 = vrcp.f32 %v1324_v21  ;;  %v1286_v33 = vadd.f32 1.0, %v2224_v44  ;;  %3510 = vst [vmem:[#allocation12_spill] sm:$0xff] %v3010_v34  ;;  %v3018_v21 = vpop.f32.mrb[34].mxu0  ;;  %v1965_v34 = vmul.f32 -1.442695, %v2991_v26 }
 0x236   : > { %v2228_v47 = vpop.eup %2227  ;;  %v1580_v37 = vadd.f32 %v1579_v60, %v1544_v5  ;;  %v1325_v62 = vadd.f32 1.0, %v2226_v2  ;;  %2247 = vpow2.f32 %v1955_v17  ;;  %3512 = vst [vmem:[#allocation14_spill] sm:$0xff] %v3016_v29  ;;  %3513 = vst [vmem:[#allocation15_spill] sm:$0xff] %v3018_v21  ;;  %v3020_v44 = vpop.f32.mrb[27].mxu1  ;;  %v2004_v5 = vmul.f32 -1.442695, %v2999_v9 }
 0x237   : > { %3514 = vst [vmem:[#allocation16_spill] sm:$0xff] %v3020_v44  ;;  %v2230_v43 = vpop.eup %2229  ;;  %2249 = vrcp.f32 %v1286_v33  ;;  %v1287_v53 = vadd.f32 1.0, %v2228_v47  ;;  %v3024_v20 = vpop.f32.mrb[35].mxu0  ;;  %v1496_v33 = vmul.f32 %v2933_v56, %v2827_v11  ;;  %v1966_v44 = vmul.f32 -1.442695, %v3008_v55 }
 0x238   : > { %3515 = vst [vmem:[#allocation17_spill] sm:$0xff] %v3024_v20  ;;  %v2232_v60 = vpop.eup %2231  ;;  %2251 = vrcp.f32 %v1325_v62  ;;  %v1296_v17 = vadd.f32 1.0, %v2230_v43  ;;  %v2013_v43 = vmul.f32 -1.442695, %v3016_v29  ;;  %v3039_v62 = vadd.f32 %v2912_v24, %v2820_v6  ;;  %v3044_v56 = vpop.f32.mrb[36].mxu0 }
 0x239   : > { %v2234_v2 = vpop.eup %2233  ;;  %v1506_v47 = vmul.f32 %v2232_v60, %v2844_v63  ;;  %2253 = vrcp.f32 %v1287_v53  ;;  %v3046_v53 = vpop.f32.mrb[28].mxu1  ;;  %v1975_v24 = vmul.f32 -1.442695, %v3029_v57 }
 0x23a   : > { %v2236_v21 = vpop.eup %2235  ;;  %v1545_v20 = vmul.f32 %v2234_v2, %v2847_v1  ;;  %2255 = vrcp.f32 %v1296_v17  ;;  %v3051_v2 = vpop.f32.mrb[37].mxu0 }
 0x23b   : > { %v2238_v13 = vpop.eup %2237  ;;  %v1602_v11 = vadd.f32 %v1506_v47, %v1496_v33  ;;  %v1507_v63 = vmul.f32 %v2236_v21, %v2850_v8  ;;  %2257 = vpow2.f32 %v1994_v7  ;;  %v3053_v29 = vpop.f32.mrb[29].mxu1  ;;  %v3058_v7 = vadd.f32 %v2914_v22, %v2952_v52 }
 0x23c   : > { %v2240_v1 = vpop.eup %2239  ;;  %v1593_v60 = vadd.f32 %v2959_v36, %v1545_v20  ;;  %v1554_v17 = vmul.f32 %v2238_v13, %v2855_v19  ;;  %2259 = vpow2.f32 %v1956_v58  ;;  %v3060_v21 = vpop.f32.mrb[38].mxu0  ;;  %v3067_v33 = vadd.f32 %v2921_v42, %v2816_v4 }
 0x23d   : > { %v2242_v16 = vpop.eup %2241  ;;  %v1615_v49 = vadd.f32 %v1507_v63, %v1497_v35  ;;  %v1516_v8 = vmul.f32 %v2240_v1, %v2863_v25  ;;  %2261 = vpow2.f32 %v2003_v46  ;;  %v3062_v36 = vpop.f32.mrb[30].mxu1  ;;  %v3076_v13 = vadd.f32 %v2923_v48, %v2899_v0 }
 0x23e   : > { %v2244_v19 = vpop.eup %2243  ;;  %v1581_v58 = vadd.f32 %v1580_v37, %v1554_v17  ;;  %v1555_v20 = vmul.f32 %v2242_v16, %v2870_v30  ;;  %2263 = vpow2.f32 %v1965_v34  ;;  %v3069_v35 = vpop.f32.mrb[39].mxu0  ;;  %v3516_v34 = vld [vmem:[#allocation6_spill] sm:$0xff]  ;;  %v2014_v42 = vmul.f32 -1.442695, %v3039_v62 }
 0x23f   : > { %v3071_v25 = vpop.f32.mrb[31].mxu1  ;;  %v2246_v46 = vpop.eup %2245  ;;  %v1603_v22 = vadd.f32 %v1602_v11, %v1516_v8  ;;  %v1517_v47 = vmul.f32 %v2244_v19, %v2873_v32  ;;  %2265 = vpow2.f32 %v2004_v5  ;;  %v1976_v11 = vmul.f32 -1.442695, %v3058_v7  ;;  %v3517_v5 = vld [vmem:[#allocation7_spill] sm:$0xff] }
 0x240   : > { %v2248_v37 = vpop.eup %2247  ;;  %v1594_v30 = vadd.f32 %v1593_v60, %v1555_v20  ;;  %v1564_v63 = vmul.f32 %v2246_v46, %v3516_v34  ;;  %2267 = vpow2.f32 %v1966_v44  ;;  %v2023_v48 = vmul.f32 -1.442695, %v3067_v33  ;;  %v3518_v60 = vld [vmem:[#allocation8_spill] sm:$0xff]  ;;  %v3091_v46 = vpop.f32.mrb[32].mxu1 }
 0x241   : > { %v2250_v4 = vpop.eup %2249  ;;  %v1616_v1 = vadd.f32 %v1615_v49, %v1517_v47  ;;  %v1258_v17 = vadd.f32 1.0, %v2248_v37  ;;  %2269 = vpow2.f32 %v2013_v43  ;;  %v1985_v44 = vmul.f32 -1.442695, %v3076_v13  ;;  %v3089_v43 = vpop.f32.mrb[40].mxu0 }
 0x242   : > { %v2252_v16 = vpop.eup %2251  ;;  %v1582_v32 = vadd.f32 %v1581_v58, %v1564_v63  ;;  %v1526_v8 = vmul.f32 %v2250_v4, %v3517_v5  ;;  %2271 = vpow2.f32 %v1975_v24  ;;  %v3087_v49 = vadd.f32 %v2927_v40, %v2820_v6  ;;  %v3519_v24 = vld [vmem:[#allocation9_spill] sm:$0xff]  ;;  %v3094_v63 = vpop.f32.mrb[41].mxu0 }
 0x243   : > { %v2254_v19 = vpop.eup %2253  ;;  %v1565_v20 = vmul.f32 %v2252_v16, %v3518_v60  ;;  %2273 = vrcp.f32 %v1258_v17  ;;  %v3096_v4 = vpop.f32.mrb[33].mxu1  ;;  %v3101_v40 = vadd.f32 %v2929_v45, %v2952_v52 }
 0x244   : > { %v2256_v58 = vpop.eup %2255  ;;  %v1583_v47 = vrot.slane %v1582_v32, 4  ;;  %v1604_v37 = vadd.f32 %v1603_v22, %v1526_v8  ;;  %v1527_v34 = vmul.f32 %v2254_v19, %v3519_v24  ;;  %2275 = vpow2.f32 %v2014_v42  ;;  %3520 = vst [vmem:[#allocation6_spill] sm:$0xff] %v3096_v4  ;;  %v3103_v6 = vpop.f32.mrb[42].mxu0 }
 0x245   : > { %v2258_v17 = vpop.eup %2257  ;;  %v1595_v16 = vadd.f32 %v1594_v30, %v1565_v20  ;;  %v1536_v5 = vmul.f32 %v2256_v58, %v2919_v38  ;;  %2277 = vpow2.f32 %v1976_v11  ;;  %3521 = vst [vmem:[#allocation7_spill] sm:$0xff] %v3103_v6  ;;  %v3105_v60 = vpop.f32.mrb[34].mxu1 }
 0x246   : > { %3522 = vst [vmem:[#allocation8_spill] sm:$0xff] %v3105_v60  ;;  %v2260_v22 = vpop.eup %2259  ;;  %v1584_v8 = vadd.f32 %v1583_v47, %v1582_v32  ;;  %v3107_v42 = vadd.f32 %v1616_v1, %v1527_v34  ;;  %v1297_v19 = vadd.f32 1.0, %v2258_v17  ;;  %2279 = vpow2.f32 %v2023_v48  ;;  %v3109_v24 = vpop.f32.mrb[43].mxu0 }
 0x247   : > { %3523 = vst [vmem:[#allocation9_spill] sm:$0xff] %v3109_v24  ;;  %v3111_v30 = vpop.f32.mrb[35].mxu1  ;;  %v2262_v38 = vpop.eup %2261  ;;  %v1596_v11 = vrot.slane %v1595_v16, 4  ;;  %v3113_v20 = vadd.f32 %v1604_v37, %v1536_v5  ;;  %v1259_v45 = vadd.f32 1.0, %v2260_v22  ;;  %2281 = vpow2.f32 %v1985_v44 }
 0x248   : > { %3524 = vst [vmem:[#allocation18_spill] sm:$0xff] %v3111_v30  ;;  %v2264_v58 = vpop.eup %2263  ;;  %v1585_v6 = vrot.slane %v1584_v8, 2  ;;  %2283 = vrcp.f32 %v1297_v19  ;;  %v1306_v60 = vadd.f32 1.0, %v2262_v38  ;;  %v3525_v32 = vsub.s32 7, %v2764_v39 }
 0x249   : > { %v2266_v48 = vpop.eup %2265  ;;  %v1597_v47 = vadd.f32 %v1596_v11, %v1595_v16  ;;  %2285 = vrcp.f32 %v1259_v45  ;;  %v1268_v34 = vadd.f32 1.0, %v2264_v58  ;;  %v2024_v17 = vmul.f32 -1.442695, %v3087_v49 }
 0x24a   : > { %v3118_v1 = vrot.slane %v2770_v41, %v3525_v32  ;;  %v2268_v30 = vpop.eup %2267  ;;  %v1586_v37 = vadd.f32 %v1585_v6, %v1584_v8  ;;  %2287 = vrcp.f32 %v1306_v60  ;;  %v1307_v5 = vadd.f32 1.0, %v2266_v48  ;;  %v3126_v32 = vpop.f32.mrb[36].mxu1 }
 0x24b   : > { %v3123_v44 = vadd.f32 %v2943_v15, %v2899_v0  ;;  %v2270_v22 = vpop.eup %2269  ;;  %v1598_v19 = vrot.slane %v1597_v47, 2  ;;  %2289 = vrcp.f32 %v1268_v34  ;;  %v1269_v38 = vadd.f32 1.0, %v2268_v30  ;;  %3526 = vst [vmem:[#allocation19_spill] sm:$0xff] %v3126_v32  ;;  %v3132_v60 = vpop.f32.mrb[37].mxu1 }
 0x24c   : > { %v1986_v41 = vmul.f32 -1.442695, %v3101_v40  ;;  %v2272_v16 = vpop.eup %2271  ;;  %v1587_v11 = vrot.slane %v1586_v37, 1  ;;  %2291 = vrcp.f32 %v1307_v5  ;;  %v1316_v45 = vadd.f32 1.0, %v2270_v22  ;;  %3527 = vst [vmem:[#allocation20_spill] sm:$0xff] %v3132_v60  ;;  %v3138_v48 = vpop.f32.mrb[38].mxu1 }
 0x24d   : > { %v3130_v6 = vadd.f32 %v2945_v23, %v2983_v10  ;;  %v2274_v15 = vpop.eup %2273  ;;  %v1599_v8 = vadd.f32 %v1598_v19, %v1597_v47  ;;  %2293 = vrcp.f32 %v1269_v38  ;;  %v1278_v58 = vadd.f32 1.0, %v2272_v16  ;;  %3528 = vst [vmem:[#allocation21_spill] sm:$0xff] %v3138_v48  ;;  %v3149_v47 = vpop.f32.mrb[39].mxu1 }
 0x24e   : > { %v3136_v30 = vadd.f32 %v2947_v31, %v2952_v52  ;;  %v2276_v34 = vpop.eup %2275  ;;  %2295 = vrcp.f32 %v1316_v45  ;;  %v1995_v5 = vmul.f32 -1.442695, %v3123_v44  ;;  %v3143_v23 = vadd.f32 %v2949_v50, %v3118_v1  ;;  %3529 = vst [vmem:[#allocation22_spill] sm:$0xff] %v3149_v47 }
 0x24f   : > { %v3147_v22 = vadd.f32 %v2955_v12, %v2899_v0  ;;  %v2278_v19 = vpop.eup %2277  ;;  %v3151_v38 = vadd.f32 %v1587_v11, %v1586_v37  ;;  %v1600_v31 = vrot.slane %v1599_v8, 1  ;;  %2297 = vrcp.f32 %v1278_v58 }
 0x250   : > { %v1317_v16 = vadd.f32 1.0, %v2276_v34  ;;  %v2280_v48 = vpop.eup %2279  ;;  %v1279_v45 = vadd.f32 1.0, %v2278_v19  ;;  %2299 = vpow2.f32 %v2024_v17  ;;  %v3155_v60 = vadd.f32 %v2957_v61, %v2983_v10 }
 0x251   : > { %v3159_v50 = vadd.f32 %v2965_v28, %v2952_v52  ;;  %v2282_v12 = vpop.eup %2281  ;;  %v3161_v32 = vadd.f32 %v1600_v31, %v1599_v8  ;;  %v1326_v37 = vadd.f32 1.0, %v2280_v48  ;;  %v1957_v11 = vmul.f32 -1.442695, %v3130_v6  ;;  %v3170_v31 = vpop.f32.mrb[40].mxu1 }
 0x252   : > { %2301 = vrcp.f32 %v1317_v16  ;;  %v2284_v58 = vpop.eup %2283  ;;  %v1288_v34 = vadd.f32 1.0, %v2282_v12  ;;  %v1996_v17 = vmul.f32 -1.442695, %v3136_v30  ;;  %v1958_v19 = vmul.f32 -1.442695, %v3143_v23  ;;  %3530 = vst [vmem:[#allocation23_spill] sm:$0xff] %v3170_v31 }
 0x253   : > { %2303 = vrcp.f32 %v1279_v45  ;;  %v2286_v61 = vpop.eup %2285  ;;  %v1537_v28 = vmul.f32 %v2284_v58, %v2974_v18  ;;  %v2005_v8 = vmul.f32 -1.442695, %v3147_v22  ;;  %v1967_v16 = vmul.f32 -1.442695, %v3155_v60  ;;  %v3178_v24 = vpop.f32.mrb[41].mxu1 }
 0x254   : > { %2305 = vrcp.f32 %v1326_v37  ;;  %v2288_v48 = vpop.eup %2287  ;;  %v2006_v45 = vmul.f32 -1.442695, %v3159_v50  ;;  %v3176_v12 = vadd.f32 %v2967_v59, %v3118_v1  ;;  %3531 = vst [vmem:[#allocation24_spill] sm:$0xff] %v3178_v24  ;;  %v3184_v58 = vadd.f32 %v2993_v14, %v2899_v0 }
 0x255   : > { %2307 = vrcp.f32 %v1288_v34  ;;  %v2290_v47 = vpop.eup %2289  ;;  %v1618_v18 = vadd.f32 %v3107_v42, %v1537_v28  ;;  %v1546_v37 = vmul.f32 %v2288_v48, %v2987_v51  ;;  %v3186_v34 = vpop.f32.mrb[42].mxu1  ;;  %v1498_v4 = vmul.f32 %v2274_v15, %v2963_v3  ;;  %v3534_v15 = vld [vmem:[#allocation11_spill] sm:$0xff] }
 0x256   : > { %2309 = vpow2.f32 %v1986_v41  ;;  %3532 = vst [vmem:[#allocation25_spill] sm:$0xff] %v3186_v34  ;;  %v2292_v31 = vpop.eup %2291  ;;  %v1508_v59 = vmul.f32 %v2290_v47, %v2991_v26  ;;  %v3192_v24 = vadd.f32 %v3001_v54, %v2983_v10  ;;  %v3194_v42 = vpop.f32.mrb[43].mxu1  ;;  %v3200_v28 = vadd.f32 %v3003_v27, %v2952_v52 }
 0x257   : > { %2311 = vpow2.f32 %v1995_v5  ;;  %3533 = vst [vmem:[#allocation26_spill] sm:$0xff] %v3194_v42  ;;  %v2294_v51 = vpop.eup %2293  ;;  %v1606_v41 = vadd.f32 %v3113_v20, %v1546_v37  ;;  %v1547_v14 = vmul.f32 %v2292_v31, %v2999_v9  ;;  %v1499_v26 = vmul.f32 %v2286_v61, %v3534_v15  ;;  %v3535_v42 = vld [vmem:[#allocation14_spill] sm:$0xff] }
 0x258   : > { %2313 = vpow2.f32 %v1957_v11  ;;  %v2296_v3 = vpop.eup %2295  ;;  %v1628_v5 = vadd.f32 %v1508_v59, %v1498_v4  ;;  %v1509_v47 = vmul.f32 %v2294_v51, %v3008_v55  ;;  %v1968_v20 = vmul.f32 -1.442695, %v3176_v12  ;;  %v478_v4 = vld [vmem:[%s3484_s4 + $0x8] sm:$0x3] }
 0x259   : > { %2315 = vpow2.f32 %v1996_v17  ;;  %v2298_v54 = vpop.eup %2297  ;;  %v1619_v48 = vadd.f32 %v1618_v18, %v1547_v14  ;;  %v1556_v34 = vmul.f32 %v2296_v3, %v3535_v42  ;;  %v2015_v27 = vmul.f32 -1.442695, %v3184_v58 }
 0x25a   : > { %2317 = vpow2.f32 %v1958_v19  ;;  %v2300_v9 = vpop.eup %2299  ;;  %v1641_v11 = vadd.f32 %v1509_v47, %v1499_v26  ;;  %v1518_v31 = vmul.f32 %v2298_v54, %v3029_v57  ;;  %v1977_v18 = vmul.f32 -1.442695, %v3192_v24  ;;  %v3536_v57 = vld [vmem:[#allocation12_spill] sm:$0xff]  ;;  %v3539_v47 = vld [vmem:[#allocation13_spill] sm:$0xff] }
 0x25b   : > { %2319 = vpow2.f32 %v2005_v8  ;;  %v1607_v17 = vadd.f32 %v1606_v41, %v1556_v34  ;;  %v1327_v61 = vadd.f32 1.0, %v2300_v9  ;;  %v3215_v8 = vadd.f32 %v3536_v57, %v3118_v1 }
 0x25c   : > { %v2302_v55 = vpop.eup %2301  ;;  %2321 = vpow2.f32 %v1967_v16  ;;  %v1629_v37 = vadd.f32 %v1628_v5, %v1518_v31  ;;  %v2016_v14 = vmul.f32 -1.442695, %v3200_v28  ;;  %v3537_v34 = vsub.s32 0, %v2764_v39 }
 0x25d   : > { %v2304_v19 = vpop.eup %2303  ;;  %v1557_v59 = vmul.f32 %v2302_v55, %v3039_v62  ;;  %2323 = vpow2.f32 %v2006_v45  ;;  %v3538_v62 = vsub.s32 1, %v2764_v39  ;;  %v3233_v54 = vadd.f32 %v3539_v47, %v2899_v0 }
 0x25e   : > { %v2306_v42 = vpop.eup %2305  ;;  %v1519_v51 = vmul.f32 %v2304_v19, %v3058_v7  ;;  %2325 = vrcp.f32 %v1327_v61  ;;  %v3221_v16 = vrot.slane %v478_v4, %v3537_v34  ;;  %v3541_v61 = vld [vmem:[#allocation16_spill] sm:$0xff]  ;;  %v3253_v34 = vadd.f32 %v3044_v56, %v2983_v10 }
 0x25f   : > { %v2308_v41 = vpop.eup %2307  ;;  %v1620_v3 = vadd.f32 %v1619_v48, %v1557_v59  ;;  %v1566_v15 = vmul.f32 %v2306_v42, %v3067_v33  ;;  %2327 = vpow2.f32 %v1968_v20  ;;  %v3226_v45 = vrot.slane %v478_v4, %v3538_v62  ;;  %v3542_v59 = vld [vmem:[#allocation17_spill] sm:$0xff] }
 0x260   : > { %v2310_v26 = vpop.eup %2309  ;;  %v3228_v5 = vadd.f32 %v1641_v11, %v1519_v51  ;;  %v1528_v7 = vmul.f32 %v2308_v41, %v3076_v13  ;;  %2329 = vpow2.f32 %v2015_v27  ;;  %v1978_v33 = vmul.f32 -1.442695, %v3215_v8  ;;  %v3540_v11 = vld [vmem:[#allocation15_spill] sm:$0xff] }
 0x261   : > { %v2312_v9 = vpop.eup %2311  ;;  %v1608_v31 = vadd.f32 %v1607_v17, %v1566_v15  ;;  %v1289_v48 = vadd.f32 1.0, %v2310_v26  ;;  %2331 = vpow2.f32 %v1977_v18  ;;  %v3240_v55 = vadd.f32 %v3540_v11, %v2983_v10 }
 0x262   : > { %v2314_v20 = vpop.eup %2313  ;;  %v3236_v39 = vadd.f32 %v1629_v37, %v1528_v7  ;;  %v1298_v4 = vadd.f32 1.0, %v2312_v9  ;;  %2333 = vpow2.f32 %v2016_v14  ;;  %v3244_v17 = vadd.f32 %v3541_v61, %v2952_v52 }
 0x263   : > { %v2316_v13 = vpop.eup %2315  ;;  %v1609_v27 = vrot.slane %v1608_v31, 4  ;;  %2335 = vrcp.f32 %v1289_v48  ;;  %v1260_v0 = vadd.f32 1.0, %v2314_v20  ;;  %v2025_v37 = vmul.f32 -1.442695, %v3233_v54 }
 0x264   : > { %v2318_v18 = vpop.eup %2317  ;;  %2337 = vrcp.f32 %v1298_v4  ;;  %v1299_v19 = vadd.f32 1.0, %v2316_v13  ;;  %v3249_v57 = vadd.f32 %v3542_v59, %v3118_v1  ;;  %v1987_v15 = vmul.f32 -1.442695, %v3240_v55 }
 0x265   : > { %v2320_v42 = vpop.eup %2319  ;;  %v1610_v51 = vadd.f32 %v1609_v27, %v1608_v31  ;;  %2339 = vrcp.f32 %v1260_v0  ;;  %v1261_v14 = vadd.f32 1.0, %v2318_v18  ;;  %v3258_v62 = vadd.f32 %v3046_v53, %v3221_v16 }
 0x266   : > { %v2322_v41 = vpop.eup %2321  ;;  %2341 = vrcp.f32 %v1299_v19  ;;  %v1308_v52 = vadd.f32 1.0, %v2320_v42  ;;  %v2026_v47 = vmul.f32 -1.442695, %v3244_v17  ;;  %v3263_v9 = vadd.f32 %v3051_v2, %v3118_v1 }
 0x267   : > { %v2324_v26 = vpop.eup %2323  ;;  %2343 = vrcp.f32 %v1261_v14  ;;  %v1270_v7 = vadd.f32 1.0, %v2322_v41  ;;  %v1611_v31 = vrot.slane %v1610_v51, 2  ;;  %v3267_v20 = vadd.f32 %v3053_v29, %v3226_v45 }
 0x268   : > { %v2326_v56 = vpop.eup %2325  ;;  %2345 = vrcp.f32 %v1308_v52  ;;  %v1309_v48 = vadd.f32 1.0, %v2324_v26  ;;  %v1988_v11 = vmul.f32 -1.442695, %v3249_v57  ;;  %v1997_v13 = vmul.f32 -1.442695, %v3253_v34 }
 0x269   : > { %v2328_v4 = vpop.eup %2327  ;;  %v1567_v53 = vmul.f32 %v2326_v56, %v3087_v49  ;;  %2347 = vrcp.f32 %v1270_v7  ;;  %v1959_v0 = vmul.f32 -1.442695, %v3258_v62  ;;  %v3275_v61 = vadd.f32 %v3060_v21, %v2983_v10 }
 0x26a   : > { %v2330_v27 = vpop.eup %2329  ;;  %2349 = vrcp.f32 %v1309_v48  ;;  %v1271_v2 = vadd.f32 1.0, %v2328_v4  ;;  %v1998_v49 = vmul.f32 -1.442695, %v3263_v9  ;;  %v1612_v42 = vadd.f32 %v1611_v31, %v1610_v51 }
 0x26b   : > { %v2332_v18 = vpop.eup %2331  ;;  %v1621_v29 = vadd.f32 %v1620_v3, %v1567_v53  ;;  %v1318_v19 = vadd.f32 1.0, %v2330_v27  ;;  %2351 = vpow2.f32 %v1978_v33  ;;  %v1960_v41 = vmul.f32 -1.442695, %v3267_v20 }
 0x26c   : > { %v2334_v59 = vpop.eup %2333  ;;  %2353 = vrcp.f32 %v1271_v2  ;;  %v1280_v14 = vadd.f32 1.0, %v2332_v18  ;;  %v3281_v21 = vadd.f32 %v3062_v36, %v3221_v16  ;;  %v2007_v33 = vmul.f32 -1.442695, %v3275_v61 }
 0x26d   : > { %v2336_v52 = vpop.eup %2335  ;;  %v1622_v26 = vrot.slane %v1621_v29, 4  ;;  %2355 = vrcp.f32 %v1318_v19  ;;  %v1319_v7 = vadd.f32 1.0, %v2334_v59  ;;  %v3287_v51 = vadd.f32 %v3069_v35, %v3118_v1 }
 0x26e   : > { %v2338_v56 = vpop.eup %2337  ;;  %v1529_v3 = vmul.f32 %v2336_v52, %v3101_v40  ;;  %2357 = vrcp.f32 %v1280_v14  ;;  %v1613_v27 = vrot.slane %v1612_v42, 1  ;;  %v3543_v2 = vlaneseq }
 0x26f   : > { %v2340_v31 = vpop.eup %2339  ;;  %v1623_v48 = vadd.f32 %v1622_v26, %v1621_v29  ;;  %v1538_v4 = vmul.f32 %v2338_v56, %v3123_v44  ;;  %2359 = vrcp.f32 %v1319_v7  ;;  %v2535_v29 = vmov 0.0  }
 0x270   : > { %v2342_v53 = vpop.eup %2341  ;;  %v1643_v36 = vadd.f32 %v3228_v5, %v1529_v3  ;;  %2361 = vpow2.f32 %v2025_v37  ;;  %vm3292_vm4 = vcmp.lt.s32.totalorder %v3543_v2, 256  ;;  %v1969_v5 = vmul.f32 -1.442695, %v3281_v21 }
 0x271   : > { %v2344_v18 = vpop.eup %2343  ;;  %v1624_v19 = vrot.slane %v1623_v48, 2  ;;  %v1631_v35 = vadd.f32 %v3236_v39, %v1538_v4  ;;  %v1539_v59 = vmul.f32 %v2342_v53, %v3136_v30  ;;  %2363 = vpow2.f32 %v1987_v15  ;;  %274 = vst.msk [vmem:[#allocation2 + $0x8] sm:$0x3] %vm3292_vm4, %v2535_v29 }
 0x272   : > { %v2346_v44 = vpop.eup %2345  ;;  %2365 = vpow2.f32 %v2026_v47  ;;  %v2008_v37 = vmul.f32 -1.442695, %v3287_v51  ;;  %v3304_v14 = vadd.f32 %v3071_v25, %v3226_v45  ;;  %v1614_v7 = vadd.f32 %v1613_v27, %v1612_v42 }
 0x273   : > { %v2348_v52 = vpop.eup %2347  ;;  %v1625_v26 = vadd.f32 %v1624_v19, %v1623_v48  ;;  %v1644_v39 = vadd.f32 %v1643_v36, %v1539_v59  ;;  %v1548_v30 = vmul.f32 %v2346_v44, %v3147_v22  ;;  %2367 = vpow2.f32 %v1988_v11 }
 0x274   : > { %v2350_v15 = vpop.eup %2349  ;;  %v1500_v56 = vmul.f32 %v2340_v31, %v3130_v6  ;;  %v1510_v47 = vmul.f32 %v2348_v52, %v3155_v60  ;;  %2369 = vpow2.f32 %v1997_v13  ;;  %v1501_v48 = vmul.f32 %v2344_v18, %v3143_v23 }
 0x275   : > { %v2352_v3 = vpop.eup %2351  ;;  %v1626_v4 = vrot.slane %v1625_v26, 1  ;;  %v1632_v53 = vadd.f32 %v1631_v35, %v1548_v30  ;;  %v1549_v2 = vmul.f32 %v2350_v15, %v3159_v50  ;;  %2371 = vpow2.f32 %v1959_v0 }
 0x276   : > { %v2354_v25 = vpop.eup %2353  ;;  %v1654_v36 = vadd.f32 %v1510_v47, %v1500_v56  ;;  %v1281_v19 = vadd.f32 1.0, %v2352_v3  ;;  %2373 = vpow2.f32 %v1998_v49  ;;  %v1970_v31 = vmul.f32 -1.442695, %v3304_v14  ;;  %v3546_v49 = vld [vmem:[#allocation10_spill] sm:$0xff] }
 0x277   : > { %v2356_v22 = vpop.eup %2355  ;;  %v1627_v11 = vadd.f32 %v1626_v4, %v1625_v26  ;;  %v1645_v42 = vadd.f32 %v1644_v39, %v1549_v2  ;;  %v1511_v6 = vmul.f32 %v2354_v25, %v3176_v12  ;;  %2375 = vpow2.f32 %v1960_v41 }
 0x278   : > { %v2358_v60 = vpop.eup %2357  ;;  %v1558_v13 = vmul.f32 %v2356_v22, %v3184_v58  ;;  %2377 = vrcp.f32 %v1281_v19  ;;  %v3547_v35 = vcombine.low %v3151_v38, %v3161_v32 }
 0x279   : > { %v2360_v50 = vpop.eup %2359  ;;  %v1717_v0 = vcombine.low %v1614_v7, %v1627_v11  ;;  %v1667_v27 = vadd.f32 %v1511_v6, %v1501_v48  ;;  %v1520_v23 = vmul.f32 %v2358_v60, %v3192_v24  ;;  %2379 = vpow2.f32 %v2007_v33  ;;  %v3548_v11 = vld [vmem:[#allocation6_spill] sm:$0xff]  ;;  %v3549_v6 = vld [vmem:[#allocation7_spill] sm:$0xff] }
 0x27a   : > { %v2362_v18 = vpop.eup %2361  ;;  %v3319_v59 = vrot.slane %v3547_v35, %v3546_v49  ;;  %v3321_v12 = vadd.f32 %v1632_v53, %v1558_v13  ;;  %v1559_v58 = vmul.f32 %v2360_v50, %v3200_v28  ;;  %2381 = vpow2.f32 %v1969_v5 }
 0x27b   : > { %v2364_v41 = vpop.eup %2363  ;;  %v3325_v29 = vrot.slane %v1717_v0, %v3546_v49  ;;  %v3327_v44 = vadd.f32 %v1654_v36, %v1520_v23  ;;  %v1328_v24 = vadd.f32 1.0, %v2362_v18  ;;  %2383 = vpow2.f32 %v2008_v37 }
 0x27c   : > { %v2366_v33 = vpop.eup %2365  ;;  %v3329_v52 = vadd.f32 %v1645_v42, %v1559_v58  ;;  %v1290_v26 = vadd.f32 1.0, %v2364_v41  ;;  %2385 = vpow2.f32 %v1970_v31  ;;  %v3335_v5 = vadd.f32 %v3089_v43, %v2983_v10 }
 0x27d   : > { %v2368_v32 = vpop.eup %2367  ;;  %v1748_v38 = vcombine.low %v3319_v59, %v3325_v29  ;;  %2387 = vrcp.f32 %v1328_v24  ;;  %v1329_v28 = vadd.f32 1.0, %v2366_v33  ;;  %v3340_v43 = vadd.f32 %v3091_v46, %v3221_v16 }
 0x27e   : > { %v2370_v39 = vpop.eup %2369  ;;  %2389 = vrcp.f32 %v1290_v26  ;;  %v1291_v30 = vadd.f32 1.0, %v2368_v32  ;;  %v2017_v4 = vmul.f32 -1.442695, %v3335_v5  ;;  %v3345_v36 = vadd.f32 %v3094_v63, %v3118_v1 }
 0x27f   : > { %v2372_v15 = vpop.eup %2371  ;;  %2391 = vrcp.f32 %v1329_v28  ;;  %v1300_v37 = vadd.f32 1.0, %v2370_v39  ;;  %v3349_v42 = vadd.f32 %v3548_v11, %v3226_v45  ;;  %v3353_v60 = vadd.f32 %v3549_v6, %v2983_v10  ;;  %v3551_v28 = vld [vmem:[#allocation9_spill] sm:$0xff] }
 0x280   : > { %v2374_v7 = vpop.eup %2373  ;;  %2393 = vrcp.f32 %v1291_v30  ;;  %v1262_v56 = vadd.f32 1.0, %v2372_v15  ;;  %v1979_v23 = vmul.f32 -1.442695, %v3340_v43  ;;  %v2018_v58 = vmul.f32 -1.442695, %v3345_v36 }
 0x281   : > { %v2376_v47 = vpop.eup %2375  ;;  %2395 = vrcp.f32 %v1300_v37  ;;  %v1301_v3 = vadd.f32 1.0, %v2374_v7  ;;  %v2027_v24 = vmul.f32 -1.442695, %v3353_v60  ;;  %v3368_v39 = vadd.f32 %v3551_v28, %v3118_v1  ;;  %v3552_v37 = vld [vmem:[#allocation18_spill] sm:$0xff] }
 0x282   : > { %v2378_v53 = vpop.eup %2377  ;;  %2397 = vrcp.f32 %v1262_v56  ;;  %v1263_v2 = vadd.f32 1.0, %v2376_v47  ;;  %v3374_v7 = vadd.f32 %v3552_v37, %v3226_v45 }
 0x283   : > { %v2380_v25 = vpop.eup %2379  ;;  %v1521_v48 = vmul.f32 %v2378_v53, %v3215_v8  ;;  %2399 = vrcp.f32 %v1301_v3  ;;  %v3550_v8 = vld [vmem:[#allocation8_spill] sm:$0xff]  ;;  %v3553_v3 = vld [vmem:[#allocation19_spill] sm:$0xff] }
 0x284   : > { %v2382_v19 = vpop.eup %2381  ;;  %2401 = vrcp.f32 %v1263_v2  ;;  %v1310_v22 = vadd.f32 1.0, %v2380_v25  ;;  %v3357_v50 = vadd.f32 %v3550_v8, %v3221_v16  ;;  %v3380_v1 = vadd.f32 %v3553_v3, %v3221_v16 }
 0x285   : > { %v2384_v46 = vpop.eup %2383  ;;  %v1668_v13 = vadd.f32 %v1667_v27, %v1521_v48  ;;  %v1272_v31 = vadd.f32 1.0, %v2382_v19  ;;  %2403 = vpow2.f32 %v2017_v4  ;;  %v1980_v27 = vmul.f32 -1.442695, %v3349_v42 }
 0x286   : > { %v2386_v63 = vpop.eup %2385  ;;  %2405 = vrcp.f32 %v1310_v22  ;;  %v1311_v0 = vadd.f32 1.0, %v2384_v46  ;;  %v1989_v32 = vmul.f32 -1.442695, %v3357_v50  ;;  %v2028_v48 = vmul.f32 -1.442695, %v3368_v39 }
 0x287   : > { %v2388_v18 = vpop.eup %2387  ;;  %2407 = vrcp.f32 %v1272_v31  ;;  %v1273_v35 = vadd.f32 1.0, %v2386_v63  ;;  %v1990_v46 = vmul.f32 -1.442695, %v3374_v7 }
 0x288   : > { %v2390_v10 = vpop.eup %2389  ;;  %v1568_v41 = vmul.f32 %v2388_v18, %v3233_v54  ;;  %2409 = vrcp.f32 %v1311_v0 }
 0x289   : > { %v2392_v33 = vpop.eup %2391  ;;  %v1530_v26 = vmul.f32 %v2390_v10, %v3240_v55  ;;  %2411 = vrcp.f32 %v1273_v35  ;;  %v3554_v35 = vld [vmem:[#allocation20_spill] sm:$0xff] }
 0x28a   : > { %v2394_v30 = vpop.eup %2393  ;;  %v1634_v15 = vadd.f32 %v3321_v12, %v1568_v41  ;;  %v1569_v54 = vmul.f32 %v2392_v33, %v3244_v17  ;;  %2413 = vpow2.f32 %v1979_v23 }
 0x28b   : > { %v2396_v56 = vpop.eup %2395  ;;  %v1656_v55 = vadd.f32 %v3327_v44, %v1530_v26  ;;  %v1531_v47 = vmul.f32 %v2394_v30, %v3249_v57  ;;  %2415 = vpow2.f32 %v2018_v58 }
 0x28c   : > { %v2398_v4 = vpop.eup %2397  ;;  %v1635_v53 = vrot.slane %v1634_v15, 4  ;;  %v1647_v12 = vadd.f32 %v3329_v52, %v1569_v54  ;;  %v1540_v17 = vmul.f32 %v2396_v56, %v3253_v34  ;;  %2417 = vpow2.f32 %v1980_v27 }
 0x28d   : > { %v2400_v2 = vpop.eup %2399  ;;  %v1669_v25 = vadd.f32 %v1668_v13, %v1531_v47  ;;  %2419 = vpow2.f32 %v2027_v24  ;;  %v1999_v52 = vmul.f32 -1.442695, %v3380_v1  ;;  %v1502_v23 = vmul.f32 %v2398_v4, %v3258_v62 }
 0x28e   : > { %v2402_v44 = vpop.eup %2401  ;;  %v1636_v19 = vadd.f32 %v1635_v53, %v1634_v15  ;;  %v1648_v57 = vrot.slane %v1647_v12, 4  ;;  %v1657_v22 = vadd.f32 %v1656_v55, %v1540_v17  ;;  %v1541_v11 = vmul.f32 %v2400_v2, %v3263_v9 }
 0x28f   : > { %v2404_v6 = vpop.eup %2403  ;;  %2421 = vpow2.f32 %v1989_v32  ;;  %v3392_v9 = vadd.f32 %v3554_v35, %v3226_v45  ;;  %v1503_v33 = vmul.f32 %v2402_v44, %v3267_v20 }
 0x290   : > { %v2406_v31 = vpop.eup %2405  ;;  %v1637_v34 = vrot.slane %v1636_v19, 2  ;;  %v1649_v8 = vadd.f32 %v1648_v57, %v1647_v12  ;;  %v1670_v63 = vadd.f32 %v1669_v25, %v1541_v11  ;;  %v1320_v13 = vadd.f32 1.0, %v2404_v6  ;;  %v3557_v57 = vld [vmem:[#allocation23_spill] sm:$0xff] }
 0x291   : > { %v2408_v0 = vpop.eup %2407  ;;  %v1550_v18 = vmul.f32 %v2406_v31, %v3275_v61  ;;  %2423 = vpow2.f32 %v2028_v48  ;;  %v2000_v17 = vmul.f32 -1.442695, %v3392_v9  ;;  %v3558_v31 = vld [vmem:[#allocation24_spill] sm:$0xff] }
 0x292   : > { %v2410_v58 = vpop.eup %2409  ;;  %v1638_v10 = vadd.f32 %v1637_v34, %v1636_v19  ;;  %v1650_v41 = vrot.slane %v1649_v8, 2  ;;  %v1512_v27 = vmul.f32 %v2408_v0, %v3281_v21  ;;  %2425 = vrcp.f32 %v1320_v13  ;;  %v3555_v21 = vld [vmem:[#allocation21_spill] sm:$0xff] }
 0x293   : > { %v2412_v24 = vpop.eup %2411  ;;  %v1658_v26 = vadd.f32 %v1657_v22, %v1550_v18  ;;  %v1551_v32 = vmul.f32 %v2410_v58, %v3287_v51  ;;  %2427 = vpow2.f32 %v1990_v46  ;;  %v3400_v55 = vadd.f32 %v3555_v21, %v3221_v16  ;;  %v3559_v13 = vld [vmem:[#allocation25_spill] sm:$0xff]  ;;  %v3560_v58 = vld [vmem:[#allocation26_spill] sm:$0xff] }
 0x294   : > { %v2414_v62 = vpop.eup %2413  ;;  %v1639_v61 = vrot.slane %v1638_v10, 1  ;;  %v1651_v28 = vadd.f32 %v1650_v41, %v1649_v8  ;;  %v1680_v30 = vadd.f32 %v1512_v27, %v1502_v23  ;;  %v1513_v15 = vmul.f32 %v2412_v24, %v3304_v14  ;;  %v3556_v14 = vld [vmem:[#allocation22_spill] sm:$0xff] }
 0x295   : > { %v2416_v54 = vpop.eup %2415  ;;  %v1671_v37 = vadd.f32 %v1670_v63, %v1551_v32  ;;  %v1282_v56 = vadd.f32 1.0, %v2414_v62  ;;  %2429 = vpow2.f32 %v1999_v52  ;;  %v3407_v2 = vadd.f32 %v3556_v14, %v3226_v45 }
 0x296   : > { %v2418_v47 = vpop.eup %2417  ;;  %v3402_v20 = vadd.f32 %v1639_v61, %v1638_v10  ;;  %v1652_v3 = vrot.slane %v1651_v28, 1  ;;  %v1693_v51 = vadd.f32 %v1513_v15, %v1503_v33  ;;  %v1321_v4 = vadd.f32 1.0, %v2416_v54 }
 0x297   : > { %v2420_v53 = vpop.eup %2419  ;;  %2431 = vrcp.f32 %v1282_v56  ;;  %v1283_v12 = vadd.f32 1.0, %v2418_v47  ;;  %v2009_v19 = vmul.f32 -1.442695, %v3400_v55  ;;  %v3414_v22 = vadd.f32 %v3557_v57, %v3221_v16 }
 0x298   : > { %v3409_v25 = vadd.f32 %v1652_v3, %v1651_v28  ;;  %2433 = vrcp.f32 %v1321_v4  ;;  %v1330_v48 = vadd.f32 1.0, %v2420_v53  ;;  %v2010_v52 = vmul.f32 -1.442695, %v3407_v2 }
 0x299   : > { %v2422_v44 = vpop.eup %2421  ;;  %2435 = vrcp.f32 %v1283_v12  ;;  %v3421_v34 = vadd.f32 %v3558_v31, %v3226_v45  ;;  %v3425_v0 = vadd.f32 %v3559_v13, %v3221_v16  ;;  %v2019_v35 = vmul.f32 -1.442695, %v3414_v22 }
 0x29a   : > { %v1718_v11 = vcombine.low %v3402_v20, %v3409_v25  ;;  %2437 = vrcp.f32 %v1330_v48  ;;  %v1292_v6 = vadd.f32 1.0, %v2422_v44  ;;  %v3431_v10 = vadd.f32 %v3560_v58, %v3226_v45 }
 0x29b   : > { %v2424_v46 = vpop.eup %2423  ;;  %2439 = vpow2.f32 %v2000_v17  ;;  %v2020_v33 = vmul.f32 -1.442695, %v3421_v34  ;;  %v2029_v32 = vmul.f32 -1.442695, %v3425_v0 }
 0x29c   : > { %v2426_v8 = vpop.eup %2425  ;;  %2441 = vrcp.f32 %v1292_v6  ;;  %v1331_v63 = vadd.f32 1.0, %v2424_v46 }
 0x29d   : > { %v2428_v23 = vpop.eup %2427  ;;  %v1560_v18 = vmul.f32 %v2426_v8, %v3335_v5  ;;  %2443 = vpow2.f32 %v2009_v19  ;;  %v2030_v5 = vmul.f32 -1.442695, %v3431_v10 }
 0x29e   : > { %2445 = vrcp.f32 %v1331_v63  ;;  %v1293_v41 = vadd.f32 1.0, %v2428_v23 }
 0x29f   : > { %v2430_v27 = vpop.eup %2429  ;;  %v1659_v24 = vadd.f32 %v1658_v26, %v1560_v18  ;;  %2447 = vpow2.f32 %v2010_v52 }
 0x2a0   : > { %2449 = vrcp.f32 %v1293_v41  ;;  %v1302_v16 = vadd.f32 1.0, %v2430_v27 }
 0x2a1   : > { %v2432_v62 = vpop.eup %2431  ;;  %2451 = vpow2.f32 %v2019_v35 }
 0x2a2   : > { %v2434_v61 = vpop.eup %2433  ;;  %v1522_v28 = vmul.f32 %v2432_v62, %v3340_v43  ;;  %2453 = vrcp.f32 %v1302_v16 }
 0x2a3   : > { %v2436_v45 = vpop.eup %2435  ;;  %v1561_v15 = vmul.f32 %v2434_v61, %v3345_v36  ;;  %2455 = vpow2.f32 %v2020_v33 }
 0x2a4   : > { %v2438_v26 = vpop.eup %2437  ;;  %v1681_v54 = vadd.f32 %v1680_v30, %v1522_v28  ;;  %v1523_v56 = vmul.f32 %v2436_v45, %v3349_v42  ;;  %2457 = vpow2.f32 %v2029_v32 }
 0x2a5   : > { %v2440_v21 = vpop.eup %2439  ;;  %v1672_v47 = vadd.f32 %v1671_v37, %v1561_v15  ;;  %v1570_v3 = vmul.f32 %v2438_v26, %v3353_v60  ;;  %2459 = vpow2.f32 %v2030_v5 }
 0x2a6   : > { %v2442_v4 = vpop.eup %2441  ;;  %v1694_v53 = vadd.f32 %v1693_v51, %v1523_v56  ;;  %v1303_v12 = vadd.f32 1.0, %v2440_v21 }
 0x2a7   : > { %v2444_v17 = vpop.eup %2443  ;;  %v1660_v43 = vadd.f32 %v1659_v24, %v1570_v3  ;;  %v1532_v14 = vmul.f32 %v2442_v4, %v3357_v50 }
 0x2a8   : > { %v2446_v48 = vpop.eup %2445  ;;  %2461 = vrcp.f32 %v1303_v12  ;;  %v1312_v36 = vadd.f32 1.0, %v2444_v17 }
 0x2a9   : > { %v2448_v44 = vpop.eup %2447  ;;  %v1661_v30 = vrot.slane %v1660_v43, 4  ;;  %v1682_v19 = vadd.f32 %v1681_v54, %v1532_v14  ;;  %v1571_v42 = vmul.f32 %v2446_v48, %v3368_v39 }
 0x2aa   : > { %v2450_v57 = vpop.eup %2449  ;;  %2463 = vrcp.f32 %v1312_v36  ;;  %v1313_v37 = vadd.f32 1.0, %v2448_v44 }
 0x2ab   : > { %v2452_v60 = vpop.eup %2451  ;;  %v1662_v6 = vadd.f32 %v1661_v30, %v1660_v43  ;;  %v1673_v46 = vadd.f32 %v1672_v47, %v1571_v42  ;;  %v1533_v51 = vmul.f32 %v2450_v57, %v3374_v7 }
 0x2ac   : > { %v2454_v52 = vpop.eup %2453  ;;  %2465 = vrcp.f32 %v1313_v37  ;;  %v1322_v31 = vadd.f32 1.0, %v2452_v60 }
 0x2ad   : > { %v2456_v50 = vpop.eup %2455  ;;  %v1663_v8 = vrot.slane %v1662_v6, 2  ;;  %v1674_v63 = vrot.slane %v1673_v46, 4  ;;  %v1695_v13 = vadd.f32 %v1694_v53, %v1533_v51  ;;  %v1542_v23 = vmul.f32 %v2454_v52, %v3380_v1 }
 0x2ae   : > { %v2458_v18 = vpop.eup %2457  ;;  %2467 = vrcp.f32 %v1322_v31  ;;  %v1323_v39 = vadd.f32 1.0, %v2456_v50  ;;  %v1575_v50 = vld [vmem:[#allocation2 + $0x8] sm:$0x3] }
 0x2af   : > { %v2460_v35 = vpop.eup %2459  ;;  %v1664_v58 = vadd.f32 %v1663_v8, %v1662_v6  ;;  %v1675_v41 = vadd.f32 %v1674_v63, %v1673_v46  ;;  %v1683_v27 = vadd.f32 %v1682_v19, %v1542_v23  ;;  %v1332_v24 = vadd.f32 1.0, %v2458_v18 }
 0x2b0   : > { %2469 = vrcp.f32 %v1323_v39  ;;  %v1333_v33 = vadd.f32 1.0, %v2460_v35  ;;  %v1756_v19 = vrot.slane %v1748_v38, %v3546_v49 }
 0x2b1   : > { %v1665_v7 = vrot.slane %v1664_v58, 1  ;;  %v1676_v16 = vrot.slane %v1675_v41, 2  ;;  %2471 = vrcp.f32 %v1332_v24 }
 0x2b2   : > { %v2462_v32 = vpop.eup %2461  ;;  %2473 = vrcp.f32 %v1333_v33 }
 0x2b3   : > { %v1677_v62 = vadd.f32 %v1676_v16, %v1675_v41  ;;  %v1543_v5 = vmul.f32 %v2462_v32, %v3392_v9  ;;  %v1666_v1 = vadd.f32 %v1665_v7, %v1664_v58  ;;  %v1740_v9 = vrot.slane %v1718_v11, %v3546_v49 }
 0x2b4   : > { %v2464_v61 = vpop.eup %2463 }
 0x2b5   : > { %v1678_v28 = vrot.slane %v1677_v62, 1  ;;  %v1696_v45 = vadd.f32 %v1695_v13, %v1543_v5  ;;  %v1552_v15 = vmul.f32 %v2464_v61, %v3400_v55 }
 0x2b6   : > { %v2466_v26 = vpop.eup %2465 }
 0x2b7   : > { %v1679_v54 = vadd.f32 %v1678_v28, %v1677_v62  ;;  %v1684_v56 = vadd.f32 %v1683_v27, %v1552_v15  ;;  %v1553_v21 = vmul.f32 %v2466_v26, %v3407_v2 }
 0x2b8   : > { %v2468_v47 = vpop.eup %2467 }
 0x2b9   : > { %v1719_v3 = vcombine.low %v1666_v1, %v1679_v54  ;;  %v1697_v4 = vadd.f32 %v1696_v45, %v1553_v21  ;;  %v1562_v53 = vmul.f32 %v2468_v47, %v3414_v22 }
 0x2ba   : > { %v2470_v12 = vpop.eup %2469 }
 0x2bb   : > { %v2472_v17 = vpop.eup %2471  ;;  %v1747_v55 = vrot.slane %v1719_v3, %v3546_v49  ;;  %v1685_v43 = vadd.f32 %v1684_v56, %v1562_v53  ;;  %v1563_v14 = vmul.f32 %v2470_v12, %v3421_v34 }
 0x2bc   : > { %v2474_v48 = vpop.eup %2473  ;;  %v1572_v2 = vmul.f32 %v2472_v17, %v3425_v0 }
 0x2bd   : > { %v1749_v36 = vcombine.low %v1740_v9, %v1747_v55  ;;  %v1698_v44 = vadd.f32 %v1697_v4, %v1563_v14  ;;  %v1573_v22 = vmul.f32 %v2474_v48, %v3431_v10 }
 0x2be   : > { %v1686_v30 = vadd.f32 %v1685_v43, %v1572_v2 }
 0x2bf   : > { %v1763_v20 = vrot.slane %v1749_v36, %v3546_v49  ;;  %v1699_v25 = vadd.f32 %v1698_v44, %v1573_v22 }
 0x2c0   : > { %v1687_v11 = vrot.slane %v1686_v30, 4 }
 0x2c1   : > { %v1764_v42 = vcombine.low %v1756_v19, %v1763_v20  ;;  %v1700_v34 = vrot.slane %v1699_v25, 4 }
 0x2c2   : > { %v1688_v57 = vadd.f32 %v1687_v11, %v1686_v30 }
 0x2c3   : > { %v1701_v37 = vadd.f32 %v1700_v34, %v1699_v25  ;;  %v1795_v10 = vmul.f32 0.015625, %v1764_v42 }
 0x2c4   : > { %v1689_v0 = vrot.slane %v1688_v57, 2 }
 0x2c5   : > { %v1702_v60 = vrot.slane %v1701_v37, 2  ;;  %1797 = vst [vmem:[%s263_s15] sm:$0xff] %v1795_v10 }
 0x2c6   : > { %v1690_v6 = vadd.f32 %v1689_v0, %v1688_v57 }
 0x2c7   : > { %v1703_v59 = vadd.f32 %v1702_v60, %v1701_v37 }
 0x2c8   : > { %v1691_v29 = vrot.slane %v1690_v6, 1 }
 0x2c9   : > { %v1704_v38 = vrot.slane %v1703_v59, 1 }
 0x2ca   : > { %v1692_v46 = vadd.f32 %v1691_v29, %v1690_v6 }
 0x2cb   : > { %v1705_v51 = vadd.f32 %v1704_v38, %v1703_v59 }
 0x2cd   : > { %v1765_v52 = vcombine.low %v1692_v46, %v1705_v51 }
 0x2cf   : > { %v1772_v31 = vrot.slane %v1765_v52, %v3546_v49 }
 0x2d1   : > { %v1779_v8 = vrot.slane %v1772_v31, %v3546_v49 }
 0x2d3   : > { %v1783_v63 = vadd.f32 %v1779_v8, %v1575_v50 }
 0x2d5   : > { %1789 = vst.msk [vmem:[#allocation2 + $0x8] sm:$0x3] %vm3292_vm4, %v1783_v63 }
 0x2dc   : > { %v1794_v13 = vld [vmem:[#allocation2 + $0x8] sm:$0x3] }
 0x2dd   : > { %v1796_v23 = vmul.f32 0.015625, %v1794_v13 }
 0x2df   : > { %1798 = vst.msk [vmem:[%s263_s15 + $0x8] sm:$0x3] %vm3292_vm4, %v1796_v23 }
 0x2e0 PF: > { %s16_s20 = sadd.s32 1, %s2529_s20   ;;  %s3561_s18 = smov %s2525_s19 }
 0x2e1   : > { %p13_p3 = scmp.ge.s32.totalorder %s16_s20, 4   ;;  %s3562_s19 = smov %s3564_s22 }
 0x2e3   :  { %15 = sbr.rel (!%p13_p3) target bundleno = 2 (0x2), region = 83 }
 0x2ea   :  { %1818 = vsyncpa [#allocation4], 1 }
 0x2eb   :  { %1820 = vsyncpa [#allocation4 + $0x1], 1 }

// kernel: floornet_forward.3
= control target key start
LH: loop header
LB: loop body
LE: loop exit
PB: predicated region body
PF: predicated region fallthrough
CT: control target
= control target key end

     0   :  { %s4891_s1 = inlined_call_operand.vmem [shape: bf16[1280,512], index: 1, kind: input, shape index: {}]   ;;  %s4892_s0 = inlined_call_operand.vmem [shape: bf16[8,1280], index: 0, kind: input, shape index: {}]   ;;  %s4893_s3 = inlined_call_operand.vmem [shape: bf16[512,128], index: 3, kind: input, shape index: {}]   ;;  %s4894_s2 = inlined_call_operand.vmem [shape: f32[1,512], index: 2, kind: input, shape index: {}]   ;;  %s4895_s5 = inlined_call_operand.vmem [shape: f32[8,512], index: 5, kind: output, shape index: {0}]   ;;  %s4896_s4 = inlined_call_operand.vmem [shape: f32[1,128], index: 4, kind: input, shape index: {}]   ;;  %s4897_s6 = inlined_call_operand.vmem [shape: f32[8,128], index: 6, kind: output, shape index: {1}]  }
   0x1   :  { %v3218_v0 = vld [vmem:[%s4891_s1 + $0x4] ss:$16 sps:$4 sm:$0xff]   ;;  %v3220_v1 = vld [vmem:[%s4891_s1 + $0xc] ss:$16 sps:$4 sm:$0xff]   ;;  %v3222_v2 = vld [vmem:[%s4891_s1] ss:$16 sps:$4 sm:$0xff]  }
   0x2   :  { %2005 = vmatprep.subr.bf16.mxu0 %v3218_v0  ;;  %v3223_v3 = vld [vmem:[%s4891_s1 + $0x8] ss:$16 sps:$4 sm:$0xff]   ;;  %2210 = vmatprep.subr.bf16.mxu1 %v3220_v1  ;;  %v3224_v4 = vld [vmem:[%s4891_s1 + $0x24] ss:$16 sps:$4 sm:$0xff]   ;;  %v3226_v5 = vld [vmem:[%s4891_s1 + $0x2c] ss:$16 sps:$4 sm:$0xff]  }
   0x3   :  { %2006 = vmatpush1.bf16.msra.mxu0 %v3222_v2  ;;  %2211 = vmatpush1.bf16.msra.mxu1 %v3223_v3  ;;  %v3228_v6 = vld [vmem:[%s4891_s1 + $0x20] ss:$16 sps:$4 sm:$0xff]   ;;  %v3229_v7 = vld [vmem:[%s4891_s1 + $0x28] ss:$16 sps:$4 sm:$0xff]   ;;  %v3230_v8 = vld [vmem:[%s4891_s1 + $0x44] ss:$16 sps:$4 sm:$0xff]  }
   0x4   :  { %2007 = vmatprep.subr.bf16.mxu0 %v3224_v4  ;;  %2212 = vmatprep.subr.bf16.mxu1 %v3226_v5  ;;  %v3232_v9 = vld [vmem:[%s4891_s1 + $0x4c] ss:$16 sps:$4 sm:$0xff]   ;;  %v3234_v10 = vld [vmem:[%s4891_s1 + $0x40] ss:$16 sps:$4 sm:$0xff]   ;;  %v3235_v11 = vld [vmem:[%s4891_s1 + $0x48] ss:$16 sps:$4 sm:$0xff]  }
   0x5   :  { %v3236_v12 = vld [vmem:[%s4891_s1 + $0x64] ss:$16 sps:$4 sm:$0xff]   ;;  %v3238_v13 = vld [vmem:[%s4891_s1 + $0x6c] ss:$16 sps:$4 sm:$0xff]   ;;  %v3240_v14 = vld [vmem:[%s4891_s1 + $0x60] ss:$16 sps:$4 sm:$0xff]  }
   0x6   :  { %v3241_v15 = vld [vmem:[%s4891_s1 + $0x68] ss:$16 sps:$4 sm:$0xff]   ;;  %v3242_v16 = vld [vmem:[%s4891_s1 + $0x84] ss:$16 sps:$4 sm:$0xff]   ;;  %v3244_v17 = vld [vmem:[%s4891_s1 + $0x8c] ss:$16 sps:$4 sm:$0xff]  }
   0x7   :  { %2008 = vmatpush1.bf16.msra.mxu0 %v3228_v6  ;;  %2213 = vmatpush1.bf16.msra.mxu1 %v3229_v7  ;;  %v3246_v18 = vld [vmem:[%s4891_s1 + $0x80] ss:$16 sps:$4 sm:$0xff]   ;;  %v3247_v19 = vld [vmem:[%s4891_s1 + $0x88] ss:$16 sps:$4 sm:$0xff]   ;;  %v3248_v20 = vld [vmem:[%s4891_s1 + $0xa4] ss:$16 sps:$4 sm:$0xff]  }
   0x8   :  { %2009 = vmatprep.subr.bf16.mxu0 %v3230_v8  ;;  %2214 = vmatprep.subr.bf16.mxu1 %v3232_v9  ;;  %v3250_v21 = vld [vmem:[%s4891_s1 + $0xac] ss:$16 sps:$4 sm:$0xff]   ;;  %v3252_v22 = vld [vmem:[%s4891_s1 + $0xa0] ss:$16 sps:$4 sm:$0xff]   ;;  %v3253_v23 = vld [vmem:[%s4891_s1 + $0xa8] ss:$16 sps:$4 sm:$0xff]  }
   0x9   :  { %v3254_v24 = vld [vmem:[%s4891_s1 + $0xc4] ss:$16 sps:$4 sm:$0xff]   ;;  %v3256_v25 = vld [vmem:[%s4891_s1 + $0xcc] ss:$16 sps:$4 sm:$0xff]   ;;  %v3258_v26 = vld [vmem:[%s4891_s1 + $0xc0] ss:$16 sps:$4 sm:$0xff]  }
   0xa   :  { %v3259_v27 = vld [vmem:[%s4891_s1 + $0xc8] ss:$16 sps:$4 sm:$0xff]   ;;  %v3260_v28 = vld [vmem:[%s4891_s1 + $0xe4] ss:$16 sps:$4 sm:$0xff]   ;;  %v3262_v29 = vld [vmem:[%s4891_s1 + $0xec] ss:$16 sps:$4 sm:$0xff]  }
   0xb   :  { %2010 = vmatpush1.bf16.msra.mxu0 %v3234_v10  ;;  %2215 = vmatpush1.bf16.msra.mxu1 %v3235_v11  ;;  %v3264_v30 = vld [vmem:[%s4891_s1 + $0xe0] ss:$16 sps:$4 sm:$0xff]   ;;  %v3265_v31 = vld [vmem:[%s4891_s1 + $0xe8] ss:$16 sps:$4 sm:$0xff]   ;;  %v3266_v32 = vld [vmem:[%s4891_s1 + $0x104] ss:$16 sps:$4 sm:$0xff]  }
   0xc   :  { %2011 = vmatprep.subr.bf16.mxu0 %v3236_v12  ;;  %2216 = vmatprep.subr.bf16.mxu1 %v3238_v13  ;;  %v3268_v33 = vld [vmem:[%s4891_s1 + $0x10c] ss:$16 sps:$4 sm:$0xff]   ;;  %v3270_v34 = vld [vmem:[%s4891_s1 + $0x100] ss:$16 sps:$4 sm:$0xff]   ;;  %v3271_v35 = vld [vmem:[%s4891_s1 + $0x108] ss:$16 sps:$4 sm:$0xff]  }
   0xd   :  { %v3272_v36 = vld [vmem:[%s4891_s1 + $0x124] ss:$16 sps:$4 sm:$0xff]   ;;  %v3274_v37 = vld [vmem:[%s4891_s1 + $0x12c] ss:$16 sps:$4 sm:$0xff]   ;;  %v3276_v38 = vld [vmem:[%s4891_s1 + $0x120] ss:$16 sps:$4 sm:$0xff]  }
   0xe   :  { %v3277_v39 = vld [vmem:[%s4891_s1 + $0x128] ss:$16 sps:$4 sm:$0xff]   ;;  %v3278_v40 = vld [vmem:[%s4891_s1 + $0x144] ss:$16 sps:$4 sm:$0xff]   ;;  %v3280_v41 = vld [vmem:[%s4891_s1 + $0x14c] ss:$16 sps:$4 sm:$0xff]  }
   0xf   :  { %2012 = vmatpush1.bf16.msra.mxu0 %v3240_v14  ;;  %2217 = vmatpush1.bf16.msra.mxu1 %v3241_v15  ;;  %v3282_v42 = vld [vmem:[%s4891_s1 + $0x140] ss:$16 sps:$4 sm:$0xff]   ;;  %v3283_v43 = vld [vmem:[%s4891_s1 + $0x148] ss:$16 sps:$4 sm:$0xff]   ;;  %v3284_v44 = vld [vmem:[%s4891_s1 + $0x164] ss:$16 sps:$4 sm:$0xff]  }
  0x10   :  { %2013 = vmatprep.subr.bf16.mxu0 %v3242_v16  ;;  %2218 = vmatprep.subr.bf16.mxu1 %v3244_v17  ;;  %v3286_v45 = vld [vmem:[%s4891_s1 + $0x16c] ss:$16 sps:$4 sm:$0xff]   ;;  %v23_v46 = vld [vmem:[%s4892_s0] sm:$0xff]  ;;  %v3289_v49 = vld [vmem:[%s4891_s1 + $0x168] ss:$16 sps:$4 sm:$0xff]  }
  0x11   :  { %v3288_v47 = vld [vmem:[%s4891_s1 + $0x160] ss:$16 sps:$4 sm:$0xff]   ;;  %v2776_v48 = vcombine.high %v23_v46, %v23_v46  ;;  %v3290_v50 = vld [vmem:[%s4891_s1 + $0x184] ss:$16 sps:$4 sm:$0xff]   ;;  %v3292_v51 = vld [vmem:[%s4891_s1 + $0x18c] ss:$16 sps:$4 sm:$0xff]   ;;  %v2775_v4 = vcombine.low %v23_v46, %v23_v46 }
  0x12   :  { %v3294_v52 = vld [vmem:[%s4891_s1 + $0x180] ss:$16 sps:$4 sm:$0xff]   ;;  %v3295_v53 = vld [vmem:[%s4891_s1 + $0x188] ss:$16 sps:$4 sm:$0xff]   ;;  %v3296_v54 = vld [vmem:[%s4891_s1 + $0x1a4] ss:$16 sps:$4 sm:$0xff]  }
  0x13   :  { %2014 = vmatpush1.bf16.msra.mxu0 %v3246_v18  ;;  %2219 = vmatpush1.bf16.msra.mxu1 %v3247_v19  ;;  %v3298_v55 = vld [vmem:[%s4891_s1 + $0x1ac] ss:$16 sps:$4 sm:$0xff]   ;;  %v3300_v56 = vld [vmem:[%s4891_s1 + $0x1a0] ss:$16 sps:$4 sm:$0xff]   ;;  %v3301_v57 = vld [vmem:[%s4891_s1 + $0x1a8] ss:$16 sps:$4 sm:$0xff]  }
  0x14   :  { %2015 = vmatprep.subr.bf16.mxu0 %v3248_v20  ;;  %2220 = vmatprep.subr.bf16.mxu1 %v3250_v21  ;;  %v3302_v58 = vld [vmem:[%s4891_s1 + $0x1c4] ss:$16 sps:$4 sm:$0xff]   ;;  %v3304_v59 = vld [vmem:[%s4891_s1 + $0x1cc] ss:$16 sps:$4 sm:$0xff]   ;;  %v3306_v60 = vld [vmem:[%s4891_s1 + $0x1c0] ss:$16 sps:$4 sm:$0xff]  }
  0x15   :  { %2037 = vmatprep.mubr.bf16.mxu0 %v2776_v48  ;;  %2242 = vmatprep.mubr.bf16.mxu1 %v2776_v48  ;;  %v3307_v61 = vld [vmem:[%s4891_s1 + $0x1c8] ss:$16 sps:$4 sm:$0xff]   ;;  %v3308_v62 = vld [vmem:[%s4891_s1 + $0x1e4] ss:$16 sps:$4 sm:$0xff]   ;;  %v3310_v63 = vld [vmem:[%s4891_s1 + $0x1ec] ss:$16 sps:$4 sm:$0xff]  }
  0x16   :  { %v3312_v0 = vld [vmem:[%s4891_s1 + $0x1e0] ss:$16 sps:$4 sm:$0xff]   ;;  %v3313_v1 = vld [vmem:[%s4891_s1 + $0x1e8] ss:$16 sps:$4 sm:$0xff]   ;;  %v3318_v2 = vld [vmem:[%s4891_s1 + $0x204] ss:$16 sps:$4 sm:$0xff]  }
  0x17   :  { %2016 = vmatpush1.bf16.msra.mxu0 %v3252_v22  ;;  %2221 = vmatpush1.bf16.msra.mxu1 %v3253_v23  ;;  %v3321_v3 = vld [vmem:[%s4891_s1 + $0x20c] ss:$16 sps:$4 sm:$0xff]   ;;  %v3316_v5 = vld [vmem:[%s4891_s1 + $0x200] ss:$16 sps:$4 sm:$0xff]   ;;  %v3319_v6 = vld [vmem:[%s4891_s1 + $0x208] ss:$16 sps:$4 sm:$0xff]  }
  0x18   :  { %2017 = vmatprep.subr.bf16.mxu0 %v3254_v24  ;;  %2222 = vmatprep.subr.bf16.mxu1 %v3256_v25  ;;  %v3324_v7 = vld [vmem:[%s4891_s1 + $0x224] ss:$16 sps:$4 sm:$0xff]   ;;  %v3327_v8 = vld [vmem:[%s4891_s1 + $0x22c] ss:$16 sps:$4 sm:$0xff]   ;;  %v3322_v9 = vld [vmem:[%s4891_s1 + $0x220] ss:$16 sps:$4 sm:$0xff]  }
  0x19   :  { %v3325_v10 = vld [vmem:[%s4891_s1 + $0x228] ss:$16 sps:$4 sm:$0xff]   ;;  %v3330_v11 = vld [vmem:[%s4891_s1 + $0x244] ss:$16 sps:$4 sm:$0xff]   ;;  %v3333_v12 = vld [vmem:[%s4891_s1 + $0x24c] ss:$16 sps:$4 sm:$0xff]  }
  0x1a   :  { %v3328_v13 = vld [vmem:[%s4891_s1 + $0x240] ss:$16 sps:$4 sm:$0xff]   ;;  %v3331_v14 = vld [vmem:[%s4891_s1 + $0x248] ss:$16 sps:$4 sm:$0xff]   ;;  %v3336_v15 = vld [vmem:[%s4891_s1 + $0x264] ss:$16 sps:$4 sm:$0xff]  }
  0x1b   :  { %2018 = vmatpush1.bf16.msra.mxu0 %v3258_v26  ;;  %2223 = vmatpush1.bf16.msra.mxu1 %v3259_v27  ;;  %v3339_v16 = vld [vmem:[%s4891_s1 + $0x26c] ss:$16 sps:$4 sm:$0xff]   ;;  %v3334_v17 = vld [vmem:[%s4891_s1 + $0x260] ss:$16 sps:$4 sm:$0xff]   ;;  %v3337_v18 = vld [vmem:[%s4891_s1 + $0x268] ss:$16 sps:$4 sm:$0xff]  }
  0x1c   :  { %2019 = vmatprep.subr.bf16.mxu0 %v3260_v28  ;;  %2224 = vmatprep.subr.bf16.mxu1 %v3262_v29  ;;  %v3342_v19 = vld [vmem:[%s4891_s1 + $0x284] ss:$16 sps:$4 sm:$0xff]   ;;  %v3345_v20 = vld [vmem:[%s4891_s1 + $0x28c] ss:$16 sps:$4 sm:$0xff]   ;;  %v3340_v21 = vld [vmem:[%s4891_s1 + $0x280] ss:$16 sps:$4 sm:$0xff]  }
  0x1d   :  { %v3343_v22 = vld [vmem:[%s4891_s1 + $0x288] ss:$16 sps:$4 sm:$0xff]   ;;  %v3348_v23 = vld [vmem:[%s4891_s1 + $0x2a4] ss:$16 sps:$4 sm:$0xff]   ;;  %v3351_v24 = vld [vmem:[%s4891_s1 + $0x2ac] ss:$16 sps:$4 sm:$0xff]  }
  0x1e   :  { %v3346_v25 = vld [vmem:[%s4891_s1 + $0x2a0] ss:$16 sps:$4 sm:$0xff]   ;;  %v3349_v26 = vld [vmem:[%s4891_s1 + $0x2a8] ss:$16 sps:$4 sm:$0xff]   ;;  %v3354_v27 = vld [vmem:[%s4891_s1 + $0x2c4] ss:$16 sps:$4 sm:$0xff]  }
  0x1f   :  { %2020 = vmatpush1.bf16.msra.mxu0 %v3264_v30  ;;  %2225 = vmatpush1.bf16.msra.mxu1 %v3265_v31  ;;  %v3357_v28 = vld [vmem:[%s4891_s1 + $0x2cc] ss:$16 sps:$4 sm:$0xff]   ;;  %v3352_v31 = vld [vmem:[%s4891_s1 + $0x2c0] ss:$16 sps:$4 sm:$0xff]   ;;  %v3379_v48 = vld [vmem:[%s4891_s1 + $0x348] ss:$16 sps:$4 sm:$0xff]  }
  0x20   :  { %2021 = vmatprep.subr.bf16.mxu0 %v3266_v32  ;;  %2226 = vmatprep.subr.bf16.mxu1 %v3268_v33  ;;  %v4051_v29 = vld [vmem:[%s4892_s0 + $0x8] sm:$0xff]  ;;  %v3360_v33 = vld [vmem:[%s4891_s1 + $0x2e4] ss:$16 sps:$4 sm:$0xff]  }
  0x21   :  { %v2778_v30 = vcombine.high %v4051_v29, %v4051_v29  ;;  %v3355_v32 = vld [vmem:[%s4891_s1 + $0x2c8] ss:$16 sps:$4 sm:$0xff]   ;;  %v3381_v46 = vld [vmem:[%s4891_s1 + $0x34c] ss:$16 sps:$4 sm:$0xff]  }
  0x23   :  { %2022 = vmatpush1.bf16.msra.mxu0 %v3270_v34  ;;  %2227 = vmatpush1.bf16.msra.mxu1 %v3271_v35  ;;  %v3363_v34 = vld [vmem:[%s4891_s1 + $0x2ec] ss:$16 sps:$4 sm:$0xff]   ;;  %v3358_v35 = vld [vmem:[%s4891_s1 + $0x2e0] ss:$16 sps:$4 sm:$0xff]  }
  0x24   :  { %2023 = vmatprep.subr.bf16.mxu0 %v3272_v36  ;;  %2228 = vmatprep.subr.bf16.mxu1 %v3274_v37  ;;  %v3361_v36 = vld [vmem:[%s4891_s1 + $0x2e8] ss:$16 sps:$4 sm:$0xff]   ;;  %v3366_v37 = vld [vmem:[%s4891_s1 + $0x304] ss:$16 sps:$4 sm:$0xff]  }
  0x27   :  { %2024 = vmatpush1.bf16.msra.mxu0 %v3276_v38  ;;  %2229 = vmatpush1.bf16.msra.mxu1 %v3277_v39  ;;  %v3369_v38 = vld [vmem:[%s4891_s1 + $0x30c] ss:$16 sps:$4 sm:$0xff]   ;;  %v3364_v39 = vld [vmem:[%s4891_s1 + $0x300] ss:$16 sps:$4 sm:$0xff]  }
  0x28   :  { %2025 = vmatprep.subr.bf16.mxu0 %v3278_v40  ;;  %2230 = vmatprep.subr.bf16.mxu1 %v3280_v41  ;;  %v3367_v40 = vld [vmem:[%s4891_s1 + $0x308] ss:$16 sps:$4 sm:$0xff]   ;;  %v3372_v41 = vld [vmem:[%s4891_s1 + $0x324] ss:$16 sps:$4 sm:$0xff]  }
  0x2b   :  { %2026 = vmatpush1.bf16.msra.mxu0 %v3282_v42  ;;  %2231 = vmatpush1.bf16.msra.mxu1 %v3283_v43  ;;  %v3375_v42 = vld [vmem:[%s4891_s1 + $0x32c] ss:$16 sps:$4 sm:$0xff]   ;;  %v3370_v43 = vld [vmem:[%s4891_s1 + $0x320] ss:$16 sps:$4 sm:$0xff]  }
  0x2c   :  { %2027 = vmatprep.subr.bf16.mxu0 %v3284_v44  ;;  %2232 = vmatprep.subr.bf16.mxu1 %v3286_v45  ;;  %v3373_v44 = vld [vmem:[%s4891_s1 + $0x328] ss:$16 sps:$4 sm:$0xff]   ;;  %v3378_v45 = vld [vmem:[%s4891_s1 + $0x344] ss:$16 sps:$4 sm:$0xff]  }
  0x2f   :  { %2028 = vmatpush1.bf16.msra.mxu0 %v3288_v47  ;;  %2233 = vmatpush1.bf16.msra.mxu1 %v3289_v49  ;;  %v3376_v47 = vld [vmem:[%s4891_s1 + $0x340] ss:$16 sps:$4 sm:$0xff]   ;;  %v3384_v49 = vld [vmem:[%s4891_s1 + $0x364] ss:$16 sps:$4 sm:$0xff]  }
  0x30   :  { %2029 = vmatprep.subr.bf16.mxu0 %v3290_v50  ;;  %2234 = vmatprep.subr.bf16.mxu1 %v3292_v51  ;;  %v3387_v50 = vld [vmem:[%s4891_s1 + $0x36c] ss:$16 sps:$4 sm:$0xff]   ;;  %v3382_v51 = vld [vmem:[%s4891_s1 + $0x360] ss:$16 sps:$4 sm:$0xff]  }
  0x33   :  { %2030 = vmatpush1.bf16.msra.mxu0 %v3294_v52  ;;  %2235 = vmatpush1.bf16.msra.mxu1 %v3295_v53  ;;  %v3385_v52 = vld [vmem:[%s4891_s1 + $0x368] ss:$16 sps:$4 sm:$0xff]   ;;  %v3390_v53 = vld [vmem:[%s4891_s1 + $0x384] ss:$16 sps:$4 sm:$0xff]  }
  0x34   :  { %2031 = vmatprep.subr.bf16.mxu0 %v3296_v54  ;;  %2236 = vmatprep.subr.bf16.mxu1 %v3298_v55  ;;  %v3393_v54 = vld [vmem:[%s4891_s1 + $0x38c] ss:$16 sps:$4 sm:$0xff]   ;;  %v3388_v55 = vld [vmem:[%s4891_s1 + $0x380] ss:$16 sps:$4 sm:$0xff]  }
  0x37   :  { %2032 = vmatpush1.bf16.msra.mxu0 %v3300_v56  ;;  %2237 = vmatpush1.bf16.msra.mxu1 %v3301_v57  ;;  %v3391_v56 = vld [vmem:[%s4891_s1 + $0x388] ss:$16 sps:$4 sm:$0xff]   ;;  %v3396_v57 = vld [vmem:[%s4891_s1 + $0x3a4] ss:$16 sps:$4 sm:$0xff]  }
  0x38   :  { %2033 = vmatprep.subr.bf16.mxu0 %v3302_v58  ;;  %2238 = vmatprep.subr.bf16.mxu1 %v3304_v59  ;;  %v3399_v58 = vld [vmem:[%s4891_s1 + $0x3ac] ss:$16 sps:$4 sm:$0xff]   ;;  %v3394_v59 = vld [vmem:[%s4891_s1 + $0x3a0] ss:$16 sps:$4 sm:$0xff]  }
  0x3b   :  { %2034 = vmatpush1.bf16.msra.mxu0 %v3306_v60  ;;  %2239 = vmatpush1.bf16.msra.mxu1 %v3307_v61  ;;  %v3397_v60 = vld [vmem:[%s4891_s1 + $0x3a8] ss:$16 sps:$4 sm:$0xff]   ;;  %v3402_v61 = vld [vmem:[%s4891_s1 + $0x3c4] ss:$16 sps:$4 sm:$0xff]  }
  0x3c   :  { %2035 = vmatprep.subr.bf16.mxu0 %v3308_v62  ;;  %2240 = vmatprep.subr.bf16.mxu1 %v3310_v63  ;;  %v3405_v62 = vld [vmem:[%s4891_s1 + $0x3cc] ss:$16 sps:$4 sm:$0xff]   ;;  %v3400_v63 = vld [vmem:[%s4891_s1 + $0x3c0] ss:$16 sps:$4 sm:$0xff]  }
  0x3f   :  { %2036 = vmatpush1.bf16.msra.mxu0 %v3312_v0  ;;  %2241 = vmatpush1.bf16.msra.mxu1 %v3313_v1  ;;  %v3403_v0 = vld [vmem:[%s4891_s1 + $0x3c8] ss:$16 sps:$4 sm:$0xff]   ;;  %v3408_v1 = vld [vmem:[%s4891_s1 + $0x3e4] ss:$16 sps:$4 sm:$0xff]  }
  0x40   :  { %2046 = vmatprep.subr.bf16.mxu0 %v3318_v2  ;;  %2251 = vmatprep.subr.bf16.mxu1 %v3321_v3  ;;  %v3411_v2 = vld [vmem:[%s4891_s1 + $0x3ec] ss:$16 sps:$4 sm:$0xff]   ;;  %v3406_v3 = vld [vmem:[%s4891_s1 + $0x3e0] ss:$16 sps:$4 sm:$0xff]  }
  0x42   :  { %2038 = vmatmul.mubr.bf16.vlgmr.msra.gmra.mrb[0].mxu0 %v2775_v4  ;;  %2243 = vmatmul.mubr.bf16.vlgmr.msra.gmra.mrb[0].mxu1 %v2775_v4  ;;  %v3409_v4 = vld [vmem:[%s4891_s1 + $0x3e8] ss:$16 sps:$4 sm:$0xff]  }
  0x43   :  { %2047 = vmatpush1.bf16.msra.mxu0 %v3316_v5  ;;  %2252 = vmatpush1.bf16.msra.mxu1 %v3319_v6  ;;  %v3416_v5 = vld [vmem:[%s4891_s1 + $0x404] ss:$16 sps:$4 sm:$0xff]   ;;  %v3419_v6 = vld [vmem:[%s4891_s1 + $0x40c] ss:$16 sps:$4 sm:$0xff]  }
  0x44   :  { %2048 = vmatprep.subr.bf16.mxu0 %v3324_v7  ;;  %2253 = vmatprep.subr.bf16.mxu1 %v3327_v8  ;;  %v2777_v7 = vcombine.low %v4051_v29, %v4051_v29  ;;  %v3414_v8 = vld [vmem:[%s4891_s1 + $0x400] ss:$16 sps:$4 sm:$0xff]   ;;  %v3449_v29 = vld [vmem:[%s4891_s1 + $0x4ac] ss:$16 sps:$4 sm:$0xff]  }
  0x45   :  { %2078 = vmatprep.mubr.bf16.mxu0 %v2778_v30  ;;  %2283 = vmatprep.mubr.bf16.mxu1 %v2778_v30  ;;  %v3444_v30 = vld [vmem:[%s4891_s1 + $0x4a0] ss:$16 sps:$4 sm:$0xff]  }
  0x47   :  { %2049 = vmatpush1.bf16.msra.mxu0 %v3322_v9  ;;  %2254 = vmatpush1.bf16.msra.mxu1 %v3325_v10  ;;  %v3417_v9 = vld [vmem:[%s4891_s1 + $0x408] ss:$16 sps:$4 sm:$0xff]   ;;  %v3422_v10 = vld [vmem:[%s4891_s1 + $0x424] ss:$16 sps:$4 sm:$0xff]  }
  0x48   :  { %2050 = vmatprep.subr.bf16.mxu0 %v3330_v11  ;;  %2255 = vmatprep.subr.bf16.mxu1 %v3333_v12  ;;  %v4189_v11 = vld [vmem:[%s4892_s0 + $0x10] sm:$0xff]  ;;  %v3425_v12 = vld [vmem:[%s4891_s1 + $0x42c] ss:$16 sps:$4 sm:$0xff]  }
  0x4b   :  { %2051 = vmatpush1.bf16.msra.mxu0 %v3328_v13  ;;  %2256 = vmatpush1.bf16.msra.mxu1 %v3331_v14  ;;  %v2780_v13 = vcombine.high %v4189_v11, %v4189_v11  ;;  %v3420_v14 = vld [vmem:[%s4891_s1 + $0x420] ss:$16 sps:$4 sm:$0xff]  }
  0x4c   :  { %2052 = vmatprep.subr.bf16.mxu0 %v3336_v15  ;;  %2257 = vmatprep.subr.bf16.mxu1 %v3339_v16  ;;  %v3423_v15 = vld [vmem:[%s4891_s1 + $0x428] ss:$16 sps:$4 sm:$0xff]   ;;  %v3428_v16 = vld [vmem:[%s4891_s1 + $0x444] ss:$16 sps:$4 sm:$0xff]  }
  0x4f   :  { %2053 = vmatpush1.bf16.msra.mxu0 %v3334_v17  ;;  %2258 = vmatpush1.bf16.msra.mxu1 %v3337_v18  ;;  %v3431_v17 = vld [vmem:[%s4891_s1 + $0x44c] ss:$16 sps:$4 sm:$0xff]   ;;  %v3426_v18 = vld [vmem:[%s4891_s1 + $0x440] ss:$16 sps:$4 sm:$0xff]  }
  0x50   :  { %2054 = vmatprep.subr.bf16.mxu0 %v3342_v19  ;;  %2259 = vmatprep.subr.bf16.mxu1 %v3345_v20  ;;  %v3429_v19 = vld [vmem:[%s4891_s1 + $0x448] ss:$16 sps:$4 sm:$0xff]   ;;  %v3434_v20 = vld [vmem:[%s4891_s1 + $0x464] ss:$16 sps:$4 sm:$0xff]  }
  0x53   :  { %2055 = vmatpush1.bf16.msra.mxu0 %v3340_v21  ;;  %2260 = vmatpush1.bf16.msra.mxu1 %v3343_v22  ;;  %v3437_v21 = vld [vmem:[%s4891_s1 + $0x46c] ss:$16 sps:$4 sm:$0xff]   ;;  %v3432_v22 = vld [vmem:[%s4891_s1 + $0x460] ss:$16 sps:$4 sm:$0xff]  }
  0x54   :  { %2056 = vmatprep.subr.bf16.mxu0 %v3348_v23  ;;  %2261 = vmatprep.subr.bf16.mxu1 %v3351_v24  ;;  %v3435_v23 = vld [vmem:[%s4891_s1 + $0x468] ss:$16 sps:$4 sm:$0xff]   ;;  %v3440_v24 = vld [vmem:[%s4891_s1 + $0x484] ss:$16 sps:$4 sm:$0xff]  }
  0x57   :  { %2057 = vmatpush1.bf16.msra.mxu0 %v3346_v25  ;;  %2262 = vmatpush1.bf16.msra.mxu1 %v3349_v26  ;;  %v3443_v25 = vld [vmem:[%s4891_s1 + $0x48c] ss:$16 sps:$4 sm:$0xff]   ;;  %v3438_v26 = vld [vmem:[%s4891_s1 + $0x480] ss:$16 sps:$4 sm:$0xff]  }
  0x58   :  { %2058 = vmatprep.subr.bf16.mxu0 %v3354_v27  ;;  %2263 = vmatprep.subr.bf16.mxu1 %v3357_v28  ;;  %v3441_v27 = vld [vmem:[%s4891_s1 + $0x488] ss:$16 sps:$4 sm:$0xff]   ;;  %v3446_v28 = vld [vmem:[%s4891_s1 + $0x4a4] ss:$16 sps:$4 sm:$0xff]  }
  0x5b   :  { %2059 = vmatpush1.bf16.msra.mxu0 %v3352_v31  ;;  %2264 = vmatpush1.bf16.msra.mxu1 %v3355_v32  ;;  %v3447_v31 = vld [vmem:[%s4891_s1 + $0x4a8] ss:$16 sps:$4 sm:$0xff]   ;;  %v3452_v32 = vld [vmem:[%s4891_s1 + $0x4c4] ss:$16 sps:$4 sm:$0xff]  }
  0x5c   :  { %2060 = vmatprep.subr.bf16.mxu0 %v3360_v33  ;;  %2265 = vmatprep.subr.bf16.mxu1 %v3363_v34  ;;  %v3455_v33 = vld [vmem:[%s4891_s1 + $0x4cc] ss:$16 sps:$4 sm:$0xff]   ;;  %v3450_v34 = vld [vmem:[%s4891_s1 + $0x4c0] ss:$16 sps:$4 sm:$0xff]  }
  0x5f   :  { %2061 = vmatpush1.bf16.msra.mxu0 %v3358_v35  ;;  %2266 = vmatpush1.bf16.msra.mxu1 %v3361_v36  ;;  %v3453_v35 = vld [vmem:[%s4891_s1 + $0x4c8] ss:$16 sps:$4 sm:$0xff]   ;;  %v3458_v36 = vld [vmem:[%s4891_s1 + $0x4e4] ss:$16 sps:$4 sm:$0xff]  }
  0x60   :  { %2062 = vmatprep.subr.bf16.mxu0 %v3366_v37  ;;  %2267 = vmatprep.subr.bf16.mxu1 %v3369_v38  ;;  %v3461_v37 = vld [vmem:[%s4891_s1 + $0x4ec] ss:$16 sps:$4 sm:$0xff]   ;;  %v3456_v38 = vld [vmem:[%s4891_s1 + $0x4e0] ss:$16 sps:$4 sm:$0xff]  }
  0x63   :  { %2063 = vmatpush1.bf16.msra.mxu0 %v3364_v39  ;;  %2268 = vmatpush1.bf16.msra.mxu1 %v3367_v40  ;;  %v3459_v39 = vld [vmem:[%s4891_s1 + $0x4e8] ss:$16 sps:$4 sm:$0xff]   ;;  %v3464_v40 = vld [vmem:[%s4891_s1 + $0x504] ss:$16 sps:$4 sm:$0xff]  }
  0x64   :  { %2064 = vmatprep.subr.bf16.mxu0 %v3372_v41  ;;  %2269 = vmatprep.subr.bf16.mxu1 %v3375_v42  ;;  %v3467_v41 = vld [vmem:[%s4891_s1 + $0x50c] ss:$16 sps:$4 sm:$0xff]   ;;  %v3462_v42 = vld [vmem:[%s4891_s1 + $0x500] ss:$16 sps:$4 sm:$0xff]  }
  0x67   :  { %2065 = vmatpush1.bf16.msra.mxu0 %v3370_v43  ;;  %2270 = vmatpush1.bf16.msra.mxu1 %v3373_v44  ;;  %v3465_v43 = vld [vmem:[%s4891_s1 + $0x508] ss:$16 sps:$4 sm:$0xff]   ;;  %v3470_v44 = vld [vmem:[%s4891_s1 + $0x524] ss:$16 sps:$4 sm:$0xff]  }
  0x68   :  { %2066 = vmatprep.subr.bf16.mxu0 %v3378_v45  ;;  %2271 = vmatprep.subr.bf16.mxu1 %v3381_v46  ;;  %v3473_v45 = vld [vmem:[%s4891_s1 + $0x52c] ss:$16 sps:$4 sm:$0xff]   ;;  %v3468_v46 = vld [vmem:[%s4891_s1 + $0x520] ss:$16 sps:$4 sm:$0xff]  }
  0x6b   :  { %2067 = vmatpush1.bf16.msra.mxu0 %v3376_v47  ;;  %2272 = vmatpush1.bf16.msra.mxu1 %v3379_v48  ;;  %v3471_v47 = vld [vmem:[%s4891_s1 + $0x528] ss:$16 sps:$4 sm:$0xff]   ;;  %v3476_v48 = vld [vmem:[%s4891_s1 + $0x544] ss:$16 sps:$4 sm:$0xff]  }
  0x6c   :  { %2068 = vmatprep.subr.bf16.mxu0 %v3384_v49  ;;  %2273 = vmatprep.subr.bf16.mxu1 %v3387_v50  ;;  %v3479_v49 = vld [vmem:[%s4891_s1 + $0x54c] ss:$16 sps:$4 sm:$0xff]   ;;  %v3474_v50 = vld [vmem:[%s4891_s1 + $0x540] ss:$16 sps:$4 sm:$0xff]  }
  0x6f   :  { %2069 = vmatpush1.bf16.msra.mxu0 %v3382_v51  ;;  %2274 = vmatpush1.bf16.msra.mxu1 %v3385_v52  ;;  %v3477_v51 = vld [vmem:[%s4891_s1 + $0x548] ss:$16 sps:$4 sm:$0xff]   ;;  %v3482_v52 = vld [vmem:[%s4891_s1 + $0x564] ss:$16 sps:$4 sm:$0xff]  }
  0x70   :  { %2070 = vmatprep.subr.bf16.mxu0 %v3390_v53  ;;  %2275 = vmatprep.subr.bf16.mxu1 %v3393_v54  ;;  %v3485_v53 = vld [vmem:[%s4891_s1 + $0x56c] ss:$16 sps:$4 sm:$0xff]   ;;  %v3480_v54 = vld [vmem:[%s4891_s1 + $0x560] ss:$16 sps:$4 sm:$0xff]  }
  0x73   :  { %2071 = vmatpush1.bf16.msra.mxu0 %v3388_v55  ;;  %2276 = vmatpush1.bf16.msra.mxu1 %v3391_v56  ;;  %v3483_v55 = vld [vmem:[%s4891_s1 + $0x568] ss:$16 sps:$4 sm:$0xff]   ;;  %v3488_v56 = vld [vmem:[%s4891_s1 + $0x584] ss:$16 sps:$4 sm:$0xff]  }
  0x74   :  { %2072 = vmatprep.subr.bf16.mxu0 %v3396_v57  ;;  %2277 = vmatprep.subr.bf16.mxu1 %v3399_v58  ;;  %v3491_v57 = vld [vmem:[%s4891_s1 + $0x58c] ss:$16 sps:$4 sm:$0xff]   ;;  %v3486_v58 = vld [vmem:[%s4891_s1 + $0x580] ss:$16 sps:$4 sm:$0xff]  }
  0x77   :  { %2073 = vmatpush1.bf16.msra.mxu0 %v3394_v59  ;;  %2278 = vmatpush1.bf16.msra.mxu1 %v3397_v60  ;;  %v3489_v59 = vld [vmem:[%s4891_s1 + $0x588] ss:$16 sps:$4 sm:$0xff]   ;;  %v3494_v60 = vld [vmem:[%s4891_s1 + $0x5a4] ss:$16 sps:$4 sm:$0xff]  }
  0x78   :  { %2074 = vmatprep.subr.bf16.mxu0 %v3402_v61  ;;  %2279 = vmatprep.subr.bf16.mxu1 %v3405_v62  ;;  %v3497_v61 = vld [vmem:[%s4891_s1 + $0x5ac] ss:$16 sps:$4 sm:$0xff]   ;;  %v3492_v62 = vld [vmem:[%s4891_s1 + $0x5a0] ss:$16 sps:$4 sm:$0xff]  }
  0x7b   :  { %2075 = vmatpush1.bf16.msra.mxu0 %v3400_v63  ;;  %2280 = vmatpush1.bf16.msra.mxu1 %v3403_v0  ;;  %v3495_v63 = vld [vmem:[%s4891_s1 + $0x5a8] ss:$16 sps:$4 sm:$0xff]   ;;  %v3500_v0 = vld [vmem:[%s4891_s1 + $0x5c4] ss:$16 sps:$4 sm:$0xff]  }
  0x7c   :  { %2076 = vmatprep.subr.bf16.mxu0 %v3408_v1  ;;  %2281 = vmatprep.subr.bf16.mxu1 %v3411_v2  ;;  %v3503_v1 = vld [vmem:[%s4891_s1 + $0x5cc] ss:$16 sps:$4 sm:$0xff]   ;;  %v3498_v2 = vld [vmem:[%s4891_s1 + $0x5c0] ss:$16 sps:$4 sm:$0xff]  }
  0x7f   :  { %2077 = vmatpush1.bf16.msra.mxu0 %v3406_v3  ;;  %2282 = vmatpush1.bf16.msra.mxu1 %v3409_v4  ;;  %v3501_v3 = vld [vmem:[%s4891_s1 + $0x5c8] ss:$16 sps:$4 sm:$0xff]   ;;  %v3506_v4 = vld [vmem:[%s4891_s1 + $0x5e4] ss:$16 sps:$4 sm:$0xff]  }
  0x80   :  { %2087 = vmatprep.subr.bf16.mxu0 %v3416_v5  ;;  %2292 = vmatprep.subr.bf16.mxu1 %v3419_v6  ;;  %v3509_v5 = vld [vmem:[%s4891_s1 + $0x5ec] ss:$16 sps:$4 sm:$0xff]   ;;  %v3504_v6 = vld [vmem:[%s4891_s1 + $0x5e0] ss:$16 sps:$4 sm:$0xff]  }
  0x82   :  { %2079 = vmatmul.mubr.bf16.vlgmr.msra.gmra.mrb[0].mxu0 %v2777_v7  ;;  %2284 = vmatmul.mubr.bf16.vlgmr.msra.gmra.mrb[0].mxu1 %v2777_v7  ;;  %v3507_v7 = vld [vmem:[%s4891_s1 + $0x5e8] ss:$16 sps:$4 sm:$0xff]  }
  0x83   :  { %2088 = vmatpush1.bf16.msra.mxu0 %v3414_v8  ;;  %2293 = vmatpush1.bf16.msra.mxu1 %v3417_v9  ;;  %v3514_v8 = vld [vmem:[%s4891_s1 + $0x604] ss:$16 sps:$4 sm:$0xff]   ;;  %v3517_v9 = vld [vmem:[%s4891_s1 + $0x60c] ss:$16 sps:$4 sm:$0xff]  }
  0x84   :  { %2089 = vmatprep.subr.bf16.mxu0 %v3422_v10  ;;  %2294 = vmatprep.subr.bf16.mxu1 %v3425_v12  ;;  %v3512_v10 = vld [vmem:[%s4891_s1 + $0x600] ss:$16 sps:$4 sm:$0xff]   ;;  %v2779_v12 = vcombine.low %v4189_v11, %v4189_v11  ;;  %v3523_v11 = vld [vmem:[%s4891_s1 + $0x62c] ss:$16 sps:$4 sm:$0xff]  }
  0x85   :  { %2119 = vmatprep.mubr.bf16.mxu0 %v2780_v13  ;;  %2324 = vmatprep.mubr.bf16.mxu1 %v2780_v13  ;;  %v3515_v13 = vld [vmem:[%s4891_s1 + $0x608] ss:$16 sps:$4 sm:$0xff]  }
  0x87   :  { %2090 = vmatpush1.bf16.msra.mxu0 %v3420_v14  ;;  %2295 = vmatpush1.bf16.msra.mxu1 %v3423_v15  ;;  %v4387_v14 = vld [vmem:[%s4892_s0 + $0x18] sm:$0xff]  ;;  %v3520_v15 = vld [vmem:[%s4891_s1 + $0x624] ss:$16 sps:$4 sm:$0xff]  }
  0x88   :  { %2091 = vmatprep.subr.bf16.mxu0 %v3428_v16  ;;  %2296 = vmatprep.subr.bf16.mxu1 %v3431_v17  ;;  %v2782_v16 = vcombine.high %v4387_v14, %v4387_v14  ;;  %v3518_v17 = vld [vmem:[%s4891_s1 + $0x620] ss:$16 sps:$4 sm:$0xff]  }
  0x8b   :  { %2092 = vmatpush1.bf16.msra.mxu0 %v3426_v18  ;;  %2297 = vmatpush1.bf16.msra.mxu1 %v3429_v19  ;;  %v3521_v18 = vld [vmem:[%s4891_s1 + $0x628] ss:$16 sps:$4 sm:$0xff]   ;;  %v3526_v19 = vld [vmem:[%s4891_s1 + $0x644] ss:$16 sps:$4 sm:$0xff]  }
  0x8c   :  { %2093 = vmatprep.subr.bf16.mxu0 %v3434_v20  ;;  %2298 = vmatprep.subr.bf16.mxu1 %v3437_v21  ;;  %v3529_v20 = vld [vmem:[%s4891_s1 + $0x64c] ss:$16 sps:$4 sm:$0xff]   ;;  %v3524_v21 = vld [vmem:[%s4891_s1 + $0x640] ss:$16 sps:$4 sm:$0xff]  }
  0x8f   :  { %2094 = vmatpush1.bf16.msra.mxu0 %v3432_v22  ;;  %2299 = vmatpush1.bf16.msra.mxu1 %v3435_v23  ;;  %v3527_v22 = vld [vmem:[%s4891_s1 + $0x648] ss:$16 sps:$4 sm:$0xff]   ;;  %v3532_v23 = vld [vmem:[%s4891_s1 + $0x664] ss:$16 sps:$4 sm:$0xff]  }
  0x90   :  { %2095 = vmatprep.subr.bf16.mxu0 %v3440_v24  ;;  %2300 = vmatprep.subr.bf16.mxu1 %v3443_v25  ;;  %v3535_v24 = vld [vmem:[%s4891_s1 + $0x66c] ss:$16 sps:$4 sm:$0xff]   ;;  %v3530_v25 = vld [vmem:[%s4891_s1 + $0x660] ss:$16 sps:$4 sm:$0xff]  }
  0x93   :  { %2096 = vmatpush1.bf16.msra.mxu0 %v3438_v26  ;;  %2301 = vmatpush1.bf16.msra.mxu1 %v3441_v27  ;;  %v3533_v26 = vld [vmem:[%s4891_s1 + $0x668] ss:$16 sps:$4 sm:$0xff]   ;;  %v3538_v27 = vld [vmem:[%s4891_s1 + $0x684] ss:$16 sps:$4 sm:$0xff]  }
  0x94   :  { %2097 = vmatprep.subr.bf16.mxu0 %v3446_v28  ;;  %2302 = vmatprep.subr.bf16.mxu1 %v3449_v29  ;;  %v3541_v28 = vld [vmem:[%s4891_s1 + $0x68c] ss:$16 sps:$4 sm:$0xff]   ;;  %v3536_v29 = vld [vmem:[%s4891_s1 + $0x680] ss:$16 sps:$4 sm:$0xff]  }
  0x97   :  { %2098 = vmatpush1.bf16.msra.mxu0 %v3444_v30  ;;  %2303 = vmatpush1.bf16.msra.mxu1 %v3447_v31  ;;  %v3539_v30 = vld [vmem:[%s4891_s1 + $0x688] ss:$16 sps:$4 sm:$0xff]   ;;  %v3544_v31 = vld [vmem:[%s4891_s1 + $0x6a4] ss:$16 sps:$4 sm:$0xff]  }
  0x98   :  { %2099 = vmatprep.subr.bf16.mxu0 %v3452_v32  ;;  %2304 = vmatprep.subr.bf16.mxu1 %v3455_v33  ;;  %v3547_v32 = vld [vmem:[%s4891_s1 + $0x6ac] ss:$16 sps:$4 sm:$0xff]   ;;  %v3542_v33 = vld [vmem:[%s4891_s1 + $0x6a0] ss:$16 sps:$4 sm:$0xff]  }
  0x9b   :  { %2100 = vmatpush1.bf16.msra.mxu0 %v3450_v34  ;;  %2305 = vmatpush1.bf16.msra.mxu1 %v3453_v35  ;;  %v3545_v34 = vld [vmem:[%s4891_s1 + $0x6a8] ss:$16 sps:$4 sm:$0xff]   ;;  %v3550_v35 = vld [vmem:[%s4891_s1 + $0x6c4] ss:$16 sps:$4 sm:$0xff]  }
  0x9c   :  { %2101 = vmatprep.subr.bf16.mxu0 %v3458_v36  ;;  %2306 = vmatprep.subr.bf16.mxu1 %v3461_v37  ;;  %v3553_v36 = vld [vmem:[%s4891_s1 + $0x6cc] ss:$16 sps:$4 sm:$0xff]   ;;  %v3548_v37 = vld [vmem:[%s4891_s1 + $0x6c0] ss:$16 sps:$4 sm:$0xff]  }
  0x9f   :  { %2102 = vmatpush1.bf16.msra.mxu0 %v3456_v38  ;;  %2307 = vmatpush1.bf16.msra.mxu1 %v3459_v39  ;;  %v3551_v38 = vld [vmem:[%s4891_s1 + $0x6c8] ss:$16 sps:$4 sm:$0xff]   ;;  %v3556_v39 = vld [vmem:[%s4891_s1 + $0x6e4] ss:$16 sps:$4 sm:$0xff]  }
  0xa0   :  { %2103 = vmatprep.subr.bf16.mxu0 %v3464_v40  ;;  %2308 = vmatprep.subr.bf16.mxu1 %v3467_v41  ;;  %v3559_v40 = vld [vmem:[%s4891_s1 + $0x6ec] ss:$16 sps:$4 sm:$0xff]   ;;  %v3554_v41 = vld [vmem:[%s4891_s1 + $0x6e0] ss:$16 sps:$4 sm:$0xff]  }
  0xa3   :  { %2104 = vmatpush1.bf16.msra.mxu0 %v3462_v42  ;;  %2309 = vmatpush1.bf16.msra.mxu1 %v3465_v43  ;;  %v3557_v42 = vld [vmem:[%s4891_s1 + $0x6e8] ss:$16 sps:$4 sm:$0xff]   ;;  %v3562_v43 = vld [vmem:[%s4891_s1 + $0x704] ss:$16 sps:$4 sm:$0xff]  }
  0xa4   :  { %2105 = vmatprep.subr.bf16.mxu0 %v3470_v44  ;;  %2310 = vmatprep.subr.bf16.mxu1 %v3473_v45  ;;  %v3565_v44 = vld [vmem:[%s4891_s1 + $0x70c] ss:$16 sps:$4 sm:$0xff]   ;;  %v3560_v45 = vld [vmem:[%s4891_s1 + $0x700] ss:$16 sps:$4 sm:$0xff]  }
  0xa7   :  { %2106 = vmatpush1.bf16.msra.mxu0 %v3468_v46  ;;  %2311 = vmatpush1.bf16.msra.mxu1 %v3471_v47  ;;  %v3563_v46 = vld [vmem:[%s4891_s1 + $0x708] ss:$16 sps:$4 sm:$0xff]   ;;  %v3568_v47 = vld [vmem:[%s4891_s1 + $0x724] ss:$16 sps:$4 sm:$0xff]  }
  0xa8   :  { %2107 = vmatprep.subr.bf16.mxu0 %v3476_v48  ;;  %2312 = vmatprep.subr.bf16.mxu1 %v3479_v49  ;;  %v3571_v48 = vld [vmem:[%s4891_s1 + $0x72c] ss:$16 sps:$4 sm:$0xff]   ;;  %v3566_v49 = vld [vmem:[%s4891_s1 + $0x720] ss:$16 sps:$4 sm:$0xff]  }
  0xab   :  { %2108 = vmatpush1.bf16.msra.mxu0 %v3474_v50  ;;  %2313 = vmatpush1.bf16.msra.mxu1 %v3477_v51  ;;  %v3569_v50 = vld [vmem:[%s4891_s1 + $0x728] ss:$16 sps:$4 sm:$0xff]   ;;  %v3574_v51 = vld [vmem:[%s4891_s1 + $0x744] ss:$16 sps:$4 sm:$0xff]  }
  0xac   :  { %2109 = vmatprep.subr.bf16.mxu0 %v3482_v52  ;;  %2314 = vmatprep.subr.bf16.mxu1 %v3485_v53  ;;  %v3577_v52 = vld [vmem:[%s4891_s1 + $0x74c] ss:$16 sps:$4 sm:$0xff]   ;;  %v3572_v53 = vld [vmem:[%s4891_s1 + $0x740] ss:$16 sps:$4 sm:$0xff]  }
  0xaf   :  { %2110 = vmatpush1.bf16.msra.mxu0 %v3480_v54  ;;  %2315 = vmatpush1.bf16.msra.mxu1 %v3483_v55  ;;  %v3575_v54 = vld [vmem:[%s4891_s1 + $0x748] ss:$16 sps:$4 sm:$0xff]   ;;  %v3580_v55 = vld [vmem:[%s4891_s1 + $0x764] ss:$16 sps:$4 sm:$0xff]  }
  0xb0   :  { %2111 = vmatprep.subr.bf16.mxu0 %v3488_v56  ;;  %2316 = vmatprep.subr.bf16.mxu1 %v3491_v57  ;;  %v3583_v56 = vld [vmem:[%s4891_s1 + $0x76c] ss:$16 sps:$4 sm:$0xff]   ;;  %v3578_v57 = vld [vmem:[%s4891_s1 + $0x760] ss:$16 sps:$4 sm:$0xff]  }
  0xb3   :  { %2112 = vmatpush1.bf16.msra.mxu0 %v3486_v58  ;;  %2317 = vmatpush1.bf16.msra.mxu1 %v3489_v59  ;;  %v3581_v58 = vld [vmem:[%s4891_s1 + $0x768] ss:$16 sps:$4 sm:$0xff]   ;;  %v3586_v59 = vld [vmem:[%s4891_s1 + $0x784] ss:$16 sps:$4 sm:$0xff]  }
  0xb4   :  { %2113 = vmatprep.subr.bf16.mxu0 %v3494_v60  ;;  %2318 = vmatprep.subr.bf16.mxu1 %v3497_v61  ;;  %v3589_v60 = vld [vmem:[%s4891_s1 + $0x78c] ss:$16 sps:$4 sm:$0xff]   ;;  %v3584_v61 = vld [vmem:[%s4891_s1 + $0x780] ss:$16 sps:$4 sm:$0xff]  }
  0xb7   :  { %2114 = vmatpush1.bf16.msra.mxu0 %v3492_v62  ;;  %2319 = vmatpush1.bf16.msra.mxu1 %v3495_v63  ;;  %v3587_v62 = vld [vmem:[%s4891_s1 + $0x788] ss:$16 sps:$4 sm:$0xff]   ;;  %v3592_v63 = vld [vmem:[%s4891_s1 + $0x7a4] ss:$16 sps:$4 sm:$0xff]  }
  0xb8   :  { %2115 = vmatprep.subr.bf16.mxu0 %v3500_v0  ;;  %2320 = vmatprep.subr.bf16.mxu1 %v3503_v1  ;;  %v3595_v0 = vld [vmem:[%s4891_s1 + $0x7ac] ss:$16 sps:$4 sm:$0xff]   ;;  %v3590_v1 = vld [vmem:[%s4891_s1 + $0x7a0] ss:$16 sps:$4 sm:$0xff]  }
  0xbb   :  { %2116 = vmatpush1.bf16.msra.mxu0 %v3498_v2  ;;  %2321 = vmatpush1.bf16.msra.mxu1 %v3501_v3  ;;  %v3593_v2 = vld [vmem:[%s4891_s1 + $0x7a8] ss:$16 sps:$4 sm:$0xff]   ;;  %v3598_v3 = vld [vmem:[%s4891_s1 + $0x7c4] ss:$16 sps:$4 sm:$0xff]  }
  0xbc   :  { %2117 = vmatprep.subr.bf16.mxu0 %v3506_v4  ;;  %2322 = vmatprep.subr.bf16.mxu1 %v3509_v5  ;;  %v3601_v4 = vld [vmem:[%s4891_s1 + $0x7cc] ss:$16 sps:$4 sm:$0xff]   ;;  %v3596_v5 = vld [vmem:[%s4891_s1 + $0x7c0] ss:$16 sps:$4 sm:$0xff]  }
  0xbf   :  { %2118 = vmatpush1.bf16.msra.mxu0 %v3504_v6  ;;  %2323 = vmatpush1.bf16.msra.mxu1 %v3507_v7  ;;  %v3599_v6 = vld [vmem:[%s4891_s1 + $0x7c8] ss:$16 sps:$4 sm:$0xff]   ;;  %v3604_v7 = vld [vmem:[%s4891_s1 + $0x7e4] ss:$16 sps:$4 sm:$0xff]  }
  0xc0   :  { %2128 = vmatprep.subr.bf16.mxu0 %v3514_v8  ;;  %2333 = vmatprep.subr.bf16.mxu1 %v3517_v9  ;;  %v3607_v8 = vld [vmem:[%s4891_s1 + $0x7ec] ss:$16 sps:$4 sm:$0xff]   ;;  %v3602_v9 = vld [vmem:[%s4891_s1 + $0x7e0] ss:$16 sps:$4 sm:$0xff]  }
  0xc2   :  { %2120 = vmatmul.mubr.bf16.vlgmr.msra.gmra.mrb[0].mxu0 %v2779_v12  ;;  %2325 = vmatmul.mubr.bf16.vlgmr.msra.gmra.mrb[0].mxu1 %v2779_v12  ;;  %v3612_v12 = vld [vmem:[%s4891_s1 + $0x804] ss:$16 sps:$4 sm:$0xff]  }
  0xc3   :  { %2129 = vmatpush1.bf16.msra.mxu0 %v3512_v10  ;;  %2334 = vmatpush1.bf16.msra.mxu1 %v3515_v13  ;;  %v3605_v10 = vld [vmem:[%s4891_s1 + $0x7e8] ss:$16 sps:$4 sm:$0xff]   ;;  %v3615_v13 = vld [vmem:[%s4891_s1 + $0x80c] ss:$16 sps:$4 sm:$0xff]  }
  0xc4   :  { %2130 = vmatprep.subr.bf16.mxu0 %v3520_v15  ;;  %2335 = vmatprep.subr.bf16.mxu1 %v3523_v11  ;;  %v2781_v15 = vcombine.low %v4387_v14, %v4387_v14  ;;  %v4582_v11 = vld [vmem:[%s4892_s0 + $0x20] sm:$0xff] }
  0xc5   :  { %2160 = vmatprep.mubr.bf16.mxu0 %v2782_v16  ;;  %2365 = vmatprep.mubr.bf16.mxu1 %v2782_v16  ;;  %v3610_v16 = vld [vmem:[%s4891_s1 + $0x800] ss:$16 sps:$4 sm:$0xff]   ;;  %v3618_v14 = vld [vmem:[%s4891_s1 + $0x824] ss:$16 sps:$4 sm:$0xff]  }
  0xc7   :  { %2131 = vmatpush1.bf16.msra.mxu0 %v3518_v17  ;;  %2336 = vmatpush1.bf16.msra.mxu1 %v3521_v18  ;;  %v3613_v17 = vld [vmem:[%s4891_s1 + $0x808] ss:$16 sps:$4 sm:$0xff]   ;;  %v3621_v18 = vld [vmem:[%s4891_s1 + $0x82c] ss:$16 sps:$4 sm:$0xff]  }
  0xc8   :  { %2132 = vmatprep.subr.bf16.mxu0 %v3526_v19  ;;  %2337 = vmatprep.subr.bf16.mxu1 %v3529_v20  ;;  %v2784_v19 = vcombine.high %v4582_v11, %v4582_v11  ;;  %v3616_v20 = vld [vmem:[%s4891_s1 + $0x820] ss:$16 sps:$4 sm:$0xff]  }
  0xcb   :  { %2133 = vmatpush1.bf16.msra.mxu0 %v3524_v21  ;;  %2338 = vmatpush1.bf16.msra.mxu1 %v3527_v22  ;;  %v3619_v21 = vld [vmem:[%s4891_s1 + $0x828] ss:$16 sps:$4 sm:$0xff]   ;;  %v3624_v22 = vld [vmem:[%s4891_s1 + $0x844] ss:$16 sps:$4 sm:$0xff]  }
  0xcc   :  { %2134 = vmatprep.subr.bf16.mxu0 %v3532_v23  ;;  %2339 = vmatprep.subr.bf16.mxu1 %v3535_v24  ;;  %v3627_v23 = vld [vmem:[%s4891_s1 + $0x84c] ss:$16 sps:$4 sm:$0xff]   ;;  %v3622_v24 = vld [vmem:[%s4891_s1 + $0x840] ss:$16 sps:$4 sm:$0xff]  }
  0xcf   :  { %2135 = vmatpush1.bf16.msra.mxu0 %v3530_v25  ;;  %2340 = vmatpush1.bf16.msra.mxu1 %v3533_v26  ;;  %v3625_v25 = vld [vmem:[%s4891_s1 + $0x848] ss:$16 sps:$4 sm:$0xff]   ;;  %v3630_v26 = vld [vmem:[%s4891_s1 + $0x864] ss:$16 sps:$4 sm:$0xff]  }
  0xd0   :  { %2136 = vmatprep.subr.bf16.mxu0 %v3538_v27  ;;  %2341 = vmatprep.subr.bf16.mxu1 %v3541_v28  ;;  %v3633_v27 = vld [vmem:[%s4891_s1 + $0x86c] ss:$16 sps:$4 sm:$0xff]   ;;  %v3628_v28 = vld [vmem:[%s4891_s1 + $0x860] ss:$16 sps:$4 sm:$0xff]  }
  0xd3   :  { %2137 = vmatpush1.bf16.msra.mxu0 %v3536_v29  ;;  %2342 = vmatpush1.bf16.msra.mxu1 %v3539_v30  ;;  %v3631_v29 = vld [vmem:[%s4891_s1 + $0x868] ss:$16 sps:$4 sm:$0xff]   ;;  %v3636_v30 = vld [vmem:[%s4891_s1 + $0x884] ss:$16 sps:$4 sm:$0xff]  }
  0xd4   :  { %2138 = vmatprep.subr.bf16.mxu0 %v3544_v31  ;;  %2343 = vmatprep.subr.bf16.mxu1 %v3547_v32  ;;  %v3639_v31 = vld [vmem:[%s4891_s1 + $0x88c] ss:$16 sps:$4 sm:$0xff]   ;;  %v3634_v32 = vld [vmem:[%s4891_s1 + $0x880] ss:$16 sps:$4 sm:$0xff]  }
  0xd7   :  { %2139 = vmatpush1.bf16.msra.mxu0 %v3542_v33  ;;  %2344 = vmatpush1.bf16.msra.mxu1 %v3545_v34  ;;  %v3637_v33 = vld [vmem:[%s4891_s1 + $0x888] ss:$16 sps:$4 sm:$0xff]   ;;  %v3642_v34 = vld [vmem:[%s4891_s1 + $0x8a4] ss:$16 sps:$4 sm:$0xff]  }
  0xd8   :  { %2140 = vmatprep.subr.bf16.mxu0 %v3550_v35  ;;  %2345 = vmatprep.subr.bf16.mxu1 %v3553_v36  ;;  %v3645_v35 = vld [vmem:[%s4891_s1 + $0x8ac] ss:$16 sps:$4 sm:$0xff]   ;;  %v3640_v36 = vld [vmem:[%s4891_s1 + $0x8a0] ss:$16 sps:$4 sm:$0xff]  }
  0xdb   :  { %2141 = vmatpush1.bf16.msra.mxu0 %v3548_v37  ;;  %2346 = vmatpush1.bf16.msra.mxu1 %v3551_v38  ;;  %v3643_v37 = vld [vmem:[%s4891_s1 + $0x8a8] ss:$16 sps:$4 sm:$0xff]   ;;  %v3648_v38 = vld [vmem:[%s4891_s1 + $0x8c4] ss:$16 sps:$4 sm:$0xff]  }
  0xdc   :  { %2142 = vmatprep.subr.bf16.mxu0 %v3556_v39  ;;  %2347 = vmatprep.subr.bf16.mxu1 %v3559_v40  ;;  %v3651_v39 = vld [vmem:[%s4891_s1 + $0x8cc] ss:$16 sps:$4 sm:$0xff]   ;;  %v3646_v40 = vld [vmem:[%s4891_s1 + $0x8c0] ss:$16 sps:$4 sm:$0xff]  }
  0xdf   :  { %2143 = vmatpush1.bf16.msra.mxu0 %v3554_v41  ;;  %2348 = vmatpush1.bf16.msra.mxu1 %v3557_v42  ;;  %v3649_v41 = vld [vmem:[%s4891_s1 + $0x8c8] ss:$16 sps:$4 sm:$0xff]   ;;  %v3654_v42 = vld [vmem:[%s4891_s1 + $0x8e4] ss:$16 sps:$4 sm:$0xff]  }
  0xe0   :  { %2144 = vmatprep.subr.bf16.mxu0 %v3562_v43  ;;  %2349 = vmatprep.subr.bf16.mxu1 %v3565_v44  ;;  %v3657_v43 = vld [vmem:[%s4891_s1 + $0x8ec] ss:$16 sps:$4 sm:$0xff]   ;;  %v3652_v44 = vld [vmem:[%s4891_s1 + $0x8e0] ss:$16 sps:$4 sm:$0xff]  }
  0xe3   :  { %2145 = vmatpush1.bf16.msra.mxu0 %v3560_v45  ;;  %2350 = vmatpush1.bf16.msra.mxu1 %v3563_v46  ;;  %v3655_v45 = vld [vmem:[%s4891_s1 + $0x8e8] ss:$16 sps:$4 sm:$0xff]   ;;  %v3660_v46 = vld [vmem:[%s4891_s1 + $0x904] ss:$16 sps:$4 sm:$0xff]  }
  0xe4   :  { %2146 = vmatprep.subr.bf16.mxu0 %v3568_v47  ;;  %2351 = vmatprep.subr.bf16.mxu1 %v3571_v48  ;;  %v3663_v47 = vld [vmem:[%s4891_s1 + $0x90c] ss:$16 sps:$4 sm:$0xff]   ;;  %v3658_v48 = vld [vmem:[%s4891_s1 + $0x900] ss:$16 sps:$4 sm:$0xff]  }
  0xe7   :  { %2147 = vmatpush1.bf16.msra.mxu0 %v3566_v49  ;;  %2352 = vmatpush1.bf16.msra.mxu1 %v3569_v50  ;;  %v3661_v49 = vld [vmem:[%s4891_s1 + $0x908] ss:$16 sps:$4 sm:$0xff]   ;;  %v3666_v50 = vld [vmem:[%s4891_s1 + $0x924] ss:$16 sps:$4 sm:$0xff]  }
  0xe8   :  { %2148 = vmatprep.subr.bf16.mxu0 %v3574_v51  ;;  %2353 = vmatprep.subr.bf16.mxu1 %v3577_v52  ;;  %v3669_v51 = vld [vmem:[%s4891_s1 + $0x92c] ss:$16 sps:$4 sm:$0xff]   ;;  %v3664_v52 = vld [vmem:[%s4891_s1 + $0x920] ss:$16 sps:$4 sm:$0xff]  }
  0xeb   :  { %2149 = vmatpush1.bf16.msra.mxu0 %v3572_v53  ;;  %2354 = vmatpush1.bf16.msra.mxu1 %v3575_v54  ;;  %v3667_v53 = vld [vmem:[%s4891_s1 + $0x928] ss:$16 sps:$4 sm:$0xff]   ;;  %v3672_v54 = vld [vmem:[%s4891_s1 + $0x944] ss:$16 sps:$4 sm:$0xff]  }
  0xec   :  { %2150 = vmatprep.subr.bf16.mxu0 %v3580_v55  ;;  %2355 = vmatprep.subr.bf16.mxu1 %v3583_v56  ;;  %v3675_v55 = vld [vmem:[%s4891_s1 + $0x94c] ss:$16 sps:$4 sm:$0xff]   ;;  %v3670_v56 = vld [vmem:[%s4891_s1 + $0x940] ss:$16 sps:$4 sm:$0xff]  }
  0xef   :  { %2151 = vmatpush1.bf16.msra.mxu0 %v3578_v57  ;;  %2356 = vmatpush1.bf16.msra.mxu1 %v3581_v58  ;;  %v3673_v57 = vld [vmem:[%s4891_s1 + $0x948] ss:$16 sps:$4 sm:$0xff]   ;;  %v3678_v58 = vld [vmem:[%s4891_s1 + $0x964] ss:$16 sps:$4 sm:$0xff]  }
  0xf0   :  { %2152 = vmatprep.subr.bf16.mxu0 %v3586_v59  ;;  %2357 = vmatprep.subr.bf16.mxu1 %v3589_v60  ;;  %v3681_v59 = vld [vmem:[%s4891_s1 + $0x96c] ss:$16 sps:$4 sm:$0xff]   ;;  %v3676_v60 = vld [vmem:[%s4891_s1 + $0x960] ss:$16 sps:$4 sm:$0xff]  }
  0xf3   :  { %2153 = vmatpush1.bf16.msra.mxu0 %v3584_v61  ;;  %2358 = vmatpush1.bf16.msra.mxu1 %v3587_v62  ;;  %v3679_v61 = vld [vmem:[%s4891_s1 + $0x968] ss:$16 sps:$4 sm:$0xff]   ;;  %v3684_v62 = vld [vmem:[%s4891_s1 + $0x984] ss:$16 sps:$4 sm:$0xff]  }
  0xf4   :  { %2154 = vmatprep.subr.bf16.mxu0 %v3592_v63  ;;  %2359 = vmatprep.subr.bf16.mxu1 %v3595_v0  ;;  %v3687_v63 = vld [vmem:[%s4891_s1 + $0x98c] ss:$16 sps:$4 sm:$0xff]   ;;  %v3682_v0 = vld [vmem:[%s4891_s1 + $0x980] ss:$16 sps:$4 sm:$0xff]  }
  0xf7   :  { %2155 = vmatpush1.bf16.msra.mxu0 %v3590_v1  ;;  %2360 = vmatpush1.bf16.msra.mxu1 %v3593_v2  ;;  %v3685_v1 = vld [vmem:[%s4891_s1 + $0x988] ss:$16 sps:$4 sm:$0xff]   ;;  %v3690_v2 = vld [vmem:[%s4891_s1 + $0x9a4] ss:$16 sps:$4 sm:$0xff]  }
  0xf8   :  { %2156 = vmatprep.subr.bf16.mxu0 %v3598_v3  ;;  %2361 = vmatprep.subr.bf16.mxu1 %v3601_v4  ;;  %v3693_v3 = vld [vmem:[%s4891_s1 + $0x9ac] ss:$16 sps:$4 sm:$0xff]   ;;  %v3688_v4 = vld [vmem:[%s4891_s1 + $0x9a0] ss:$16 sps:$4 sm:$0xff]  }
  0xfb   :  { %2157 = vmatpush1.bf16.msra.mxu0 %v3596_v5  ;;  %2362 = vmatpush1.bf16.msra.mxu1 %v3599_v6  ;;  %v3691_v5 = vld [vmem:[%s4891_s1 + $0x9a8] ss:$16 sps:$4 sm:$0xff]   ;;  %v3696_v6 = vld [vmem:[%s4891_s1 + $0x9c4] ss:$16 sps:$4 sm:$0xff]  }
  0xfc   :  { %2158 = vmatprep.subr.bf16.mxu0 %v3604_v7  ;;  %2363 = vmatprep.subr.bf16.mxu1 %v3607_v8  ;;  %v3699_v7 = vld [vmem:[%s4891_s1 + $0x9cc] ss:$16 sps:$4 sm:$0xff]   ;;  %v3694_v8 = vld [vmem:[%s4891_s1 + $0x9c0] ss:$16 sps:$4 sm:$0xff]  }
  0xff   :  { %2159 = vmatpush1.bf16.msra.mxu0 %v3602_v9  ;;  %2364 = vmatpush1.bf16.msra.mxu1 %v3605_v10  ;;  %v3697_v9 = vld [vmem:[%s4891_s1 + $0x9c8] ss:$16 sps:$4 sm:$0xff]   ;;  %v3702_v10 = vld [vmem:[%s4891_s1 + $0x9e4] ss:$16 sps:$4 sm:$0xff]  }
 0x100   :  { %2169 = vmatprep.subr.bf16.mxu0 %v3612_v12  ;;  %2374 = vmatprep.subr.bf16.mxu1 %v3615_v13  ;;  %v3705_v12 = vld [vmem:[%s4891_s1 + $0x9ec] ss:$16 sps:$4 sm:$0xff]   ;;  %v3700_v13 = vld [vmem:[%s4891_s1 + $0x9e0] ss:$16 sps:$4 sm:$0xff]  }
 0x102   :  { %2161 = vmatmul.mubr.bf16.vlgmr.msra.gmra.mrb[0].mxu0 %v2781_v15  ;;  %2366 = vmatmul.mubr.bf16.vlgmr.msra.gmra.mrb[0].mxu1 %v2781_v15  ;;  %v3703_v15 = vld [vmem:[%s4891_s1 + $0x9e8] ss:$16 sps:$4 sm:$0xff]  }
 0x103   :  { %2170 = vmatpush1.bf16.msra.mxu0 %v3610_v16  ;;  %2375 = vmatpush1.bf16.msra.mxu1 %v3613_v17  ;;  %v3708_v16 = vld [vmem:[%s4893_s3 + $0x40] sm:$0xff]  }
 0x104   :  { %2171 = vmatprep.subr.bf16.mxu0 %v3618_v14  ;;  %2376 = vmatprep.subr.bf16.mxu1 %v3621_v18  ;;  %v3709_v17 = vld [vmem:[%s4893_s3 + $0xc0] sm:$0xff]   ;;  %v2783_v14 = vcombine.low %v4582_v11, %v4582_v11  ;;  %v3713_v11 = vld [vmem:[%s4893_s3 + $0xc8] sm:$0xff]  }
 0x105   :  { %2201 = vmatprep.mubr.bf16.mxu0 %v2784_v19  ;;  %2406 = vmatprep.mubr.bf16.mxu1 %v2784_v19  ;;  %v3710_v18 = vld [vmem:[%s4893_s3] sm:$0xff]  }
 0x106   :  { %v3711_v19 = vld [vmem:[%s4893_s3 + $0x80] sm:$0xff]  }
 0x107   :  { %2172 = vmatpush1.bf16.msra.mxu0 %v3616_v20  ;;  %2377 = vmatpush1.bf16.msra.mxu1 %v3619_v21  ;;  %v3712_v20 = vld [vmem:[%s4893_s3 + $0x48] sm:$0xff]  }
 0x108   :  { %2173 = vmatprep.subr.bf16.mxu0 %v3624_v22  ;;  %2378 = vmatprep.subr.bf16.mxu1 %v3627_v23  ;;  %v3714_v21 = vld [vmem:[%s4893_s3 + $0x8] sm:$0xff]   ;;  %v3716_v23 = vld [vmem:[%s4893_s3 + $0x50] sm:$0xff]  }
 0x109   :  { %v3715_v22 = vld [vmem:[%s4893_s3 + $0x88] sm:$0xff]  }
 0x10b   :  { %2174 = vmatpush1.bf16.msra.mxu0 %v3622_v24  ;;  %2379 = vmatpush1.bf16.msra.mxu1 %v3625_v25  ;;  %v3717_v24 = vld [vmem:[%s4893_s3 + $0xd0] sm:$0xff]  }
 0x10c   :  { %2175 = vmatprep.subr.bf16.mxu0 %v3630_v26  ;;  %2380 = vmatprep.subr.bf16.mxu1 %v3633_v27  ;;  %v3718_v25 = vld [vmem:[%s4893_s3 + $0x10] sm:$0xff]   ;;  %v3720_v27 = vld [vmem:[%s4893_s3 + $0x58] sm:$0xff]  }
 0x10d   :  { %v3719_v26 = vld [vmem:[%s4893_s3 + $0x90] sm:$0xff]  }
 0x10f   :  { %2176 = vmatpush1.bf16.msra.mxu0 %v3628_v28  ;;  %2381 = vmatpush1.bf16.msra.mxu1 %v3631_v29  ;;  %v3721_v28 = vld [vmem:[%s4893_s3 + $0xd8] sm:$0xff]  }
 0x110   :  { %2177 = vmatprep.subr.bf16.mxu0 %v3636_v30  ;;  %2382 = vmatprep.subr.bf16.mxu1 %v3639_v31  ;;  %v3722_v29 = vld [vmem:[%s4893_s3 + $0x18] sm:$0xff]   ;;  %v3724_v31 = vld [vmem:[%s4893_s3 + $0x60] sm:$0xff]  }
 0x111   :  { %v3723_v30 = vld [vmem:[%s4893_s3 + $0x98] sm:$0xff]  }
 0x113   :  { %2178 = vmatpush1.bf16.msra.mxu0 %v3634_v32  ;;  %2383 = vmatpush1.bf16.msra.mxu1 %v3637_v33  ;;  %v3725_v32 = vld [vmem:[%s4893_s3 + $0xe0] sm:$0xff]  }
 0x114   :  { %2179 = vmatprep.subr.bf16.mxu0 %v3642_v34  ;;  %2384 = vmatprep.subr.bf16.mxu1 %v3645_v35  ;;  %v3726_v33 = vld [vmem:[%s4893_s3 + $0x20] sm:$0xff]   ;;  %v3728_v35 = vld [vmem:[%s4893_s3 + $0x68] sm:$0xff]  }
 0x115   :  { %v3727_v34 = vld [vmem:[%s4893_s3 + $0xa0] sm:$0xff]  }
 0x117   :  { %2180 = vmatpush1.bf16.msra.mxu0 %v3640_v36  ;;  %2385 = vmatpush1.bf16.msra.mxu1 %v3643_v37  ;;  %v3729_v36 = vld [vmem:[%s4893_s3 + $0xe8] sm:$0xff]  }
 0x118   :  { %2181 = vmatprep.subr.bf16.mxu0 %v3648_v38  ;;  %2386 = vmatprep.subr.bf16.mxu1 %v3651_v39  ;;  %v3730_v37 = vld [vmem:[%s4893_s3 + $0x28] sm:$0xff]   ;;  %v3732_v39 = vld [vmem:[%s4893_s3 + $0x70] sm:$0xff]  }
 0x119   :  { %v3731_v38 = vld [vmem:[%s4893_s3 + $0xa8] sm:$0xff]  }
 0x11b   :  { %2182 = vmatpush1.bf16.msra.mxu0 %v3646_v40  ;;  %2387 = vmatpush1.bf16.msra.mxu1 %v3649_v41  ;;  %v3733_v40 = vld [vmem:[%s4893_s3 + $0xf0] sm:$0xff]  }
 0x11c   :  { %2183 = vmatprep.subr.bf16.mxu0 %v3654_v42  ;;  %2388 = vmatprep.subr.bf16.mxu1 %v3657_v43  ;;  %v3734_v41 = vld [vmem:[%s4893_s3 + $0x30] sm:$0xff]   ;;  %v3736_v43 = vld [vmem:[%s4893_s3 + $0x78] sm:$0xff]  }
 0x11d   :  { %v3735_v42 = vld [vmem:[%s4893_s3 + $0xb0] sm:$0xff]  }
 0x11f   :  { %2184 = vmatpush1.bf16.msra.mxu0 %v3652_v44  ;;  %2389 = vmatpush1.bf16.msra.mxu1 %v3655_v45  ;;  %v3737_v44 = vld [vmem:[%s4893_s3 + $0xf8] sm:$0xff]  }
 0x120   :  { %2185 = vmatprep.subr.bf16.mxu0 %v3660_v46  ;;  %2390 = vmatprep.subr.bf16.mxu1 %v3663_v47  ;;  %v3738_v45 = vld [vmem:[%s4893_s3 + $0x38] sm:$0xff]   ;;  %v350_v47 = vlaneseq }
 0x121   :  { %v3739_v46 = vld [vmem:[%s4893_s3 + $0xb8] sm:$0xff]  }
 0x123   :  { %2186 = vmatpush1.bf16.msra.mxu0 %v3658_v48  ;;  %2391 = vmatpush1.bf16.msra.mxu1 %v3661_v49  ;;  %v351_v48 = vshrl.u32 %v350_v47, 7 }
 0x124   :  { %2187 = vmatprep.subr.bf16.mxu0 %v3666_v50  ;;  %2392 = vmatprep.subr.bf16.mxu1 %v3669_v51  ;;  %v348_v51 = vld [vmem:[%s4894_s2] sm:$0xf] }
 0x125   :  { %v352_v49 = vsub.s32 0, %v351_v48  ;;  %v360_v50 = vsub.s32 2, %v351_v48 }
 0x127   :  { %2188 = vmatpush1.bf16.msra.mxu0 %v3664_v52  ;;  %2393 = vmatpush1.bf16.msra.mxu1 %v3667_v53  ;;  %v356_v52 = vsub.s32 1, %v351_v48  ;;  %v364_v53 = vsub.s32 3, %v351_v48 }
 0x128   :  { %2189 = vmatprep.subr.bf16.mxu0 %v3672_v54  ;;  %2394 = vmatprep.subr.bf16.mxu1 %v3675_v55  ;;  %v353_v54 = vrot.slane %v348_v51, %v352_v49  ;;  %v361_v55 = vrot.slane %v348_v51, %v360_v50 }
 0x12b   :  { %2190 = vmatpush1.bf16.msra.mxu0 %v3670_v56  ;;  %2395 = vmatpush1.bf16.msra.mxu1 %v3673_v57  ;;  %v357_v56 = vrot.slane %v348_v51, %v356_v52  ;;  %v365_v57 = vrot.slane %v348_v51, %v364_v53 }
 0x12c   :  { %2191 = vmatprep.subr.bf16.mxu0 %v3678_v58  ;;  %2396 = vmatprep.subr.bf16.mxu1 %v3681_v59 }
 0x12f   :  { %2192 = vmatpush1.bf16.msra.mxu0 %v3676_v60  ;;  %2397 = vmatpush1.bf16.msra.mxu1 %v3679_v61 }
 0x130   :  { %2193 = vmatprep.subr.bf16.mxu0 %v3684_v62  ;;  %2398 = vmatprep.subr.bf16.mxu1 %v3687_v63 }
 0x133   :  { %2194 = vmatpush1.bf16.msra.mxu0 %v3682_v0  ;;  %2399 = vmatpush1.bf16.msra.mxu1 %v3685_v1 }
 0x134   :  { %2195 = vmatprep.subr.bf16.mxu0 %v3690_v2  ;;  %2400 = vmatprep.subr.bf16.mxu1 %v3693_v3 }
 0x137   :  { %2196 = vmatpush1.bf16.msra.mxu0 %v3688_v4  ;;  %2401 = vmatpush1.bf16.msra.mxu1 %v3691_v5 }
 0x138   :  { %2197 = vmatprep.subr.bf16.mxu0 %v3696_v6  ;;  %2402 = vmatprep.subr.bf16.mxu1 %v3699_v7 }
 0x13b   :  { %2198 = vmatpush1.bf16.msra.mxu0 %v3694_v8  ;;  %2403 = vmatpush1.bf16.msra.mxu1 %v3697_v9 }
 0x13c   :  { %2199 = vmatprep.subr.bf16.mxu0 %v3702_v10  ;;  %2404 = vmatprep.subr.bf16.mxu1 %v3705_v12 }
 0x13f   :  { %2200 = vmatpush1.bf16.msra.mxu0 %v3700_v13  ;;  %2405 = vmatpush1.bf16.msra.mxu1 %v3703_v15  ;;  %v3105_v13 = vld [vmem:[%s4896_s4] ss:$0 sm:$0xff] }
 0x140   :  { %3138 = vmatprep.subr.bf16.mxu0 %v3708_v16  ;;  %3160 = vmatprep.subr.bf16.mxu1 %v3709_v17 }
 0x142   :  { %2202 = vmatmul.mubr.bf16.vlgmr.msra.gmra.mrb[0].mxu0 %v2783_v14  ;;  %2407 = vmatmul.mubr.bf16.vlgmr.msra.gmra.mrb[0].mxu1 %v2783_v14 }
 0x143   :  { %3139 = vmatpush3.bf16.msra.mxu0 %v3710_v18  ;;  %3161 = vmatpush3.bf16.msra.mxu1 %v3711_v19 }
 0x144   :  { %3140 = vmatprep.subr.bf16.mxu0 %v3712_v20  ;;  %3162 = vmatprep.subr.bf16.mxu1 %v3713_v11 }
 0x147   :  { %3141 = vmatpush3.bf16.msra.mxu0 %v3714_v21  ;;  %3163 = vmatpush3.bf16.msra.mxu1 %v3715_v22 }
 0x148   :  { %3142 = vmatprep.subr.bf16.mxu0 %v3716_v23  ;;  %3164 = vmatprep.subr.bf16.mxu1 %v3717_v24 }
 0x14b   :  { %3143 = vmatpush3.bf16.msra.mxu0 %v3718_v25  ;;  %3165 = vmatpush3.bf16.msra.mxu1 %v3719_v26 }
 0x14c   :  { %3144 = vmatprep.subr.bf16.mxu0 %v3720_v27  ;;  %3166 = vmatprep.subr.bf16.mxu1 %v3721_v28 }
 0x14f   :  { %3145 = vmatpush3.bf16.msra.mxu0 %v3722_v29  ;;  %3167 = vmatpush3.bf16.msra.mxu1 %v3723_v30 }
 0x150   :  { %3146 = vmatprep.subr.bf16.mxu0 %v3724_v31  ;;  %3168 = vmatprep.subr.bf16.mxu1 %v3725_v32 }
 0x153   :  { %3147 = vmatpush3.bf16.msra.mxu0 %v3726_v33  ;;  %3169 = vmatpush3.bf16.msra.mxu1 %v3727_v34 }
 0x154   :  { %3148 = vmatprep.subr.bf16.mxu0 %v3728_v35  ;;  %3170 = vmatprep.subr.bf16.mxu1 %v3729_v36 }
 0x157   :  { %3149 = vmatpush3.bf16.msra.mxu0 %v3730_v37  ;;  %3171 = vmatpush3.bf16.msra.mxu1 %v3731_v38 }
 0x158   :  { %3150 = vmatprep.subr.bf16.mxu0 %v3732_v39  ;;  %3172 = vmatprep.subr.bf16.mxu1 %v3733_v40 }
 0x15b   :  { %3151 = vmatpush3.bf16.msra.mxu0 %v3734_v41  ;;  %3173 = vmatpush3.bf16.msra.mxu1 %v3735_v42 }
 0x15c   :  { %3152 = vmatprep.subr.bf16.mxu0 %v3736_v43  ;;  %3174 = vmatprep.subr.bf16.mxu1 %v3737_v44 }
 0x15f   :  { %3153 = vmatpush3.bf16.msra.mxu0 %v3738_v45  ;;  %3175 = vmatpush3.bf16.msra.mxu1 %v3739_v46 }
 0x215   :  { %v2203_v58 = vpop.f32.mrb[0].mxu0  ;;  %v2408_v59 = vpop.f32.mrb[0].mxu1 }
 0x216   :  { %v3182_v60 = vadd.f32 %v2203_v58, %v353_v54  ;;  %v3184_v61 = vadd.f32 %v2408_v59, %v361_v55  ;;  %v2205_v62 = vpop.f32.mrb[1].mxu0  ;;  %v2410_v63 = vpop.f32.mrb[1].mxu1 }
 0x217   :  { %v3183_v0 = vadd.f32 %v2205_v62, %v357_v56  ;;  %v3185_v1 = vadd.f32 %v2410_v63, %v365_v57  ;;  %v2207_v2 = vpop.f32.mrb[2].mxu0  ;;  %v2412_v3 = vpop.f32.mrb[2].mxu1 }
 0x218   :  { %2415 = vst [vmem:[%s4895_s5] sm:$0xff] %v3182_v60  ;;  %2417 = vst [vmem:[%s4895_s5 + $0x10] sm:$0xff] %v3184_v61  ;;  %v2208_v4 = vpop.f32.mrb[3].mxu0  ;;  %v2413_v5 = vpop.f32.mrb[3].mxu1  ;;  %v2419_v8 = vpack.c.bf16 %v3182_v60, %v3182_v60  ;;  %v2421_v9 = vpack.c.bf16 %v3184_v61, %v3184_v61 }
 0x219   :  { %2416 = vst [vmem:[%s4895_s5 + $0x8] sm:$0xff] %v3183_v0  ;;  %v2420_v6 = vpack.c.bf16 %v3183_v0, %v3183_v0  ;;  %2418 = vst [vmem:[%s4895_s5 + $0x18] sm:$0xff] %v3185_v1  ;;  %v2422_v7 = vpack.c.bf16 %v3185_v1, %v3185_v1 }
 0x21b   :  { %2718 = vmatprep.mubr.bf16.mxu0 %v2420_v6  ;;  %2758 = vmatprep.mubr.bf16.mxu1 %v2422_v7 }
 0x21c   :  { %2719 = vmatmul.mubr.bf16.vlgmr.msra.gmra.mrb[4].mxu0 %v2419_v8  ;;  %2759 = vmatmul.mubr.bf16.vlgmr.msra.gmra.mrb[4].mxu1 %v2421_v9 }
 0x2ef   :  { %v3154_v10 = vpop.f32.mrb[4].mxu0  ;;  %v3176_v12 = vpop.f32.mrb[4].mxu1 }
 0x2f0   :  { %v3155_v15 = vpop.f32.mrb[5].mxu0  ;;  %v3177_v16 = vpop.f32.mrb[5].mxu1 }
 0x2f1   :  { %v3156_v17 = vadd.f32 %v3155_v15, %v3154_v10  ;;  %v3178_v14 = vadd.f32 %v3177_v16, %v3176_v12  ;;  %v3157_v18 = vpop.f32.mrb[6].mxu0  ;;  %v3179_v19 = vpop.f32.mrb[6].mxu1 }
 0x2f2   :  { %v3158_v20 = vpop.f32.mrb[7].mxu0  ;;  %v3180_v11 = vpop.f32.mrb[7].mxu1 }
 0x2f3   :  { %v2721_v21 = vadd.f32 %v3156_v17, %v3105_v13 }
 0x2f5   :  { %v2761_v22 = vadd.f32 %v3178_v14, %v2721_v21 }
 0x2f7   :  { %2766 = vst [vmem:[%s4897_s6] sm:$0xff] %v2761_v22 }

</bundles_post_ra>
